<compile_context>
chip_gen: v5e
topology: v5e:2x2
jax: 0.10.0
libtpu: 0.0.40
codegen_flags: <defaults>
</compile_context>

<pallas_src>
import math
import functools

import jax
import jax.numpy as jnp
from jax import lax
from jax.experimental import pallas as pl
from jax.experimental.pallas import tpu as pltpu

NUM_GROUPS = 32
GN_EPS = 1e-5
_NEG_INF = -1e30


def _chip_generation():
    try:
        kind = jax.devices()[0].device_kind.lower()
    except Exception:
        return None
    if "v5 lite" in kind or "v5e" in kind or "v5litepod" in kind:
        return "v5e"
    if "v6" in kind:
        return "v6e"
    if "v7" in kind:
        return "v7x"
    return None


def _pick_tile(n, limit, align):
    """Largest divisor of n that is <= limit and a multiple of align (prefer x128)."""
    limit = max(align, min(limit, n))
    cands = [d for d in range(align, limit + 1, align) if n % d == 0]
    if not cands:
        return n
    c128 = [d for d in cands if d % 128 == 0]
    return max(c128) if c128 else max(cands)


def _attn_block_kernel(x_ref, wqkv_ref, bqkv_ref, wo_ref, bo_ref,
                       gamma_ref, beta_ref, gmap_ref, o_ref,
                       q_scr, k_scr, v_scr, oh_scr,
                       *, num_heads, q_tile, kv_tile, s_actual, cdt, exp_dtype,
                       approx_recip, align):
    qt = pl.program_id(1)
    _, S_pad, hd = q_scr.shape
    C = num_heads * hd
    gs = C // NUM_GROUPS
    n_chunks = S_pad // q_tile
    n_kv = S_pad // kv_tile
    padded = (S_pad != s_actual)

    # ---- once per batch (qt == 0): chunked GroupNorm + fused QKV into head-major scratch ----
    @pl.when(qt == 0)
    def _():
        gmap = gmap_ref[...]                                   # (C, G) one-hot group map (f32)
        n = jnp.float32(s_actual * gs)

        # pass 1: per-channel sums (padded rows are zero -> no mask needed here)
        def _sum_body(i, acc):
            r0 = pl.multiple_of(i * q_tile, align)
            xc = x_ref[0, pl.ds(r0, q_tile), :].astype(jnp.float32)
            return acc + jnp.sum(xc, axis=0, keepdims=True)

        sum_c = lax.fori_loop(0, n_chunks, _sum_body, jnp.zeros((1, C), jnp.float32))
        mean_g = jnp.dot(sum_c, gmap, preferred_element_type=jnp.float32) / n     # (1, G)
        mean_c = lax.dot_general(mean_g, gmap, (((1,), (1,)), ((), ())),
                                 preferred_element_type=jnp.float32)              # (1, C)

        # pass 2: per-channel sum of squared deviations (two-pass variance, row-masked)
        def _ssq_body(i, acc):
            r0 = pl.multiple_of(i * q_tile, align)
            xc = x_ref[0, pl.ds(r0, q_tile), :].astype(jnp.float32)
            d = xc - mean_c
            if padded:
                rows = r0 + lax.broadcasted_iota(jnp.int32, (q_tile, 1), 0)
                d = jnp.where(rows < s_actual, d, 0.0)
            return acc + jnp.sum(d * d, axis=0, keepdims=True)

        ssq_c = lax.fori_loop(0, n_chunks, _ssq_body, jnp.zeros((1, C), jnp.float32))
        var_g = jnp.dot(ssq_c, gmap, preferred_element_type=jnp.float32) / n       # (1, G)
        inv_g = lax.rsqrt(var_g + GN_EPS)
        inv_c = lax.dot_general(inv_g, gmap, (((1,), (1,)), ((), ())),
                                preferred_element_type=jnp.float32)                # (1, C)
        scale_c = inv_c * gamma_ref[...]
        shift_c = beta_ref[...] - mean_c * scale_c

        wqkv = wqkv_ref[...]                                    # (C, 3C), hoisted once
        bqkv = bqkv_ref[...]                                    # (1, 3C) f32

        # pass 3: normalize + project chunk-by-chunk, scatter into (num_heads, S, hd) scratch
        @pl.loop(0, n_chunks)
        def _(i):
            r0 = pl.multiple_of(i * q_tile, align)
            xc = x_ref[0, pl.ds(r0, q_tile), :].astype(jnp.float32)
            xn = xc * scale_c + shift_c                          # affine-folded GroupNorm
            qkv = jnp.dot(xn.astype(cdt), wqkv,
                          preferred_element_type=jnp.float32) + bqkv   # (chunk, 3C) f32
            for h in range(num_heads):
                off = h * hd
                q_scr[h, pl.ds(r0, q_tile), :] = qkv[:, off:off + hd].astype(cdt)
                k_scr[h, pl.ds(r0, q_tile), :] = qkv[:, C + off:C + off + hd].astype(cdt)
                v_scr[h, pl.ds(r0, q_tile), :] = qkv[:, 2 * C + off:2 * C + off + hd].astype(cdt)

    # ---- per query tile: flash attention per head + one K=C output projection + residual ----
    row0 = pl.multiple_of(qt * q_tile, align)

    for h in range(num_heads):                                   # static unroll over heads
        q_h = q_scr[h, pl.ds(row0, q_tile), :]                   # (TQ, hd) compute dtype

        def _kv_body(j, carry, q_h=q_h, h=h):
            m, l, acc = carry
            c0 = pl.multiple_of(j * kv_tile, align)
            k_t = k_scr[h, pl.ds(c0, kv_tile), :]                # (TK, hd)
            v_t = v_scr[h, pl.ds(c0, kv_tile), :]                # (TK, hd)
            s = lax.dot_general(q_h, k_t, (((1,), (1,)), ((), ())),
                                preferred_element_type=jnp.float32)       # (TQ, TK)
            if padded:
                cols = c0 + lax.broadcasted_iota(jnp.int32, (1, kv_tile), 1)
                s = jnp.where(cols < s_actual, s, _NEG_INF)
            m_new = jnp.maximum(m, jnp.max(s, axis=-1, keepdims=True))
            alpha = jnp.exp(m - m_new)                           # f32 rescale factor
            p = jnp.exp((s - m_new).astype(exp_dtype))           # bf16 EUP on v6e/v7x bf16 path
            l_new = alpha * l + jnp.sum(p, axis=-1, keepdims=True, dtype=jnp.float32)
            acc_new = alpha * acc + jnp.dot(p.astype(cdt), v_t,
                                            preferred_element_type=jnp.float32)
            return m_new, l_new, acc_new

        m0 = jnp.full((q_tile, 1), _NEG_INF, jnp.float32)
        l0 = jnp.zeros((q_tile, 1), jnp.float32)
        a0 = jnp.zeros((q_tile, hd), jnp.float32)
        _, l_fin, acc_h = lax.fori_loop(0, n_kv, _kv_body, (m0, l0, a0))

        if approx_recip:
            inv_l = pl.reciprocal(l_fin, approx=True)
        else:
            inv_l = 1.0 / l_fin
        oh_scr[:, h * hd:(h + 1) * hd] = (acc_h * inv_l).astype(cdt)

    y = jnp.dot(oh_scr[...], wo_ref[...], preferred_element_type=jnp.float32)       # (TQ, C)
    x_t = x_ref[0, pl.ds(row0, q_tile), :].astype(jnp.float32)    # original (pre-norm) rows
    o_ref[0] = (y + bo_ref[...] + x_t).astype(o_ref.dtype)


def self_attention_block(x_nchw, params, *, num_heads: int,
                         compute_dtype=jnp.float32,
                         max_q_tile=None, max_kv_tile=None):
    """x_nchw: (B, C, H, W) float32. Returns (B, C, H, W)."""
    B, C, H, W = x_nchw.shape
    S = H * W
    assert C % NUM_GROUPS == 0 and C % num_heads == 0
    G = NUM_GROUPS
    gs = C // G
    hd = C // num_heads
    cdt = jnp.dtype(compute_dtype)
    chip = _chip_generation()

    # chip-aware defaults (v7x has half the VMEM of v5e/v6e)
    if max_q_tile is None:
        max_q_tile = 256 if chip == "v7x" else 512
    if max_kv_tile is None:
        max_kv_tile = 512
    vmem_limit = {"v5e": 100, "v6e": 100, "v7x": 56}.get(chip, 48) * 1024 * 1024

    align = 16 if cdt == jnp.dtype(jnp.bfloat16) else 8
    S_pad = ((S + align - 1) // align) * align

    # TODO(synk): ingest NCHW directly (in-kernel transpose) to save the two wrapper-level
    #             HBM transpose passes.
    x_seq = jnp.transpose(x_nchw, (0, 2, 3, 1)).reshape(B, S, C)    # b c h w -> b (h w) c
    if S_pad != S:
        x_seq = jnp.pad(x_seq, ((0, 0), (0, S_pad - S), (0, 0)))

    # ---- pack parameters (fold 1/sqrt(hd) into wq/bq; fuse QKV; fold out-proj transpose) ----
    w = params["in_proj_weight"]              # (3C, C)
    bqkv_raw = params["in_proj_bias"]         # (3C,)
    scale = 1.0 / math.sqrt(hd)
    wq = w[:C].T * scale                      # q = xn @ wq (pre-scaled)
    wk = w[C:2 * C].T
    wv = w[2 * C:].T
    wqkv = jnp.concatenate([wq, wk, wv], axis=1).astype(cdt)        # (C, 3C)
    bqkv = jnp.concatenate([bqkv_raw[:C] * scale, bqkv_raw[C:2 * C],
                            bqkv_raw[2 * C:]]).reshape(1, 3 * C).astype(jnp.float32)
    wo = params["out_proj_weight"].T.astype(cdt)                    # (C, C)
    bo = params["out_proj_bias"].reshape(1, C).astype(jnp.float32)
    gamma = params["gn_weight"].reshape(1, C).astype(jnp.float32)
    beta = params["gn_bias"].reshape(1, C).astype(jnp.float32)
    g_map = (jnp.arange(C)[:, None] // gs == jnp.arange(G)[None, :]).astype(jnp.float32)

    TQ = _pick_tile(S_pad, max_q_tile, align)
    TK = _pick_tile(S_pad, max_kv_tile, align)
    QT = S_pad // TQ

    # bf16 exponentials only where the EUP supports them natively (v6e/v7x) and bf16 compute.
    exp_dtype = (jnp.bfloat16
                 if (cdt == jnp.dtype(jnp.bfloat16) and chip in ("v6e", "v7x"))
                 else jnp.float32)

    kernel = functools.partial(
        _attn_block_kernel, num_heads=num_heads, q_tile=TQ, kv_tile=TK,
        s_actual=S, cdt=cdt, exp_dtype=exp_dtype,
        approx_recip=(cdt == jnp.dtype(jnp.bfloat16)), align=align)

    def _call(use_buffered):
        def const_spec(shape):
            kw = {}
            if use_buffered:
                kw["pipeline_mode"] = pl.Buffered(1)     # constant index -> 2nd buffer is waste
            return pl.BlockSpec(shape, lambda b, qt: (0,) * len(shape), **kw)

        x_kw = {}
        if use_buffered and chip == "v7x":
            x_kw["pipeline_mode"] = pl.Buffered(1)       # x only re-fetched when b changes

        return pl.pallas_call(
            kernel,
            out_shape=jax.ShapeDtypeStruct((B, S_pad, C), x_seq.dtype),
            grid_spec=pltpu.PrefetchScalarGridSpec(
                num_scalar_prefetch=0,
                grid=(B, QT),
                in_specs=[
                    pl.BlockSpec((1, S_pad, C), lambda b, qt: (b, 0, 0), **x_kw),  # x, once/b
                    const_spec((C, 3 * C)),                                        # wqkv
                    const_spec((1, 3 * C)),                                        # bqkv
                    const_spec((C, C)),                                            # wo
                    const_spec((1, C)),                                            # bo
                    const_spec((1, C)),                                            # gamma
                    const_spec((1, C)),                                            # beta
                    const_spec((C, G)),                                            # group map
                ],
                out_specs=pl.BlockSpec((1, TQ, C), lambda b, qt: (b, qt, 0)),
                scratch_shapes=[
                    pltpu.VMEM((num_heads, S_pad, hd), cdt),   # Q (head-major)
                    pltpu.VMEM((num_heads, S_pad, hd), cdt),   # K (head-major)
                    pltpu.VMEM((num_heads, S_pad, hd), cdt),   # V (head-major)
                    pltpu.VMEM((TQ, C), cdt),                  # per-tile head outputs
                ],
            ),
            compiler_params=pltpu.CompilerParams(
                dimension_semantics=("parallel", "arbitrary"),
                vmem_limit_bytes=vmem_limit,
            ),
        )(x_seq, wqkv, bqkv, wo, bo, gamma, beta, g_map)

    try:
        out = jax.block_until_ready(_call(True))
    except Exception:
        # pipeline_mode=pl.Buffered not supported by this JAX/Mosaic build -> default buffering
        out = _call(False)

    out = out[:, :S, :]
    return jnp.transpose(out.reshape(B, H, W, C), (0, 3, 1, 2))    # b (h w) c -> b c h w


def _reference(x_nchw, params, *, num_heads: int):
    """Pure-JAX reference matching torch GroupNorm + MultiheadAttention."""
    B, C, H, W = x_nchw.shape
    S = H * W
    xg = x_nchw.reshape(B, NUM_GROUPS, C // NUM_GROUPS, H, W)
    mean = jnp.mean(xg, axis=(2, 3, 4), keepdims=True)
    var = jnp.mean((xg - mean) ** 2, axis=(2, 3, 4), keepdims=True)
    xn = ((xg - mean) / jnp.sqrt(var + GN_EPS)).reshape(B, C, H, W)
    xn = xn * params["gn_weight"][None, :, None, None] + params["gn_bias"][None, :, None, None]
    xs = jnp.transpose(xn, (0, 2, 3, 1)).reshape(B, S, C)
    w = params["in_proj_weight"]
    bqkv = params["in_proj_bias"]
    q = xs @ w[:C].T + bqkv[:C]
    k = xs @ w[C:2 * C].T + bqkv[C:2 * C]
    v = xs @ w[2 * C:].T + bqkv[2 * C:]
    hd = C // num_heads
    q = q.reshape(B, S, num_heads, hd).transpose(0, 2, 1, 3) / math.sqrt(hd)
    k = k.reshape(B, S, num_heads, hd).transpose(0, 2, 1, 3)
    v = v.reshape(B, S, num_heads, hd).transpose(0, 2, 1, 3)
    s = jnp.einsum("bhqd,bhkd->bhqk", q, k)
    p = jax.nn.softmax(s, axis=-1)
    o = jnp.einsum("bhqk,bhkd->bhqd", p, v).transpose(0, 2, 1, 3).reshape(B, S, C)
    y = o @ params["out_proj_weight"].T + params["out_proj_bias"]
    y = jnp.transpose(y.reshape(B, H, W, C), (0, 3, 1, 2))
    return y + x_nchw


if __name__ == "__main__":
    # GroupNorm(32, C) requires C % 32 == 0; keep shapes small.
    B, C, H, W = 2, 128, 8, 8
    NUM_HEADS = 2

    key = jax.random.PRNGKey(0)
    kx, k1, k2, k3, k4, k5, k6 = jax.random.split(key, 7)
    x = jax.random.normal(kx, (B, C, H, W), dtype=jnp.float32)

    params = {
        "gn_weight": 1.0 + 0.1 * jax.random.normal(k1, (C,), dtype=jnp.float32),
        "gn_bias": 0.1 * jax.random.normal(k2, (C,), dtype=jnp.float32),
        "in_proj_weight": jax.random.normal(k3, (3 * C, C), dtype=jnp.float32) / math.sqrt(C),
        "in_proj_bias": 0.1 * jax.random.normal(k4, (3 * C,), dtype=jnp.float32),
        "out_proj_weight": jax.random.normal(k5, (C, C), dtype=jnp.float32) / math.sqrt(C),
        "out_proj_bias": 0.1 * jax.random.normal(k6, (C,), dtype=jnp.float32),
    }

    ref = _reference(x, params, num_heads=NUM_HEADS)

    # f32 path with both query tiling (TQ=32 -> 2 tiles) and the flash KV loop (TK=32 -> 2 iters).
    out_f32 = self_attention_block(x, params, num_heads=NUM_HEADS,
                                   compute_dtype=jnp.float32, max_q_tile=32, max_kv_tile=32)
    out_f32 = jax.block_until_ready(out_f32)
    assert out_f32.shape == x.shape and out_f32.dtype == x.dtype
    err_f32 = float(jnp.max(jnp.abs(out_f32 - ref)))
    assert jnp.allclose(out_f32, ref, atol=5e-4, rtol=5e-4), err_f32

    # bf16 MXU-operand path (f32 GroupNorm stats / f32 accumulation), looser tolerance.
    out_bf16 = self_attention_block(x, params, num_heads=NUM_HEADS,
                                    compute_dtype=jnp.bfloat16)
    out_bf16 = jax.block_until_ready(out_bf16)
    err_bf16 = float(jnp.max(jnp.abs(out_bf16 - ref)))
    assert jnp.allclose(out_bf16, ref, atol=5e-2, rtol=5e-2), err_bf16

    # Non-divisible spatial size (7x7 -> S=49 padded to 56) exercising the masked path.
    x2 = jax.random.normal(jax.random.PRNGKey(1), (1, C, 7, 7), dtype=jnp.float32)
    ref2 = _reference(x2, params, num_heads=4)
    out2 = self_attention_block(x2, params, num_heads=4, compute_dtype=jnp.float32)
    out2 = jax.block_until_ready(out2)
    err2 = float(jnp.max(jnp.abs(out2 - ref2)))
    assert jnp.allclose(out2, ref2, atol=5e-4, rtol=5e-4), err2

    print("KERNEL_OK")
</pallas_src>

<mosaic_0001>
module attributes {stable_mosaic.version = 11 : i64} {
  func.func @_attn_block_kernel(%arg0: i32, %arg1: i32, %arg2: memref<1x64x128xf32, #tpu.memory_space<vmem>>, %arg3: memref<128x384xf32, #tpu.memory_space<vmem>>, %arg4: memref<1x384xf32, #tpu.memory_space<vmem>>, %arg5: memref<128x128xf32, #tpu.memory_space<vmem>>, %arg6: memref<1x128xf32, #tpu.memory_space<vmem>>, %arg7: memref<1x128xf32, #tpu.memory_space<vmem>>, %arg8: memref<1x128xf32, #tpu.memory_space<vmem>>, %arg9: memref<128x32xf32, #tpu.memory_space<vmem>>, %arg10: memref<1x32x128xf32, #tpu.memory_space<vmem>>, %arg11: memref<2x64x64xf32, #tpu.memory_space<vmem>>, %arg12: memref<2x64x64xf32, #tpu.memory_space<vmem>>, %arg13: memref<2x64x64xf32, #tpu.memory_space<vmem>>, %arg14: memref<32x128xf32, #tpu.memory_space<vmem>>) attributes {dimension_semantics = [#tpu.dimension_semantics<parallel>, #tpu.dimension_semantics<arbitrary>], iteration_bounds = array<i64: 2, 2>, scalar_prefetch = 0 : i64, scratch_operands = 4 : i64, tpu.core_type = #tpu.core_type<tc>, window_params = [{transform_indices = @transform_0, window_bounds = array<i64: 1, 64, 128>}, {pipeline_mode = #tpu.pipeline_mode<synchronous>, transform_indices = @transform_1, window_bounds = array<i64: 128, 384>}, {pipeline_mode = #tpu.pipeline_mode<synchronous>, transform_indices = @transform_2, window_bounds = array<i64: 1, 384>}, {pipeline_mode = #tpu.pipeline_mode<synchronous>, transform_indices = @transform_3, window_bounds = array<i64: 128, 128>}, {pipeline_mode = #tpu.pipeline_mode<synchronous>, transform_indices = @transform_4, window_bounds = array<i64: 1, 128>}, {pipeline_mode = #tpu.pipeline_mode<synchronous>, transform_indices = @transform_5, window_bounds = array<i64: 1, 128>}, {pipeline_mode = #tpu.pipeline_mode<synchronous>, transform_indices = @transform_6, window_bounds = array<i64: 1, 128>}, {pipeline_mode = #tpu.pipeline_mode<synchronous>, transform_indices = @transform_7, window_bounds = array<i64: 128, 32>}, {transform_indices = @transform_8, window_bounds = array<i64: 1, 32, 128>}]} {
    %c0_i32 = arith.constant 0 : i32
    %0 = arith.cmpi eq, %arg1, %c0_i32 : i32
    %1 = arith.extui %0 : i1 to i32
    %c0_i32_0 = arith.constant 0 : i32
    %2 = arith.cmpi ne, %1, %c0_i32_0 : i32
    scf.if %2 {
      %c0_31 = arith.constant 0 : index
      %c0_32 = arith.constant 0 : index
      %44 = vector.load %arg9[%c0_31, %c0_32] : memref<128x32xf32, #tpu.memory_space<vmem>>, vector<128x32xf32>
      %cst_33 = arith.constant 0.000000e+00 : f32
      %45 = vector.broadcast %cst_33 : f32 to vector<1x128xf32>
      %c0_i32_34 = arith.constant 0 : i32
      %c2_i32_35 = arith.constant 2 : i32
      %46 = arith.addi %c0_i32_34, %c2_i32_35 : i32
      %c1_i32_36 = arith.constant 1 : i32
      %47 = scf.for %arg15 = %c0_i32_34 to %46 step %c1_i32_36 iter_args(%arg16 = %45) -> (vector<1x128xf32>)  : i32 {
        %c32_i32_62 = arith.constant 32 : i32
        %70 = arith.muli %arg15, %c32_i32_62 : i32
        %71 = tpu.assume_multiple %70, 8 : i32
        %c0_63 = arith.constant 0 : index
        %72 = arith.index_cast %71 : i32 to index
        %c0_64 = arith.constant 0 : index
        %73 = vector.load %arg2[%c0_63, %72, %c0_64] : memref<1x64x128xf32, #tpu.memory_space<vmem>>, vector<1x32x128xf32>
        %74 = vector.shape_cast %73 : vector<1x32x128xf32> to vector<32x128xf32>
        %cst_65 = arith.constant dense<0.000000e+00> : vector<128xf32>
        %75 = vector.multi_reduction <add>, %74, %cst_65 [0] : vector<32x128xf32> to vector<128xf32>
        %76 = vector.shape_cast %75 : vector<128xf32> to vector<1x128xf32>
        %77 = arith.addf %arg16, %76 : vector<1x128xf32>
        scf.yield %77 : vector<1x128xf32>
      }
      %c2_i32_37 = arith.constant 2 : i32
      %cst_38 = arith.constant dense<0.000000e+00> : vector<1x32xf32>
      %48 = tpu.matmul %47, %44, %cst_38 {dimension_numbers = #tpu.dot_dimension_numbers<[1], [0], [0], [1], [0, 0, 1, 1], [], []>} : vector<1x128xf32>, vector<128x32xf32>, vector<1x32xf32> -> vector<1x32xf32>
      %cst_39 = arith.constant 2.560000e+02 : f32
      %49 = vector.broadcast %cst_39 : f32 to vector<1x32xf32>
      %50 = arith.divf %48, %49 : vector<1x32xf32>
      %cst_40 = arith.constant dense<0.000000e+00> : vector<1x128xf32>
      %51 = tpu.matmul %50, %44, %cst_40 {dimension_numbers = #tpu.dot_dimension_numbers<[1], [1], [0], [0], [0, 0, 1, 0], [], []>} : vector<1x32xf32>, vector<128x32xf32>, vector<1x128xf32> -> vector<1x128xf32>
      %cst_41 = arith.constant 0.000000e+00 : f32
      %52 = vector.broadcast %cst_41 : f32 to vector<1x128xf32>
      %c0_i32_42 = arith.constant 0 : i32
      %c2_i32_43 = arith.constant 2 : i32
      %53 = arith.addi %c0_i32_42, %c2_i32_43 : i32
      %c1_i32_44 = arith.constant 1 : i32
      %54 = scf.for %arg15 = %c0_i32_42 to %53 step %c1_i32_44 iter_args(%arg16 = %52) -> (vector<1x128xf32>)  : i32 {
        %c32_i32_62 = arith.constant 32 : i32
        %70 = arith.muli %arg15, %c32_i32_62 : i32
        %71 = tpu.assume_multiple %70, 8 : i32
        %c0_63 = arith.constant 0 : index
        %72 = arith.index_cast %71 : i32 to index
        %c0_64 = arith.constant 0 : index
        %73 = vector.load %arg2[%c0_63, %72, %c0_64] : memref<1x64x128xf32, #tpu.memory_space<vmem>>, vector<1x32x128xf32>
        %74 = vector.shape_cast %73 : vector<1x32x128xf32> to vector<32x128xf32>
        %75 = vector.broadcast %51 : vector<1x128xf32> to vector<32x128xf32>
        %76 = arith.subf %74, %75 : vector<32x128xf32>
        %77 = arith.mulf %76, %76 : vector<32x128xf32>
        %cst_65 = arith.constant dense<0.000000e+00> : vector<128xf32>
        %78 = vector.multi_reduction <add>, %77, %cst_65 [0] : vector<32x128xf32> to vector<128xf32>
        %79 = vector.shape_cast %78 : vector<128xf32> to vector<1x128xf32>
        %80 = arith.addf %arg16, %79 : vector<1x128xf32>
        scf.yield %80 : vector<1x128xf32>
      }
      %c2_i32_45 = arith.constant 2 : i32
      %cst_46 = arith.constant dense<0.000000e+00> : vector<1x32xf32>
      %55 = tpu.matmul %54, %44, %cst_46 {dimension_numbers = #tpu.dot_dimension_numbers<[1], [0], [0], [1], [0, 0, 1, 1], [], []>} : vector<1x128xf32>, vector<128x32xf32>, vector<1x32xf32> -> vector<1x32xf32>
      %cst_47 = arith.constant 2.560000e+02 : f32
      %56 = vector.broadcast %cst_47 : f32 to vector<1x32xf32>
      %57 = arith.divf %55, %56 : vector<1x32xf32>
      %cst_48 = arith.constant 9.99999974E-6 : f32
      %58 = vector.broadcast %cst_48 : f32 to vector<1x32xf32>
      %59 = arith.addf %57, %58 : vector<1x32xf32>
      %60 = math.rsqrt %59 : vector<1x32xf32>
      %cst_49 = arith.constant dense<0.000000e+00> : vector<1x128xf32>
      %61 = tpu.matmul %60, %44, %cst_49 {dimension_numbers = #tpu.dot_dimension_numbers<[1], [1], [0], [0], [0, 0, 1, 0], [], []>} : vector<1x32xf32>, vector<128x32xf32>, vector<1x128xf32> -> vector<1x128xf32>
      %c0_50 = arith.constant 0 : index
      %c0_51 = arith.constant 0 : index
      %62 = vector.load %arg7[%c0_50, %c0_51] : memref<1x128xf32, #tpu.memory_space<vmem>>, vector<1x128xf32>
      %63 = arith.mulf %61, %62 : vector<1x128xf32>
      %c0_52 = arith.constant 0 : index
      %c0_53 = arith.constant 0 : index
      %64 = vector.load %arg8[%c0_52, %c0_53] : memref<1x128xf32, #tpu.memory_space<vmem>>, vector<1x128xf32>
      %65 = arith.mulf %51, %63 : vector<1x128xf32>
      %66 = arith.subf %64, %65 : vector<1x128xf32>
      %c0_54 = arith.constant 0 : index
      %c0_55 = arith.constant 0 : index
      %67 = vector.load %arg3[%c0_54, %c0_55] : memref<128x384xf32, #tpu.memory_space<vmem>>, vector<128x384xf32>
      %c0_56 = arith.constant 0 : index
      %c0_57 = arith.constant 0 : index
      %68 = vector.load %arg4[%c0_56, %c0_57] : memref<1x384xf32, #tpu.memory_space<vmem>>, vector<1x384xf32>
      %c0_i32_58 = arith.constant 0 : i32
      %c2_i32_59 = arith.constant 2 : i32
      %69 = arith.addi %c0_i32_58, %c2_i32_59 : i32
      %c1_i32_60 = arith.constant 1 : i32
      scf.for %arg15 = %c0_i32_58 to %69 step %c1_i32_60  : i32 {
        %c1_i32_62 = arith.constant 1 : i32
        %70 = arith.muli %arg15, %c1_i32_62 : i32
        %c0_i32_63 = arith.constant 0 : i32
        %71 = arith.addi %c0_i32_63, %70 : i32
        %c32_i32_64 = arith.constant 32 : i32
        %72 = arith.muli %71, %c32_i32_64 : i32
        %73 = tpu.assume_multiple %72, 8 : i32
        %c0_65 = arith.constant 0 : index
        %74 = arith.index_cast %73 : i32 to index
        %c0_66 = arith.constant 0 : index
        %75 = vector.load %arg2[%c0_65, %74, %c0_66] : memref<1x64x128xf32, #tpu.memory_space<vmem>>, vector<1x32x128xf32>
        %76 = vector.shape_cast %75 : vector<1x32x128xf32> to vector<32x128xf32>
        %77 = vector.broadcast %63 : vector<1x128xf32> to vector<32x128xf32>
        %78 = arith.mulf %76, %77 : vector<32x128xf32>
        %79 = vector.broadcast %66 : vector<1x128xf32> to vector<32x128xf32>
        %80 = arith.addf %78, %79 : vector<32x128xf32>
        %cst_67 = arith.constant dense<0.000000e+00> : vector<32x384xf32>
        %81 = tpu.matmul %80, %67, %cst_67 {dimension_numbers = #tpu.dot_dimension_numbers<[1], [0], [0], [1], [0, 0, 1, 1], [], []>} : vector<32x128xf32>, vector<128x384xf32>, vector<32x384xf32> -> vector<32x384xf32>
        %82 = vector.broadcast %68 : vector<1x384xf32> to vector<32x384xf32>
        %83 = arith.addf %81, %82 : vector<32x384xf32>
        %84 = vector.extract_strided_slice %83 {offsets = [0, 0], sizes = [32, 64], strides = [1, 1]} : vector<32x384xf32> to vector<32x64xf32>
        %c0_68 = arith.constant 0 : index
        %85 = arith.index_cast %73 : i32 to index
        %c0_69 = arith.constant 0 : index
        %86 = vector.load %arg11[%c0_68, %85, %c0_69] : memref<2x64x64xf32, #tpu.memory_space<vmem>>, vector<1x32x64xf32>
        %87 = vector.shape_cast %86 : vector<1x32x64xf32> to vector<32x64xf32>
        %88 = vector.shape_cast %84 : vector<32x64xf32> to vector<1x32x64xf32>
        tpu.vector_store %arg11[%c0_68, %85, %c0_69], %88 {strides = array<i32>} : memref<2x64x64xf32, #tpu.memory_space<vmem>>, vector<1x32x64xf32>,
        %89 = vector.extract_strided_slice %83 {offsets = [0, 128], sizes = [32, 64], strides = [1, 1]} : vector<32x384xf32> to vector<32x64xf32>
        %c0_70 = arith.constant 0 : index
        %90 = arith.index_cast %73 : i32 to index
        %c0_71 = arith.constant 0 : index
        %91 = vector.load %arg12[%c0_70, %90, %c0_71] : memref<2x64x64xf32, #tpu.memory_space<vmem>>, vector<1x32x64xf32>
        %92 = vector.shape_cast %91 : vector<1x32x64xf32> to vector<32x64xf32>
        %93 = vector.shape_cast %89 : vector<32x64xf32> to vector<1x32x64xf32>
        tpu.vector_store %arg12[%c0_70, %90, %c0_71], %93 {strides = array<i32>} : memref<2x64x64xf32, #tpu.memory_space<vmem>>, vector<1x32x64xf32>,
        %94 = vector.extract_strided_slice %83 {offsets = [0, 256], sizes = [32, 64], strides = [1, 1]} : vector<32x384xf32> to vector<32x64xf32>
        %c0_72 = arith.constant 0 : index
        %95 = arith.index_cast %73 : i32 to index
        %c0_73 = arith.constant 0 : index
        %96 = vector.load %arg13[%c0_72, %95, %c0_73] : memref<2x64x64xf32, #tpu.memory_space<vmem>>, vector<1x32x64xf32>
        %97 = vector.shape_cast %96 : vector<1x32x64xf32> to vector<32x64xf32>
        %98 = vector.shape_cast %94 : vector<32x64xf32> to vector<1x32x64xf32>
        tpu.vector_store %arg13[%c0_72, %95, %c0_73], %98 {strides = array<i32>} : memref<2x64x64xf32, #tpu.memory_space<vmem>>, vector<1x32x64xf32>,
        %99 = vector.extract_strided_slice %83 {offsets = [0, 64], sizes = [32, 64], strides = [1, 1]} : vector<32x384xf32> to vector<32x64xf32>
        %c1_74 = arith.constant 1 : index
        %100 = arith.index_cast %73 : i32 to index
        %c0_75 = arith.constant 0 : index
        %101 = vector.load %arg11[%c1_74, %100, %c0_75] : memref<2x64x64xf32, #tpu.memory_space<vmem>>, vector<1x32x64xf32>
        %102 = vector.shape_cast %101 : vector<1x32x64xf32> to vector<32x64xf32>
        %103 = vector.shape_cast %99 : vector<32x64xf32> to vector<1x32x64xf32>
        tpu.vector_store %arg11[%c1_74, %100, %c0_75], %103 {strides = array<i32>} : memref<2x64x64xf32, #tpu.memory_space<vmem>>, vector<1x32x64xf32>,
        %104 = vector.extract_strided_slice %83 {offsets = [0, 192], sizes = [32, 64], strides = [1, 1]} : vector<32x384xf32> to vector<32x64xf32>
        %c1_76 = arith.constant 1 : index
        %105 = arith.index_cast %73 : i32 to index
        %c0_77 = arith.constant 0 : index
        %106 = vector.load %arg12[%c1_76, %105, %c0_77] : memref<2x64x64xf32, #tpu.memory_space<vmem>>, vector<1x32x64xf32>
        %107 = vector.shape_cast %106 : vector<1x32x64xf32> to vector<32x64xf32>
        %108 = vector.shape_cast %104 : vector<32x64xf32> to vector<1x32x64xf32>
        tpu.vector_store %arg12[%c1_76, %105, %c0_77], %108 {strides = array<i32>} : memref<2x64x64xf32, #tpu.memory_space<vmem>>, vector<1x32x64xf32>,
        %109 = vector.extract_strided_slice %83 {offsets = [0, 320], sizes = [32, 64], strides = [1, 1]} : vector<32x384xf32> to vector<32x64xf32>
        %c1_78 = arith.constant 1 : index
        %110 = arith.index_cast %73 : i32 to index
        %c0_79 = arith.constant 0 : index
        %111 = vector.load %arg13[%c1_78, %110, %c0_79] : memref<2x64x64xf32, #tpu.memory_space<vmem>>, vector<1x32x64xf32>
        %112 = vector.shape_cast %111 : vector<1x32x64xf32> to vector<32x64xf32>
        %113 = vector.shape_cast %109 : vector<32x64xf32> to vector<1x32x64xf32>
        tpu.vector_store %arg13[%c1_78, %110, %c0_79], %113 {strides = array<i32>} : memref<2x64x64xf32, #tpu.memory_space<vmem>>, vector<1x32x64xf32>,
      }
      %c2_i32_61 = arith.constant 2 : i32
    } else {
    }
    %c32_i32 = arith.constant 32 : i32
    %3 = arith.muli %arg1, %c32_i32 : i32
    %4 = tpu.assume_multiple %3, 8 : i32
    %c0 = arith.constant 0 : index
    %5 = arith.index_cast %4 : i32 to index
    %c0_1 = arith.constant 0 : index
    %6 = vector.load %arg11[%c0, %5, %c0_1] : memref<2x64x64xf32, #tpu.memory_space<vmem>>, vector<1x32x64xf32>
    %7 = vector.shape_cast %6 : vector<1x32x64xf32> to vector<32x64xf32>
    %cst = arith.constant -1.000000e+30 : f32
    %8 = vector.broadcast %cst : f32 to vector<32x1xf32>
    %cst_2 = arith.constant 0.000000e+00 : f32
    %9 = vector.broadcast %cst_2 : f32 to vector<32x1xf32>
    %cst_3 = arith.constant 0.000000e+00 : f32
    %10 = vector.broadcast %cst_3 : f32 to vector<32x64xf32>
    %c0_i32_4 = arith.constant 0 : i32
    %c2_i32 = arith.constant 2 : i32
    %11 = arith.addi %c0_i32_4, %c2_i32 : i32
    %c1_i32 = arith.constant 1 : i32
    %12:3 = scf.for %arg15 = %c0_i32_4 to %11 step %c1_i32 iter_args(%arg16 = %8, %arg17 = %9, %arg18 = %10) -> (vector<32x1xf32>, vector<32x1xf32>, vector<32x64xf32>)  : i32 {
      %c32_i32_31 = arith.constant 32 : i32
      %44 = arith.muli %arg15, %c32_i32_31 : i32
      %45 = tpu.assume_multiple %44, 8 : i32
      %c0_32 = arith.constant 0 : index
      %46 = arith.index_cast %45 : i32 to index
      %c0_33 = arith.constant 0 : index
      %47 = vector.load %arg12[%c0_32, %46, %c0_33] : memref<2x64x64xf32, #tpu.memory_space<vmem>>, vector<1x32x64xf32>
      %48 = vector.shape_cast %47 : vector<1x32x64xf32> to vector<32x64xf32>
      %c0_34 = arith.constant 0 : index
      %49 = arith.index_cast %45 : i32 to index
      %c0_35 = arith.constant 0 : index
      %50 = vector.load %arg13[%c0_34, %49, %c0_35] : memref<2x64x64xf32, #tpu.memory_space<vmem>>, vector<1x32x64xf32>
      %51 = vector.shape_cast %50 : vector<1x32x64xf32> to vector<32x64xf32>
      %cst_36 = arith.constant dense<0.000000e+00> : vector<32x32xf32>
      %52 = tpu.matmul %7, %48, %cst_36 {dimension_numbers = #tpu.dot_dimension_numbers<[1], [1], [0], [0], [0, 0, 1, 0], [], []>} : vector<32x64xf32>, vector<32x64xf32>, vector<32x32xf32> -> vector<32x32xf32>
      %cst_37 = arith.constant dense<0xFF800000> : vector<32xf32>
      %53 = vector.multi_reduction <maximumf>, %52, %cst_37 [1] : vector<32x32xf32> to vector<32xf32>
      %54 = vector.shape_cast %53 : vector<32xf32> to vector<32x1xf32>
      %55 = arith.maximumf %arg16, %54 : vector<32x1xf32>
      %56 = arith.subf %arg16, %55 : vector<32x1xf32>
      %57 = math.exp %56 : vector<32x1xf32>
      %58 = vector.broadcast %55 : vector<32x1xf32> to vector<32x32xf32>
      %59 = arith.subf %52, %58 : vector<32x32xf32>
      %60 = math.exp %59 : vector<32x32xf32>
      %61 = arith.mulf %57, %arg17 : vector<32x1xf32>
      %cst_38 = arith.constant dense<0.000000e+00> : vector<32xf32>
      %62 = vector.multi_reduction <add>, %60, %cst_38 [1] : vector<32x32xf32> to vector<32xf32>
      %63 = vector.shape_cast %62 : vector<32xf32> to vector<32x1xf32>
      %64 = arith.addf %61, %63 : vector<32x1xf32>
      %65 = vector.broadcast %57 : vector<32x1xf32> to vector<32x64xf32>
      %66 = arith.mulf %65, %arg18 : vector<32x64xf32>
      %cst_39 = arith.constant dense<0.000000e+00> : vector<32x64xf32>
      %67 = tpu.matmul %60, %51, %cst_39 {dimension_numbers = #tpu.dot_dimension_numbers<[1], [0], [0], [1], [0, 0, 1, 1], [], []>} : vector<32x32xf32>, vector<32x64xf32>, vector<32x64xf32> -> vector<32x64xf32>
      %68 = arith.addf %66, %67 : vector<32x64xf32>
      scf.yield %55, %64, %68 : vector<32x1xf32>, vector<32x1xf32>, vector<32x64xf32>
    }
    %c2_i32_5 = arith.constant 2 : i32
    %cst_6 = arith.constant 1.000000e+00 : f32
    %13 = vector.broadcast %cst_6 : f32 to vector<32x1xf32>
    %14 = arith.divf %13, %12#1 : vector<32x1xf32>
    %15 = vector.broadcast %14 : vector<32x1xf32> to vector<32x64xf32>
    %16 = arith.mulf %12#2, %15 : vector<32x64xf32>
    %c0_7 = arith.constant 0 : index
    %c0_8 = arith.constant 0 : index
    %17 = vector.load %arg14[%c0_7, %c0_8] : memref<32x128xf32, #tpu.memory_space<vmem>>, vector<32x64xf32>
    tpu.vector_store %arg14[%c0_7, %c0_8], %16 {strides = array<i32>} : memref<32x128xf32, #tpu.memory_space<vmem>>, vector<32x64xf32>,
    %c1 = arith.constant 1 : index
    %18 = arith.index_cast %4 : i32 to index
    %c0_9 = arith.constant 0 : index
    %19 = vector.load %arg11[%c1, %18, %c0_9] : memref<2x64x64xf32, #tpu.memory_space<vmem>>, vector<1x32x64xf32>
    %20 = vector.shape_cast %19 : vector<1x32x64xf32> to vector<32x64xf32>
    %cst_10 = arith.constant -1.000000e+30 : f32
    %21 = vector.broadcast %cst_10 : f32 to vector<32x1xf32>
    %cst_11 = arith.constant 0.000000e+00 : f32
    %22 = vector.broadcast %cst_11 : f32 to vector<32x1xf32>
    %cst_12 = arith.constant 0.000000e+00 : f32
    %23 = vector.broadcast %cst_12 : f32 to vector<32x64xf32>
    %c0_i32_13 = arith.constant 0 : i32
    %c2_i32_14 = arith.constant 2 : i32
    %24 = arith.addi %c0_i32_13, %c2_i32_14 : i32
    %c1_i32_15 = arith.constant 1 : i32
    %25:3 = scf.for %arg15 = %c0_i32_13 to %24 step %c1_i32_15 iter_args(%arg16 = %21, %arg17 = %22, %arg18 = %23) -> (vector<32x1xf32>, vector<32x1xf32>, vector<32x64xf32>)  : i32 {
      %c32_i32_31 = arith.constant 32 : i32
      %44 = arith.muli %arg15, %c32_i32_31 : i32
      %45 = tpu.assume_multiple %44, 8 : i32
      %c1_32 = arith.constant 1 : index
      %46 = arith.index_cast %45 : i32 to index
      %c0_33 = arith.constant 0 : index
      %47 = vector.load %arg12[%c1_32, %46, %c0_33] : memref<2x64x64xf32, #tpu.memory_space<vmem>>, vector<1x32x64xf32>
      %48 = vector.shape_cast %47 : vector<1x32x64xf32> to vector<32x64xf32>
      %c1_34 = arith.constant 1 : index
      %49 = arith.index_cast %45 : i32 to index
      %c0_35 = arith.constant 0 : index
      %50 = vector.load %arg13[%c1_34, %49, %c0_35] : memref<2x64x64xf32, #tpu.memory_space<vmem>>, vector<1x32x64xf32>
      %51 = vector.shape_cast %50 : vector<1x32x64xf32> to vector<32x64xf32>
      %cst_36 = arith.constant dense<0.000000e+00> : vector<32x32xf32>
      %52 = tpu.matmul %20, %48, %cst_36 {dimension_numbers = #tpu.dot_dimension_numbers<[1], [1], [0], [0], [0, 0, 1, 0], [], []>} : vector<32x64xf32>, vector<32x64xf32>, vector<32x32xf32> -> vector<32x32xf32>
      %cst_37 = arith.constant dense<0xFF800000> : vector<32xf32>
      %53 = vector.multi_reduction <maximumf>, %52, %cst_37 [1] : vector<32x32xf32> to vector<32xf32>
      %54 = vector.shape_cast %53 : vector<32xf32> to vector<32x1xf32>
      %55 = arith.maximumf %arg16, %54 : vector<32x1xf32>
      %56 = arith.subf %arg16, %55 : vector<32x1xf32>
      %57 = math.exp %56 : vector<32x1xf32>
      %58 = vector.broadcast %55 : vector<32x1xf32> to vector<32x32xf32>
      %59 = arith.subf %52, %58 : vector<32x32xf32>
      %60 = math.exp %59 : vector<32x32xf32>
      %61 = arith.mulf %57, %arg17 : vector<32x1xf32>
      %cst_38 = arith.constant dense<0.000000e+00> : vector<32xf32>
      %62 = vector.multi_reduction <add>, %60, %cst_38 [1] : vector<32x32xf32> to vector<32xf32>
      %63 = vector.shape_cast %62 : vector<32xf32> to vector<32x1xf32>
      %64 = arith.addf %61, %63 : vector<32x1xf32>
      %65 = vector.broadcast %57 : vector<32x1xf32> to vector<32x64xf32>
      %66 = arith.mulf %65, %arg18 : vector<32x64xf32>
      %cst_39 = arith.constant dense<0.000000e+00> : vector<32x64xf32>
      %67 = tpu.matmul %60, %51, %cst_39 {dimension_numbers = #tpu.dot_dimension_numbers<[1], [0], [0], [1], [0, 0, 1, 1], [], []>} : vector<32x32xf32>, vector<32x64xf32>, vector<32x64xf32> -> vector<32x64xf32>
      %68 = arith.addf %66, %67 : vector<32x64xf32>
      scf.yield %55, %64, %68 : vector<32x1xf32>, vector<32x1xf32>, vector<32x64xf32>
    }
    %c2_i32_16 = arith.constant 2 : i32
    %cst_17 = arith.constant 1.000000e+00 : f32
    %26 = vector.broadcast %cst_17 : f32 to vector<32x1xf32>
    %27 = arith.divf %26, %25#1 : vector<32x1xf32>
    %28 = vector.broadcast %27 : vector<32x1xf32> to vector<32x64xf32>
    %29 = arith.mulf %25#2, %28 : vector<32x64xf32>
    %c0_18 = arith.constant 0 : index
    %c64 = arith.constant 64 : index
    %30 = vector.load %arg14[%c0_18, %c64] : memref<32x128xf32, #tpu.memory_space<vmem>>, vector<32x64xf32>
    tpu.vector_store %arg14[%c0_18, %c64], %29 {strides = array<i32>} : memref<32x128xf32, #tpu.memory_space<vmem>>, vector<32x64xf32>,
    %c0_19 = arith.constant 0 : index
    %c0_20 = arith.constant 0 : index
    %31 = vector.load %arg14[%c0_19, %c0_20] : memref<32x128xf32, #tpu.memory_space<vmem>>, vector<32x128xf32>
    %c0_21 = arith.constant 0 : index
    %c0_22 = arith.constant 0 : index
    %32 = vector.load %arg5[%c0_21, %c0_22] : memref<128x128xf32, #tpu.memory_space<vmem>>, vector<128x128xf32>
    %cst_23 = arith.constant dense<0.000000e+00> : vector<32x128xf32>
    %33 = tpu.matmul %31, %32, %cst_23 {dimension_numbers = #tpu.dot_dimension_numbers<[1], [0], [0], [1], [0, 0, 1, 1], [], []>} : vector<32x128xf32>, vector<128x128xf32>, vector<32x128xf32> -> vector<32x128xf32>
    %c0_24 = arith.constant 0 : index
    %34 = arith.index_cast %4 : i32 to index
    %c0_25 = arith.constant 0 : index
    %35 = vector.load %arg2[%c0_24, %34, %c0_25] : memref<1x64x128xf32, #tpu.memory_space<vmem>>, vector<1x32x128xf32>
    %36 = vector.shape_cast %35 : vector<1x32x128xf32> to vector<32x128xf32>
    %c0_26 = arith.constant 0 : index
    %c0_27 = arith.constant 0 : index
    %37 = vector.load %arg6[%c0_26, %c0_27] : memref<1x128xf32, #tpu.memory_space<vmem>>, vector<1x128xf32>
    %38 = vector.broadcast %37 : vector<1x128xf32> to vector<32x128xf32>
    %39 = arith.addf %33, %38 : vector<32x128xf32>
    %40 = arith.addf %39, %36 : vector<32x128xf32>
    %c0_28 = arith.constant 0 : index
    %c0_29 = arith.constant 0 : index
    %c0_30 = arith.constant 0 : index
    %41 = vector.load %arg10[%c0_28, %c0_29, %c0_30] : memref<1x32x128xf32, #tpu.memory_space<vmem>>, vector<1x32x128xf32>
    %42 = vector.shape_cast %41 : vector<1x32x128xf32> to vector<32x128xf32>
    %43 = vector.shape_cast %40 : vector<32x128xf32> to vector<1x32x128xf32>
    tpu.vector_store %arg10[%c0_28, %c0_29, %c0_30], %43 {strides = array<i32>} : memref<1x32x128xf32, #tpu.memory_space<vmem>>, vector<1x32x128xf32>,
    return
  }
  func.func @transform_0(%arg0: i32, %arg1: i32) -> (i32, i32, i32) {
    %c0_i32 = arith.constant 0 : i32
    %c0_i32_0 = arith.constant 0 : i32
    %c0_i32_1 = arith.constant 0 : i32
    return %arg0, %c0_i32, %c0_i32_0 : i32, i32, i32
  }
  func.func @transform_1(%arg0: i32, %arg1: i32) -> (i32, i32) {
    %c0_i32 = arith.constant 0 : i32
    %c0_i32_0 = arith.constant 0 : i32
    %c0_i32_1 = arith.constant 0 : i32
    return %c0_i32, %c0_i32_0 : i32, i32
  }
  func.func @transform_2(%arg0: i32, %arg1: i32) -> (i32, i32) {
    %c0_i32 = arith.constant 0 : i32
    %c0_i32_0 = arith.constant 0 : i32
    %c0_i32_1 = arith.constant 0 : i32
    return %c0_i32, %c0_i32_0 : i32, i32
  }
  func.func @transform_3(%arg0: i32, %arg1: i32) -> (i32, i32) {
    %c0_i32 = arith.constant 0 : i32
    %c0_i32_0 = arith.constant 0 : i32
    %c0_i32_1 = arith.constant 0 : i32
    return %c0_i32, %c0_i32_0 : i32, i32
  }
  func.func @transform_4(%arg0: i32, %arg1: i32) -> (i32, i32) {
    %c0_i32 = arith.constant 0 : i32
    %c0_i32_0 = arith.constant 0 : i32
    %c0_i32_1 = arith.constant 0 : i32
    return %c0_i32, %c0_i32_0 : i32, i32
  }
  func.func @transform_5(%arg0: i32, %arg1: i32) -> (i32, i32) {
    %c0_i32 = arith.constant 0 : i32
    %c0_i32_0 = arith.constant 0 : i32
    %c0_i32_1 = arith.constant 0 : i32
    return %c0_i32, %c0_i32_0 : i32, i32
  }
  func.func @transform_6(%arg0: i32, %arg1: i32) -> (i32, i32) {
    %c0_i32 = arith.constant 0 : i32
    %c0_i32_0 = arith.constant 0 : i32
    %c0_i32_1 = arith.constant 0 : i32
    return %c0_i32, %c0_i32_0 : i32, i32
  }
  func.func @transform_7(%arg0: i32, %arg1: i32) -> (i32, i32) {
    %c0_i32 = arith.constant 0 : i32
    %c0_i32_0 = arith.constant 0 : i32
    %c0_i32_1 = arith.constant 0 : i32
    return %c0_i32, %c0_i32_0 : i32, i32
  }
  func.func @transform_8(%arg0: i32, %arg1: i32) -> (i32, i32, i32) {
    %c0_i32 = arith.constant 0 : i32
    %c0_i32_0 = arith.constant 0 : i32
    return %arg0, %arg1, %c0_i32 : i32, i32, i32
  }
}

module attributes {stable_mosaic.version = 11 : i64} {
  func.func @_attn_block_kernel(%arg0: i32, %arg1: i32, %arg2: memref<1x64x128xf32, #tpu.memory_space<vmem>>, %arg3: memref<128x384xf32, #tpu.memory_space<vmem>>, %arg4: memref<1x384xf32, #tpu.memory_space<vmem>>, %arg5: memref<128x128xf32, #tpu.memory_space<vmem>>, %arg6: memref<1x128xf32, #tpu.memory_space<vmem>>, %arg7: memref<1x128xf32, #tpu.memory_space<vmem>>, %arg8: memref<1x128xf32, #tpu.memory_space<vmem>>, %arg9: memref<128x32xf32, #tpu.memory_space<vmem>>, %arg10: memref<1x32x128xf32, #tpu.memory_space<vmem>>, %arg11: memref<2x64x64xf32, #tpu.memory_space<vmem>>, %arg12: memref<2x64x64xf32, #tpu.memory_space<vmem>>, %arg13: memref<2x64x64xf32, #tpu.memory_space<vmem>>, %arg14: memref<32x128xf32, #tpu.memory_space<vmem>>) attributes {dimension_semantics = [#tpu.dimension_semantics<parallel>, #tpu.dimension_semantics<arbitrary>], iteration_bounds = array<i64: 2, 2>, scalar_prefetch = 0 : i64, scratch_operands = 4 : i64, tpu.core_type = #tpu.core_type<tc>, window_params = [{transform_indices = @transform_0, window_bounds = array<i64: 1, 64, 128>}, {pipeline_mode = #tpu.pipeline_mode<synchronous>, transform_indices = @transform_1, window_bounds = array<i64: 128, 384>}, {pipeline_mode = #tpu.pipeline_mode<synchronous>, transform_indices = @transform_2, window_bounds = array<i64: 1, 384>}, {pipeline_mode = #tpu.pipeline_mode<synchronous>, transform_indices = @transform_3, window_bounds = array<i64: 128, 128>}, {pipeline_mode = #tpu.pipeline_mode<synchronous>, transform_indices = @transform_4, window_bounds = array<i64: 1, 128>}, {pipeline_mode = #tpu.pipeline_mode<synchronous>, transform_indices = @transform_5, window_bounds = array<i64: 1, 128>}, {pipeline_mode = #tpu.pipeline_mode<synchronous>, transform_indices = @transform_6, window_bounds = array<i64: 1, 128>}, {pipeline_mode = #tpu.pipeline_mode<synchronous>, transform_indices = @transform_7, window_bounds = array<i64: 128, 32>}, {transform_indices = @transform_8, window_bounds = array<i64: 1, 32, 128>}]} {
    %c0_i32 = arith.constant 0 : i32
    %0 = arith.cmpi eq, %arg1, %c0_i32 : i32
    %1 = arith.extui %0 : i1 to i32
    %c0_i32_0 = arith.constant 0 : i32
    %2 = arith.cmpi ne, %1, %c0_i32_0 : i32
    scf.if %2 {
      %c0_31 = arith.constant 0 : index
      %c0_32 = arith.constant 0 : index
      %44 = vector.load %arg9[%c0_31, %c0_32] : memref<128x32xf32, #tpu.memory_space<vmem>>, vector<128x32xf32>
      %cst_33 = arith.constant 0.000000e+00 : f32
      %45 = vector.broadcast %cst_33 : f32 to vector<1x128xf32>
      %c0_i32_34 = arith.constant 0 : i32
      %c2_i32_35 = arith.constant 2 : i32
      %46 = arith.addi %c0_i32_34, %c2_i32_35 : i32
      %c1_i32_36 = arith.constant 1 : i32
      %47 = scf.for %arg15 = %c0_i32_34 to %46 step %c1_i32_36 iter_args(%arg16 = %45) -> (vector<1x128xf32>)  : i32 {
        %c32_i32_62 = arith.constant 32 : i32
        %70 = arith.muli %arg15, %c32_i32_62 : i32
        %71 = tpu.assume_multiple %70, 8 : i32
        %c0_63 = arith.constant 0 : index
        %72 = arith.index_cast %71 : i32 to index
        %c0_64 = arith.constant 0 : index
        %73 = vector.load %arg2[%c0_63, %72, %c0_64] : memref<1x64x128xf32, #tpu.memory_space<vmem>>, vector<1x32x128xf32>
        %74 = vector.shape_cast %73 : vector<1x32x128xf32> to vector<32x128xf32>
        %cst_65 = arith.constant dense<0.000000e+00> : vector<128xf32>
        %75 = vector.multi_reduction <add>, %74, %cst_65 [0] : vector<32x128xf32> to vector<128xf32>
        %76 = vector.shape_cast %75 : vector<128xf32> to vector<1x128xf32>
        %77 = arith.addf %arg16, %76 : vector<1x128xf32>
        scf.yield %77 : vector<1x128xf32>
      }
      %c2_i32_37 = arith.constant 2 : i32
      %cst_38 = arith.constant dense<0.000000e+00> : vector<1x32xf32>
      %48 = tpu.matmul %47, %44, %cst_38 {dimension_numbers = #tpu.dot_dimension_numbers<[1], [0], [0], [1], [0, 0, 1, 1], [], []>} : vector<1x128xf32>, vector<128x32xf32>, vector<1x32xf32> -> vector<1x32xf32>
      %cst_39 = arith.constant 2.560000e+02 : f32
      %49 = vector.broadcast %cst_39 : f32 to vector<1x32xf32>
      %50 = arith.divf %48, %49 : vector<1x32xf32>
      %cst_40 = arith.constant dense<0.000000e+00> : vector<1x128xf32>
      %51 = tpu.matmul %50, %44, %cst_40 {dimension_numbers = #tpu.dot_dimension_numbers<[1], [1], [0], [0], [0, 0, 1, 0], [], []>} : vector<1x32xf32>, vector<128x32xf32>, vector<1x128xf32> -> vector<1x128xf32>
      %cst_41 = arith.constant 0.000000e+00 : f32
      %52 = vector.broadcast %cst_41 : f32 to vector<1x128xf32>
      %c0_i32_42 = arith.constant 0 : i32
      %c2_i32_43 = arith.constant 2 : i32
      %53 = arith.addi %c0_i32_42, %c2_i32_43 : i32
      %c1_i32_44 = arith.constant 1 : i32
      %54 = scf.for %arg15 = %c0_i32_42 to %53 step %c1_i32_44 iter_args(%arg16 = %52) -> (vector<1x128xf32>)  : i32 {
        %c32_i32_62 = arith.constant 32 : i32
        %70 = arith.muli %arg15, %c32_i32_62 : i32
        %71 = tpu.assume_multiple %70, 8 : i32
        %c0_63 = arith.constant 0 : index
        %72 = arith.index_cast %71 : i32 to index
        %c0_64 = arith.constant 0 : index
        %73 = vector.load %arg2[%c0_63, %72, %c0_64] : memref<1x64x128xf32, #tpu.memory_space<vmem>>, vector<1x32x128xf32>
        %74 = vector.shape_cast %73 : vector<1x32x128xf32> to vector<32x128xf32>
        %75 = vector.broadcast %51 : vector<1x128xf32> to vector<32x128xf32>
        %76 = arith.subf %74, %75 : vector<32x128xf32>
        %77 = arith.mulf %76, %76 : vector<32x128xf32>
        %cst_65 = arith.constant dense<0.000000e+00> : vector<128xf32>
        %78 = vector.multi_reduction <add>, %77, %cst_65 [0] : vector<32x128xf32> to vector<128xf32>
        %79 = vector.shape_cast %78 : vector<128xf32> to vector<1x128xf32>
        %80 = arith.addf %arg16, %79 : vector<1x128xf32>
        scf.yield %80 : vector<1x128xf32>
      }
      %c2_i32_45 = arith.constant 2 : i32
      %cst_46 = arith.constant dense<0.000000e+00> : vector<1x32xf32>
      %55 = tpu.matmul %54, %44, %cst_46 {dimension_numbers = #tpu.dot_dimension_numbers<[1], [0], [0], [1], [0, 0, 1, 1], [], []>} : vector<1x128xf32>, vector<128x32xf32>, vector<1x32xf32> -> vector<1x32xf32>
      %cst_47 = arith.constant 2.560000e+02 : f32
      %56 = vector.broadcast %cst_47 : f32 to vector<1x32xf32>
      %57 = arith.divf %55, %56 : vector<1x32xf32>
      %cst_48 = arith.constant 9.99999974E-6 : f32
      %58 = vector.broadcast %cst_48 : f32 to vector<1x32xf32>
      %59 = arith.addf %57, %58 : vector<1x32xf32>
      %60 = math.rsqrt %59 : vector<1x32xf32>
      %cst_49 = arith.constant dense<0.000000e+00> : vector<1x128xf32>
      %61 = tpu.matmul %60, %44, %cst_49 {dimension_numbers = #tpu.dot_dimension_numbers<[1], [1], [0], [0], [0, 0, 1, 0], [], []>} : vector<1x32xf32>, vector<128x32xf32>, vector<1x128xf32> -> vector<1x128xf32>
      %c0_50 = arith.constant 0 : index
      %c0_51 = arith.constant 0 : index
      %62 = vector.load %arg7[%c0_50, %c0_51] : memref<1x128xf32, #tpu.memory_space<vmem>>, vector<1x128xf32>
      %63 = arith.mulf %61, %62 : vector<1x128xf32>
      %c0_52 = arith.constant 0 : index
      %c0_53 = arith.constant 0 : index
      %64 = vector.load %arg8[%c0_52, %c0_53] : memref<1x128xf32, #tpu.memory_space<vmem>>, vector<1x128xf32>
      %65 = arith.mulf %51, %63 : vector<1x128xf32>
      %66 = arith.subf %64, %65 : vector<1x128xf32>
      %c0_54 = arith.constant 0 : index
      %c0_55 = arith.constant 0 : index
      %67 = vector.load %arg3[%c0_54, %c0_55] : memref<128x384xf32, #tpu.memory_space<vmem>>, vector<128x384xf32>
      %c0_56 = arith.constant 0 : index
      %c0_57 = arith.constant 0 : index
      %68 = vector.load %arg4[%c0_56, %c0_57] : memref<1x384xf32, #tpu.memory_space<vmem>>, vector<1x384xf32>
      %c0_i32_58 = arith.constant 0 : i32
      %c2_i32_59 = arith.constant 2 : i32
      %69 = arith.addi %c0_i32_58, %c2_i32_59 : i32
      %c1_i32_60 = arith.constant 1 : i32
      scf.for %arg15 = %c0_i32_58 to %69 step %c1_i32_60  : i32 {
        %c1_i32_62 = arith.constant 1 : i32
        %70 = arith.muli %arg15, %c1_i32_62 : i32
        %c0_i32_63 = arith.constant 0 : i32
        %71 = arith.addi %c0_i32_63, %70 : i32
        %c32_i32_64 = arith.constant 32 : i32
        %72 = arith.muli %71, %c32_i32_64 : i32
        %73 = tpu.assume_multiple %72, 8 : i32
        %c0_65 = arith.constant 0 : index
        %74 = arith.index_cast %73 : i32 to index
        %c0_66 = arith.constant 0 : index
        %75 = vector.load %arg2[%c0_65, %74, %c0_66] : memref<1x64x128xf32, #tpu.memory_space<vmem>>, vector<1x32x128xf32>
        %76 = vector.shape_cast %75 : vector<1x32x128xf32> to vector<32x128xf32>
        %77 = vector.broadcast %63 : vector<1x128xf32> to vector<32x128xf32>
        %78 = arith.mulf %76, %77 : vector<32x128xf32>
        %79 = vector.broadcast %66 : vector<1x128xf32> to vector<32x128xf32>
        %80 = arith.addf %78, %79 : vector<32x128xf32>
        %cst_67 = arith.constant dense<0.000000e+00> : vector<32x384xf32>
        %81 = tpu.matmul %80, %67, %cst_67 {dimension_numbers = #tpu.dot_dimension_numbers<[1], [0], [0], [1], [0, 0, 1, 1], [], []>} : vector<32x128xf32>, vector<128x384xf32>, vector<32x384xf32> -> vector<32x384xf32>
        %82 = vector.broadcast %68 : vector<1x384xf32> to vector<32x384xf32>
        %83 = arith.addf %81, %82 : vector<32x384xf32>
        %84 = vector.extract_strided_slice %83 {offsets = [0, 0], sizes = [32, 64], strides = [1, 1]} : vector<32x384xf32> to vector<32x64xf32>
        %c0_68 = arith.constant 0 : index
        %85 = arith.index_cast %73 : i32 to index
        %c0_69 = arith.constant 0 : index
        %86 = vector.load %arg11[%c0_68, %85, %c0_69] : memref<2x64x64xf32, #tpu.memory_space<vmem>>, vector<1x32x64xf32>
        %87 = vector.shape_cast %86 : vector<1x32x64xf32> to vector<32x64xf32>
        %88 = vector.shape_cast %84 : vector<32x64xf32> to vector<1x32x64xf32>
        tpu.vector_store %arg11[%c0_68, %85, %c0_69], %88 {strides = array<i32>} : memref<2x64x64xf32, #tpu.memory_space<vmem>>, vector<1x32x64xf32>,
        %89 = vector.extract_strided_slice %83 {offsets = [0, 128], sizes = [32, 64], strides = [1, 1]} : vector<32x384xf32> to vector<32x64xf32>
        %c0_70 = arith.constant 0 : index
        %90 = arith.index_cast %73 : i32 to index
        %c0_71 = arith.constant 0 : index
        %91 = vector.load %arg12[%c0_70, %90, %c0_71] : memref<2x64x64xf32, #tpu.memory_space<vmem>>, vector<1x32x64xf32>
        %92 = vector.shape_cast %91 : vector<1x32x64xf32> to vector<32x64xf32>
        %93 = vector.shape_cast %89 : vector<32x64xf32> to vector<1x32x64xf32>
        tpu.vector_store %arg12[%c0_70, %90, %c0_71], %93 {strides = array<i32>} : memref<2x64x64xf32, #tpu.memory_space<vmem>>, vector<1x32x64xf32>,
        %94 = vector.extract_strided_slice %83 {offsets = [0, 256], sizes = [32, 64], strides = [1, 1]} : vector<32x384xf32> to vector<32x64xf32>
        %c0_72 = arith.constant 0 : index
        %95 = arith.index_cast %73 : i32 to index
        %c0_73 = arith.constant 0 : index
        %96 = vector.load %arg13[%c0_72, %95, %c0_73] : memref<2x64x64xf32, #tpu.memory_space<vmem>>, vector<1x32x64xf32>
        %97 = vector.shape_cast %96 : vector<1x32x64xf32> to vector<32x64xf32>
        %98 = vector.shape_cast %94 : vector<32x64xf32> to vector<1x32x64xf32>
        tpu.vector_store %arg13[%c0_72, %95, %c0_73], %98 {strides = array<i32>} : memref<2x64x64xf32, #tpu.memory_space<vmem>>, vector<1x32x64xf32>,
        %99 = vector.extract_strided_slice %83 {offsets = [0, 64], sizes = [32, 64], strides = [1, 1]} : vector<32x384xf32> to vector<32x64xf32>
        %c1_74 = arith.constant 1 : index
        %100 = arith.index_cast %73 : i32 to index
        %c0_75 = arith.constant 0 : index
        %101 = vector.load %arg11[%c1_74, %100, %c0_75] : memref<2x64x64xf32, #tpu.memory_space<vmem>>, vector<1x32x64xf32>
        %102 = vector.shape_cast %101 : vector<1x32x64xf32> to vector<32x64xf32>
        %103 = vector.shape_cast %99 : vector<32x64xf32> to vector<1x32x64xf32>
        tpu.vector_store %arg11[%c1_74, %100, %c0_75], %103 {strides = array<i32>} : memref<2x64x64xf32, #tpu.memory_space<vmem>>, vector<1x32x64xf32>,
        %104 = vector.extract_strided_slice %83 {offsets = [0, 192], sizes = [32, 64], strides = [1, 1]} : vector<32x384xf32> to vector<32x64xf32>
        %c1_76 = arith.constant 1 : index
        %105 = arith.index_cast %73 : i32 to index
        %c0_77 = arith.constant 0 : index
        %106 = vector.load %arg12[%c1_76, %105, %c0_77] : memref<2x64x64xf32, #tpu.memory_space<vmem>>, vector<1x32x64xf32>
        %107 = vector.shape_cast %106 : vector<1x32x64xf32> to vector<32x64xf32>
        %108 = vector.shape_cast %104 : vector<32x64xf32> to vector<1x32x64xf32>
        tpu.vector_store %arg12[%c1_76, %105, %c0_77], %108 {strides = array<i32>} : memref<2x64x64xf32, #tpu.memory_space<vmem>>, vector<1x32x64xf32>,
        %109 = vector.extract_strided_slice %83 {offsets = [0, 320], sizes = [32, 64], strides = [1, 1]} : vector<32x384xf32> to vector<32x64xf32>
        %c1_78 = arith.constant 1 : index
        %110 = arith.index_cast %73 : i32 to index
        %c0_79 = arith.constant 0 : index
        %111 = vector.load %arg13[%c1_78, %110, %c0_79] : memref<2x64x64xf32, #tpu.memory_space<vmem>>, vector<1x32x64xf32>
        %112 = vector.shape_cast %111 : vector<1x32x64xf32> to vector<32x64xf32>
        %113 = vector.shape_cast %109 : vector<32x64xf32> to vector<1x32x64xf32>
        tpu.vector_store %arg13[%c1_78, %110, %c0_79], %113 {strides = array<i32>} : memref<2x64x64xf32, #tpu.memory_space<vmem>>, vector<1x32x64xf32>,
      }
      %c2_i32_61 = arith.constant 2 : i32
    } else {
    }
    %c32_i32 = arith.constant 32 : i32
    %3 = arith.muli %arg1, %c32_i32 : i32
    %4 = tpu.assume_multiple %3, 8 : i32
    %c0 = arith.constant 0 : index
    %5 = arith.index_cast %4 : i32 to index
    %c0_1 = arith.constant 0 : index
    %6 = vector.load %arg11[%c0, %5, %c0_1] : memref<2x64x64xf32, #tpu.memory_space<vmem>>, vector<1x32x64xf32>
    %7 = vector.shape_cast %6 : vector<1x32x64xf32> to vector<32x64xf32>
    %cst = arith.constant -1.000000e+30 : f32
    %8 = vector.broadcast %cst : f32 to vector<32x1xf32>
    %cst_2 = arith.constant 0.000000e+00 : f32
    %9 = vector.broadcast %cst_2 : f32 to vector<32x1xf32>
    %cst_3 = arith.constant 0.000000e+00 : f32
    %10 = vector.broadcast %cst_3 : f32 to vector<32x64xf32>
    %c0_i32_4 = arith.constant 0 : i32
    %c2_i32 = arith.constant 2 : i32
    %11 = arith.addi %c0_i32_4, %c2_i32 : i32
    %c1_i32 = arith.constant 1 : i32
    %12:3 = scf.for %arg15 = %c0_i32_4 to %11 step %c1_i32 iter_args(%arg16 = %8, %arg17 = %9, %arg18 = %10) -> (vector<32x1xf32>, vector<32x1xf32>, vector<32x64xf32>)  : i32 {
      %c32_i32_31 = arith.constant 32 : i32
      %44 = arith.muli %arg15, %c32_i32_31 : i32
      %45 = tpu.assume_multiple %44, 8 : i32
      %c0_32 = arith.constant 0 : index
      %46 = arith.index_cast %45 : i32 to index
      %c0_33 = arith.constant 0 : index
      %47 = vector.load %arg12[%c0_32, %46, %c0_33] : memref<2x64x64xf32, #tpu.memory_space<vmem>>, vector<1x32x64xf32>
      %48 = vector.shape_cast %47 : vector<1x32x64xf32> to vector<32x64xf32>
      %c0_34 = arith.constant 0 : index
      %49 = arith.index_cast %45 : i32 to index
      %c0_35 = arith.constant 0 : index
      %50 = vector.load %arg13[%c0_34, %49, %c0_35] : memref<2x64x64xf32, #tpu.memory_space<vmem>>, vector<1x32x64xf32>
      %51 = vector.shape_cast %50 : vector<1x32x64xf32> to vector<32x64xf32>
      %cst_36 = arith.constant dense<0.000000e+00> : vector<32x32xf32>
      %52 = tpu.matmul %7, %48, %cst_36 {dimension_numbers = #tpu.dot_dimension_numbers<[1], [1], [0], [0], [0, 0, 1, 0], [], []>} : vector<32x64xf32>, vector<32x64xf32>, vector<32x32xf32> -> vector<32x32xf32>
      %cst_37 = arith.constant dense<0xFF800000> : vector<32xf32>
      %53 = vector.multi_reduction <maximumf>, %52, %cst_37 [1] : vector<32x32xf32> to vector<32xf32>
      %54 = vector.shape_cast %53 : vector<32xf32> to vector<32x1xf32>
      %55 = arith.maximumf %arg16, %54 : vector<32x1xf32>
      %56 = arith.subf %arg16, %55 : vector<32x1xf32>
      %57 = math.exp %56 : vector<32x1xf32>
      %58 = vector.broadcast %55 : vector<32x1xf32> to vector<32x32xf32>
      %59 = arith.subf %52, %58 : vector<32x32xf32>
      %60 = math.exp %59 : vector<32x32xf32>
      %61 = arith.mulf %57, %arg17 : vector<32x1xf32>
      %cst_38 = arith.constant dense<0.000000e+00> : vector<32xf32>
      %62 = vector.multi_reduction <add>, %60, %cst_38 [1] : vector<32x32xf32> to vector<32xf32>
      %63 = vector.shape_cast %62 : vector<32xf32> to vector<32x1xf32>
      %64 = arith.addf %61, %63 : vector<32x1xf32>
      %65 = vector.broadcast %57 : vector<32x1xf32> to vector<32x64xf32>
      %66 = arith.mulf %65, %arg18 : vector<32x64xf32>
      %cst_39 = arith.constant dense<0.000000e+00> : vector<32x64xf32>
      %67 = tpu.matmul %60, %51, %cst_39 {dimension_numbers = #tpu.dot_dimension_numbers<[1], [0], [0], [1], [0, 0, 1, 1], [], []>} : vector<32x32xf32>, vector<32x64xf32>, vector<32x64xf32> -> vector<32x64xf32>
      %68 = arith.addf %66, %67 : vector<32x64xf32>
      scf.yield %55, %64, %68 : vector<32x1xf32>, vector<32x1xf32>, vector<32x64xf32>
    }
    %c2_i32_5 = arith.constant 2 : i32
    %cst_6 = arith.constant 1.000000e+00 : f32
    %13 = vector.broadcast %cst_6 : f32 to vector<32x1xf32>
    %14 = arith.divf %13, %12#1 : vector<32x1xf32>
    %15 = vector.broadcast %14 : vector<32x1xf32> to vector<32x64xf32>
    %16 = arith.mulf %12#2, %15 : vector<32x64xf32>
    %c0_7 = arith.constant 0 : index
    %c0_8 = arith.constant 0 : index
    %17 = vector.load %arg14[%c0_7, %c0_8] : memref<32x128xf32, #tpu.memory_space<vmem>>, vector<32x64xf32>
    tpu.vector_store %arg14[%c0_7, %c0_8], %16 {strides = array<i32>} : memref<32x128xf32, #tpu.memory_space<vmem>>, vector<32x64xf32>,
    %c1 = arith.constant 1 : index
    %18 = arith.index_cast %4 : i32 to index
    %c0_9 = arith.constant 0 : index
    %19 = vector.load %arg11[%c1, %18, %c0_9] : memref<2x64x64xf32, #tpu.memory_space<vmem>>, vector<1x32x64xf32>
    %20 = vector.shape_cast %19 : vector<1x32x64xf32> to vector<32x64xf32>
    %cst_10 = arith.constant -1.000000e+30 : f32
    %21 = vector.broadcast %cst_10 : f32 to vector<32x1xf32>
    %cst_11 = arith.constant 0.000000e+00 : f32
    %22 = vector.broadcast %cst_11 : f32 to vector<32x1xf32>
    %cst_12 = arith.constant 0.000000e+00 : f32
    %23 = vector.broadcast %cst_12 : f32 to vector<32x64xf32>
    %c0_i32_13 = arith.constant 0 : i32
    %c2_i32_14 = arith.constant 2 : i32
    %24 = arith.addi %c0_i32_13, %c2_i32_14 : i32
    %c1_i32_15 = arith.constant 1 : i32
    %25:3 = scf.for %arg15 = %c0_i32_13 to %24 step %c1_i32_15 iter_args(%arg16 = %21, %arg17 = %22, %arg18 = %23) -> (vector<32x1xf32>, vector<32x1xf32>, vector<32x64xf32>)  : i32 {
      %c32_i32_31 = arith.constant 32 : i32
      %44 = arith.muli %arg15, %c32_i32_31 : i32
      %45 = tpu.assume_multiple %44, 8 : i32
      %c1_32 = arith.constant 1 : index
      %46 = arith.index_cast %45 : i32 to index
      %c0_33 = arith.constant 0 : index
      %47 = vector.load %arg12[%c1_32, %46, %c0_33] : memref<2x64x64xf32, #tpu.memory_space<vmem>>, vector<1x32x64xf32>
      %48 = vector.shape_cast %47 : vector<1x32x64xf32> to vector<32x64xf32>
      %c1_34 = arith.constant 1 : index
      %49 = arith.index_cast %45 : i32 to index
      %c0_35 = arith.constant 0 : index
      %50 = vector.load %arg13[%c1_34, %49, %c0_35] : memref<2x64x64xf32, #tpu.memory_space<vmem>>, vector<1x32x64xf32>
      %51 = vector.shape_cast %50 : vector<1x32x64xf32> to vector<32x64xf32>
      %cst_36 = arith.constant dense<0.000000e+00> : vector<32x32xf32>
      %52 = tpu.matmul %20, %48, %cst_36 {dimension_numbers = #tpu.dot_dimension_numbers<[1], [1], [0], [0], [0, 0, 1, 0], [], []>} : vector<32x64xf32>, vector<32x64xf32>, vector<32x32xf32> -> vector<32x32xf32>
      %cst_37 = arith.constant dense<0xFF800000> : vector<32xf32>
      %53 = vector.multi_reduction <maximumf>, %52, %cst_37 [1] : vector<32x32xf32> to vector<32xf32>
      %54 = vector.shape_cast %53 : vector<32xf32> to vector<32x1xf32>
      %55 = arith.maximumf %arg16, %54 : vector<32x1xf32>
      %56 = arith.subf %arg16, %55 : vector<32x1xf32>
      %57 = math.exp %56 : vector<32x1xf32>
      %58 = vector.broadcast %55 : vector<32x1xf32> to vector<32x32xf32>
      %59 = arith.subf %52, %58 : vector<32x32xf32>
      %60 = math.exp %59 : vector<32x32xf32>
      %61 = arith.mulf %57, %arg17 : vector<32x1xf32>
      %cst_38 = arith.constant dense<0.000000e+00> : vector<32xf32>
      %62 = vector.multi_reduction <add>, %60, %cst_38 [1] : vector<32x32xf32> to vector<32xf32>
      %63 = vector.shape_cast %62 : vector<32xf32> to vector<32x1xf32>
      %64 = arith.addf %61, %63 : vector<32x1xf32>
      %65 = vector.broadcast %57 : vector<32x1xf32> to vector<32x64xf32>
      %66 = arith.mulf %65, %arg18 : vector<32x64xf32>
      %cst_39 = arith.constant dense<0.000000e+00> : vector<32x64xf32>
      %67 = tpu.matmul %60, %51, %cst_39 {dimension_numbers = #tpu.dot_dimension_numbers<[1], [0], [0], [1], [0, 0, 1, 1], [], []>} : vector<32x32xf32>, vector<32x64xf32>, vector<32x64xf32> -> vector<32x64xf32>
      %68 = arith.addf %66, %67 : vector<32x64xf32>
      scf.yield %55, %64, %68 : vector<32x1xf32>, vector<32x1xf32>, vector<32x64xf32>
    }
    %c2_i32_16 = arith.constant 2 : i32
    %cst_17 = arith.constant 1.000000e+00 : f32
    %26 = vector.broadcast %cst_17 : f32 to vector<32x1xf32>
    %27 = arith.divf %26, %25#1 : vector<32x1xf32>
    %28 = vector.broadcast %27 : vector<32x1xf32> to vector<32x64xf32>
    %29 = arith.mulf %25#2, %28 : vector<32x64xf32>
    %c0_18 = arith.constant 0 : index
    %c64 = arith.constant 64 : index
    %30 = vector.load %arg14[%c0_18, %c64] : memref<32x128xf32, #tpu.memory_space<vmem>>, vector<32x64xf32>
    tpu.vector_store %arg14[%c0_18, %c64], %29 {strides = array<i32>} : memref<32x128xf32, #tpu.memory_space<vmem>>, vector<32x64xf32>,
    %c0_19 = arith.constant 0 : index
    %c0_20 = arith.constant 0 : index
    %31 = vector.load %arg14[%c0_19, %c0_20] : memref<32x128xf32, #tpu.memory_space<vmem>>, vector<32x128xf32>
    %c0_21 = arith.constant 0 : index
    %c0_22 = arith.constant 0 : index
    %32 = vector.load %arg5[%c0_21, %c0_22] : memref<128x128xf32, #tpu.memory_space<vmem>>, vector<128x128xf32>
    %cst_23 = arith.constant dense<0.000000e+00> : vector<32x128xf32>
    %33 = tpu.matmul %31, %32, %cst_23 {dimension_numbers = #tpu.dot_dimension_numbers<[1], [0], [0], [1], [0, 0, 1, 1], [], []>} : vector<32x128xf32>, vector<128x128xf32>, vector<32x128xf32> -> vector<32x128xf32>
    %c0_24 = arith.constant 0 : index
    %34 = arith.index_cast %4 : i32 to index
    %c0_25 = arith.constant 0 : index
    %35 = vector.load %arg2[%c0_24, %34, %c0_25] : memref<1x64x128xf32, #tpu.memory_space<vmem>>, vector<1x32x128xf32>
    %36 = vector.shape_cast %35 : vector<1x32x128xf32> to vector<32x128xf32>
    %c0_26 = arith.constant 0 : index
    %c0_27 = arith.constant 0 : index
    %37 = vector.load %arg6[%c0_26, %c0_27] : memref<1x128xf32, #tpu.memory_space<vmem>>, vector<1x128xf32>
    %38 = vector.broadcast %37 : vector<1x128xf32> to vector<32x128xf32>
    %39 = arith.addf %33, %38 : vector<32x128xf32>
    %40 = arith.addf %39, %36 : vector<32x128xf32>
    %c0_28 = arith.constant 0 : index
    %c0_29 = arith.constant 0 : index
    %c0_30 = arith.constant 0 : index
    %41 = vector.load %arg10[%c0_28, %c0_29, %c0_30] : memref<1x32x128xf32, #tpu.memory_space<vmem>>, vector<1x32x128xf32>
    %42 = vector.shape_cast %41 : vector<1x32x128xf32> to vector<32x128xf32>
    %43 = vector.shape_cast %40 : vector<32x128xf32> to vector<1x32x128xf32>
    tpu.vector_store %arg10[%c0_28, %c0_29, %c0_30], %43 {strides = array<i32>} : memref<1x32x128xf32, #tpu.memory_space<vmem>>, vector<1x32x128xf32>,
    return
  }
  func.func @transform_0(%arg0: i32, %arg1: i32) -> (i32, i32, i32) {
    %c0_i32 = arith.constant 0 : i32
    %c0_i32_0 = arith.constant 0 : i32
    %c0_i32_1 = arith.constant 0 : i32
    return %arg0, %c0_i32, %c0_i32_0 : i32, i32, i32
  }
  func.func @transform_1(%arg0: i32, %arg1: i32) -> (i32, i32) {
    %c0_i32 = arith.constant 0 : i32
    %c0_i32_0 = arith.constant 0 : i32
    %c0_i32_1 = arith.constant 0 : i32
    return %c0_i32, %c0_i32_0 : i32, i32
  }
  func.func @transform_2(%arg0: i32, %arg1: i32) -> (i32, i32) {
    %c0_i32 = arith.constant 0 : i32
    %c0_i32_0 = arith.constant 0 : i32
    %c0_i32_1 = arith.constant 0 : i32
    return %c0_i32, %c0_i32_0 : i32, i32
  }
  func.func @transform_3(%arg0: i32, %arg1: i32) -> (i32, i32) {
    %c0_i32 = arith.constant 0 : i32
    %c0_i32_0 = arith.constant 0 : i32
    %c0_i32_1 = arith.constant 0 : i32
    return %c0_i32, %c0_i32_0 : i32, i32
  }
  func.func @transform_4(%arg0: i32, %arg1: i32) -> (i32, i32) {
    %c0_i32 = arith.constant 0 : i32
    %c0_i32_0 = arith.constant 0 : i32
    %c0_i32_1 = arith.constant 0 : i32
    return %c0_i32, %c0_i32_0 : i32, i32
  }
  func.func @transform_5(%arg0: i32, %arg1: i32) -> (i32, i32) {
    %c0_i32 = arith.constant 0 : i32
    %c0_i32_0 = arith.constant 0 : i32
    %c0_i32_1 = arith.constant 0 : i32
    return %c0_i32, %c0_i32_0 : i32, i32
  }
  func.func @transform_6(%arg0: i32, %arg1: i32) -> (i32, i32) {
    %c0_i32 = arith.constant 0 : i32
    %c0_i32_0 = arith.constant 0 : i32
    %c0_i32_1 = arith.constant 0 : i32
    return %c0_i32, %c0_i32_0 : i32, i32
  }
  func.func @transform_7(%arg0: i32, %arg1: i32) -> (i32, i32) {
    %c0_i32 = arith.constant 0 : i32
    %c0_i32_0 = arith.constant 0 : i32
    %c0_i32_1 = arith.constant 0 : i32
    return %c0_i32, %c0_i32_0 : i32, i32
  }
  func.func @transform_8(%arg0: i32, %arg1: i32) -> (i32, i32, i32) {
    %c0_i32 = arith.constant 0 : i32
    %c0_i32_0 = arith.constant 0 : i32
    return %arg0, %arg1, %c0_i32 : i32, i32, i32
  }
}

</mosaic_0001>

<bundles_post_ra>
// kernel: tpu_custom_call.1
= control target key start
LH: loop header
LB: loop body
LE: loop exit
PB: predicated region body
PF: predicated region fallthrough
CT: control target
= control target key end

     0   :  { %13 = vsyncpa [#allocation7], 0  ;;  %s3990_s0 = inlined_call_operand.vmem [shape: f32[2,64,128], index: 0, kind: input, shape index: {}]   ;;  %s3991_s1 = inlined_call_operand.hbm [shape: f32[128,384], index: 1, kind: input, shape index: {}]   ;;  %s3992_s2 = inlined_call_operand.vmem [shape: f32[1,384], index: 2, kind: input, shape index: {}]   ;;  %s3993_s3 = inlined_call_operand.hbm [shape: f32[128,128], index: 3, kind: input, shape index: {}]   ;;  %s3994_s4 = inlined_call_operand.vmem [shape: f32[1,128], index: 4, kind: input, shape index: {}]   ;;  %s3995_s5 = inlined_call_operand.vmem [shape: f32[1,128], index: 5, kind: input, shape index: {}]   ;;  %s3996_s6 = inlined_call_operand.vmem [shape: f32[1,128], index: 6, kind: input, shape index: {}]   ;;  %s3997_s7 = inlined_call_operand.vmem [shape: f32[128,32], index: 7, kind: input, shape index: {}]   ;;  %s3998_s8 = inlined_call_operand.hbm [shape: f32[2,64,128], index: 8, kind: output, shape index: {}]  }
   0x1   :  { %14 = vsyncpa [#allocation10], 0 }
   0x2   :  { %15 = vsyncpa [#allocation8], 0 }
   0x3   :  { %17 = vsyncpa [#allocation8 + $0x1], 0  ;;  %s2773_s27 = smov 0   ;;  %s2775_s28 = smov 0  }
   0x4   :  { %s2777_s29 = smov 0   ;;  %s2779_s30 = smov 0  }
   0x5   :  { %s2781_s9 = smov 0   ;;  %s2783_s10 = smov 0  }
   0x6   :  { %s2785_s11 = smov 0   ;;  %s2787_s12 = smov 0  }
   0x7 LB: > { %4005 = sst [smem:[#allocation15_spill]] %s2563_s27  ;;  %s1710_s13 = sadd.s32 4294967295, %s2591_s12   ;;  %s2591_s12 = sphi %s2787_s12, %s23_s12   ;;  %s2587_s11 = sphi %s2785_s11, %s4087_s11   ;;  %s2583_s10 = sphi %s2783_s10, %s4086_s10   ;;  %s2579_s9 = sphi %s2781_s9, %s4085_s9   ;;  %s2575_s30 = sphi %s2779_s30, %s4084_s30   ;;  %s2571_s29 = sphi %s2777_s29, %s4090_s29   ;;  %s2567_s28 = sphi %s2775_s28, %s4089_s28   ;;  %s2563_s27 = sphi %s2773_s27, %s4088_s27  }
   0x8   : > { %4006 = sst [smem:[#allocation16_spill]] %s2583_s10  ;;  %s1711_s14 = sadd.s32 4294967294, %s2591_s12  }
   0x9   : > { %4007 = sst [smem:[#allocation17_spill]] %s2587_s11  ;;  %s32_s15 = sadd.s32 1, %s2583_s10 }
   0xa   : > { %s35_s16 = sadd.s32 1, %s2587_s11  ;;  %p33_p0 = scmp.ge.s32.totalorder %s32_s15, 2 }
   0xb   : > { %s217_s17 = sadd.s32 1, %s2571_s29  ;;  %p227_p1 = scmp.ne.s32.totalorder %s2571_s29, %s2567_s28 }
   0xc   : > { %p228_p2 = scmp.eq.s32.totalorder %s1710_s13, 3  ;;  %s4092_s15 = smov (%p33_p0, %s32_s15), 0 }
   0xd   : > { %4008 = sst [smem:[#allocation18_spill]] %s4092_s15  ;;  %s4094_s16 = smov (!%p33_p0, %s35_s16), %s2587_s11 }
   0xe   : > { %s213_s18 = ssub.s32 %s2583_s10, %s4092_s15  ;;  %p2825_p3 = por %p228_p2, %p227_p1 }
   0xf   : > { %p37_p4 = scmp.ge.s32.totalorder %s4094_s16, 2  ;;  %p233_p5 = scmp.ne.s32.totalorder %s2567_s28, %s2563_s27 }
  0x10   : > { %p234_p6 = scmp.eq.s32.totalorder %s1711_s14, 3  ;;  %p1712_p7 = scmp.ge.s32.totalorder %s2591_s12, 1 }
  0x11   : > { %s4096_s16 = smov (%p37_p4, %s4094_s16), 0  ;;  %p241_p9 = scmp.lt.s32.totalorder %s2591_s12, 5 }
  0x12   : > { %4010 = sst [smem:[#allocation19_spill]] %s4096_s16  ;;  %p2834_p8 = por %p234_p6, %p233_p5 }
  0x13   : > { %s212_s21 = ssub.s32 %s2587_s11, %s4096_s16  ;;  %p2841_p10 = pnand %p1712_p7, %p241_p9 }
  0x14   : > { %s4011_s20 = scalar_select %p2834_p8, 1, 0 }
  0x15   : > { %s214_s22 = sor.u32 %s213_s18, %s212_s21  ;;  %p2845_p12 = scmp.eq.s32.totalorder %s1710_s13, 0 }
  0x16   : > { %4012 = sst [smem:[#allocation20_spill]] %s4011_s20  ;;  %p215_p11 = scmp.eq.s32.totalorder %s214_s22, 0 }
  0x17   : > { %p1913_p13 = pneg %p2841_p10  ;;  %s252_s14 = sshll.u32 %s3991_s1, 4  ;;  %s253_s14 = int_to_ptr.hbm [resolvable:$true] %s252_s14 }
  0x18   : > { %s2855_s15 = scalar_select %p215_p11, %s2571_s29, %s217_s17  }
  0x19   : > { %s2717_s18 = smov [#allocation6]   ;;  %p1914_p0 = pnand %p2845_p12, %p1913_p13 }
  0x1a   : > { %s254_s21 = sshll.u32 %s2717_s18, 4  ;;  %s2718_s22 = smov 384   ;;  %s255_s21 = int_to_ptr.vmem [resolvable:$true] %s254_s21 }
  0x1b   : > { %s2719_s13 = smov 24   ;;  %s269_s10 = sshll.u32 %s3993_s3, 4  ;;  %s270_s10 = int_to_ptr.hbm [resolvable:$true] %s269_s10 }
  0x1c   : > { %1916 = dma.hbm_to_vmem [thread:$0]  (!%p1914_p0), %s253_s14, 6144, %s255_s21, [#allocation7], %s2718_s22, %s2718_s22, %s2719_s13  }
  0x1d   : > { %s2720_s20 = smov [#allocation9]   ;;  %s2721_s25 = smov 128  }
  0x1e   : > { %s271_s27 = sshll.u32 %s2720_s20, 4  ;;  %s2722_s17 = smov 8   ;;  %s272_s27 = int_to_ptr.vmem [resolvable:$true] %s271_s27 }
  0x1f   : > { %1919 = dma.hbm_to_vmem [thread:$0]  (!%p1914_p0), %s270_s10, 2048, %s272_s27, [#allocation10], %s2721_s25, %s2721_s25, %s2722_s17  }
  0x20   : > { %307 = sbr.rel (%p2841_p10) target bundleno = 2141 (0x85d), region = 52 }
  0x25   : > { %2550 = dma.done.wait (%p2845_p12), [#allocation7], 6144  }
  0x26   : > { %2552 = vsyncadd (%p2845_p12), [#allocation7], 4294961152 }
  0x27   : > { %2554 = dma.done.wait (%p2845_p12), [#allocation10], 2048  }
  0x28   : > { %2556 = vsyncadd (%p2845_p12), [#allocation10], 4294965248  ;;  %s344_s27 = sand.u32 1, %s2567_s28   ;;  %p347_p1 = scmp.lt.s32.totalorder %s2579_s9, 1 }
  0x29   : > { %s1719_s10 = sshll.u32 %s344_s27, 5  ;;  %p1722_p2 = scmp.ne.s32.totalorder %s2575_s30, 0 }
  0x2a   : > { %s348_s11 = scalar_select %p347_p1, %s2579_s9, 1 }
  0x2b   : > { %s2882_s14 = scalar_lea.vmem [#allocation11], %s1719_s10  ;;  %356 = sbr.rel (%p1722_p2) target bundleno = 977 (0x3d1), region = 64 }
  0x2c   : > { %s1822_s16 = sshll.u32 %s348_s11, 6  ;;  %s2597_s11 = smov (!%p1722_p2), 0  }
  0x2d   : > { %s2880_s26 = scalar_lea.vmem %s3990_s0, %s1822_s16 }
  0x30   : > { %v2888_v0 = vld [vmem:[%s3997_s7] sm:$0xff]  ;;  %v2893_v1 = vld [vmem:[%s3997_s7 + $0x8] sm:$0xff]  ;;  %v2898_v2 = vld [vmem:[%s3997_s7 + $0x10] sm:$0xff]  ;;  %v2593_v16 = vmov 0.0  }
  0x31   : > { %v2903_v3 = vld [vmem:[%s3997_s7 + $0x18] sm:$0xff]  ;;  %v2908_v4 = vld [vmem:[%s3997_s7 + $0x20] sm:$0xff]  ;;  %v2913_v5 = vld [vmem:[%s3997_s7 + $0x28] sm:$0xff] }
  0x32   : > { %v2918_v6 = vld [vmem:[%s3997_s7 + $0x30] sm:$0xff]  ;;  %v2923_v7 = vld [vmem:[%s3997_s7 + $0x38] sm:$0xff]  ;;  %v2928_v8 = vld [vmem:[%s3997_s7 + $0x40] sm:$0xff] }
  0x33   : > { %v2933_v9 = vld [vmem:[%s3997_s7 + $0x48] sm:$0xff]  ;;  %v2938_v10 = vld [vmem:[%s3997_s7 + $0x50] sm:$0xff]  ;;  %v2943_v11 = vld [vmem:[%s3997_s7 + $0x58] sm:$0xff] }
  0x34   : > { %v2948_v12 = vld [vmem:[%s3997_s7 + $0x60] sm:$0xff]  ;;  %v2953_v13 = vld [vmem:[%s3997_s7 + $0x68] sm:$0xff]  ;;  %v2958_v14 = vld [vmem:[%s3997_s7 + $0x70] sm:$0xff] }
  0x35   : > { %v2963_v15 = vld [vmem:[%s3997_s7 + $0x78] sm:$0xff] }
  0x36 LB: >> { %s1723_s16 = sshll.u32 %s2599_s11, 5  ;;  %s378_s11 = sadd.s32 1, %s2599_s11   ;;  %s2599_s11 = sphi %s2597_s11, %s378_s11   ;;  %v2595_v16 = vphi %v2593_v16, %v2594_v16  }
  0x37   : >> { %s381_s20 = scalar_lea.vmem %s2880_s26, %s1723_s16  ;;  %p375_p4 = scmp.ge.s32.totalorder %s378_s11, 2  }
  0x38   : >> { %v382_v17 = vld [vmem:[%s381_s20] sm:$0xff]  ;;  %v383_v18 = vld [vmem:[%s381_s20 + $0x8] sm:$0xff]  ;;  %v384_v19 = vld [vmem:[%s381_s20 + $0x10] sm:$0xff]  ;;  %396 = vmatpush.msra.mxu0 (%p375_p4), %v2963_v15  ;;  %vm424_vm0 = vcmask (%p375_p4), 261120   ;;  %v2723_v31 = vmov (%p375_p4), 256.0   ;;  %v2601_v41 = vmov (%p375_p4), 0.0  }
  0x39   : >> { %v386_v20 = vadd.f32 %v383_v18, %v382_v17  ;;  %v385_v21 = vld [vmem:[%s381_s20 + $0x18] sm:$0xff]  ;;  %1724 = vmatpush.xpose.msk.msra.mxu1 (%p375_p4), %vm424_vm0, %v2963_v15  ;;  %2252 = vrcp.f32 (%p375_p4), %v2723_v31  ;;  %s3020_s23 = smov (%p375_p4), 0  }
  0x3a   : > { %397 = vmatpush.msra.mxu0 (%p375_p4), %v2958_v14 }
  0x3b   : >> { %v387_v22 = vadd.f32 %v386_v20, %v384_v19 }
  0x3c   : > { %398 = vmatpush.msra.mxu0 (%p375_p4), %v2953_v13 }
  0x3d   : >> { %v388_v23 = vadd.f32 %v387_v22, %v385_v21  ;;  %1725 = vmatpush.xpose.msk.msra.mxu1 (%p375_p4), %vm424_vm0, %v2958_v14 }
  0x3e   : > { %399 = vmatpush.msra.mxu0 (%p375_p4), %v2948_v12 }
  0x3f   : >> { %v389_v24 = vrot.slane %v388_v23, 4  ;;  %v2253_v32 = vpop.eup (%p375_p4), %2252 }
  0x40   : > { %400 = vmatpush.msra.mxu0 (%p375_p4), %v2943_v11  ;;  %v417_v33 = vmul.f32 (%p375_p4), 256.0, %v2253_v32  ;;  %vm421_vm1 = vweird.f32 (%p375_p4), %v2253_v32 }
  0x41   : >> { %v390_v25 = vadd.f32 %v389_v24, %v388_v23  ;;  %1726 = vmatpush.xpose.msk.msra.mxu1 (%p375_p4), %vm424_vm0, %v2953_v13 }
  0x42   : > { %401 = vmatpush.msra.mxu0 (%p375_p4), %v2938_v10  ;;  %v418_v34 = vsub.f32 (%p375_p4), 1.0, %v417_v33 }
  0x43   : >> { %v391_v26 = vrot.slane %v390_v25, 2 }
  0x44   : > { %402 = vmatpush.msra.mxu0 (%p375_p4), %v2933_v9  ;;  %v419_v35 = vmul.f32 (%p375_p4), %v2253_v32, %v418_v34 }
  0x45   : >> { %v392_v27 = vadd.f32 %v391_v26, %v390_v25  ;;  %1727 = vmatpush.xpose.msk.msra.mxu1 (%p375_p4), %vm424_vm0, %v2948_v12 }
  0x46   : > { %403 = vmatpush.msra.mxu0 (%p375_p4), %v2928_v8  ;;  %v420_v36 = vadd.f32 (%p375_p4), %v2253_v32, %v419_v35 }
  0x47   : >> { %v393_v28 = vrot.slane %v392_v27, 1 }
  0x48   : > { %404 = vmatpush.msra.mxu0 (%p375_p4), %v2923_v7  ;;  %v3014_v37 = vsel (%p375_p4), %vm421_vm1, %v2253_v32, %v420_v36 }
  0x49   : >> { %v394_v29 = vadd.f32 %v393_v28, %v392_v27  ;;  %377 = sbr.rel (!%p375_p4) target bundleno = 54 (0x36), region = 151  ;;  %1728 = vmatpush.xpose.msk.msra.mxu1 (%p375_p4), %vm424_vm0, %v2943_v11 }
  0x4a   : > { %405 = vmatpush.msra.mxu0 (%p375_p4), %v2918_v6 }
  0x4b   : >> { %v395_v30 = vadd.f32 %v2595_v16, %v394_v29  }
  0x4c   : > { %406 = vmatpush.msra.mxu0 (%p375_p4), %v2913_v5 }
  0x4d   : >> { %v2594_v16 = vmov %v395_v30   ;;  %1729 = vmatpush.xpose.msk.msra.mxu1 (%p375_p4), %vm424_vm0, %v2938_v10 }
  0x4e   : > { %407 = vmatpush.msra.mxu0 %v2908_v4 }
  0x50   : > { %408 = vmatpush.msra.mxu0 %v2903_v3 }
  0x51   : > { %1730 = vmatpush.xpose.msk.msra.mxu1 %vm424_vm0, %v2933_v9 }
  0x52   : > { %409 = vmatpush.msra.mxu0 %v2898_v2 }
  0x54   : > { %410 = vmatpush.msra.mxu0 %v2893_v1 }
  0x55   : > { %1731 = vmatpush.xpose.msk.msra.mxu1 %vm424_vm0, %v2928_v8 }
  0x56   : > { %411 = vmatpush.msra.mxu0 %v2888_v0 }
  0x57   : > { %412 = vmatmul.f32.vlgmr.msra.gmra.mxu0 %v395_v30 }
  0x59   : > { %1732 = vmatpush.xpose.msk.msra.mxu1 %vm424_vm0, %v2923_v7 }
  0x5d   : > { %1733 = vmatpush.xpose.msk.msra.mxu1 %vm424_vm0, %v2918_v6 }
  0x61   : > { %1734 = vmatpush.xpose.msk.msra.mxu1 %vm424_vm0, %v2913_v5 }
  0x65   : > { %1735 = vmatpush.xpose.msk.msra.mxu1 %vm424_vm0, %v2908_v4 }
  0x69   : > { %1736 = vmatpush.xpose.msk.msra.mxu1 %vm424_vm0, %v2903_v3 }
  0x6d   : > { %1737 = vmatpush.xpose.msk.msra.mxu1 %vm424_vm0, %v2898_v2 }
  0x71   : > { %1738 = vmatpush.xpose.msk.msra.mxu1 %vm424_vm0, %v2893_v1 }
  0x75   : > { %1739 = vmatpush.xpose.msk.msra.mxu1 %vm424_vm0, %v2888_v0 }
  0xd4   : > { %v413_v38 = vpop.f32.mrf.mxu0 }
  0xd5   : > { %v423_v39 = vmul.f32 %v3014_v37, %v413_v38 }
  0xd7   : > { %1740 = vmatmul.msk.f32.vlgmr.msra.gmra.mxu1 %vm424_vm0, %v423_v39 }
 0x154   : > { %v3018_v40 = vpop.f32.mrf.mxu1 }
 0x155 LB: >> { %v509_v42 = vperm.slane %v3018_v40, 0  ;;  %s1741_s24 = sshll.u32 %s2607_s23, 5  ;;  %s501_s23 = sadd.s32 1, %s2607_s23   ;;  %s2607_s23 = sphi %s3020_s23, %s501_s23   ;;  %v2603_v41 = vphi %v2601_v41, %v2602_v41  }
 0x156   : >> { %s504_s18 = scalar_lea.vmem %s2880_s26, %s1741_s24  ;;  %p498_p5 = scmp.ge.s32.totalorder %s501_s23, 2  }
 0x157   : >> { %v505_v43 = vld [vmem:[%s504_s18] sm:$0xff]  ;;  %v506_v44 = vld [vmem:[%s504_s18 + $0x8] sm:$0xff]  ;;  %v507_v45 = vld [vmem:[%s504_s18 + $0x10] sm:$0xff]  ;;  %528 = vmatpush.msra.mxu2 (%p498_p5), %v2963_v15  ;;  %1742 = vmatpush.xpose.msk.msra.mxu3 (%p498_p5), %vm424_vm0, %v2963_v15  ;;  %s3198_s11 = smov (%p498_p5), 0  }
 0x158   : >> { %v508_v46 = vld [vmem:[%s504_s18 + $0x18] sm:$0xff]  ;;  %v510_v47 = vsub.f32 %v505_v43, %v509_v42  ;;  %v511_v48 = vsub.f32 %v506_v44, %v509_v42  ;;  %v512_v49 = vsub.f32 %v507_v45, %v509_v42  ;;  %v3091_v15 = vld [vmem:[#allocation6 + $0x28] sm:$0xff] (%p498_p5)  ;;  %v3093_v17 = vld [vmem:[#allocation6 + $0x30] sm:$0xff] (%p498_p5) }
 0x159   : >> { %v513_v50 = vsub.f32 %v508_v46, %v509_v42  ;;  %529 = vmatpush.msra.mxu2 (%p498_p5), %v2958_v14  ;;  %v3095_v18 = vld [vmem:[#allocation6 + $0x38] sm:$0xff] (%p498_p5)  ;;  %v3097_v19 = vld [vmem:[#allocation6 + $0x40] sm:$0xff] (%p498_p5)  ;;  %v3099_v20 = vld [vmem:[#allocation6 + $0x48] sm:$0xff] (%p498_p5) }
 0x15a   : >> { %v514_v51 = vmul.f32 %v510_v47, %v510_v47  ;;  %v515_v52 = vmul.f32 %v511_v48, %v511_v48  ;;  %v516_v53 = vmul.f32 %v512_v49, %v512_v49  ;;  %v3101_v21 = vld [vmem:[#allocation6 + $0x50] sm:$0xff] (%p498_p5)  ;;  %v3103_v22 = vld [vmem:[#allocation6 + $0x58] sm:$0xff] (%p498_p5)  ;;  %v3105_v23 = vld [vmem:[#allocation6 + $0x60] sm:$0xff] (%p498_p5) }
 0x15b   : >> { %v517_v54 = vmul.f32 %v513_v50, %v513_v50  ;;  %530 = vmatpush.msra.mxu2 (%p498_p5), %v2953_v13  ;;  %1743 = vmatpush.xpose.msk.msra.mxu3 (%p498_p5), %vm424_vm0, %v2958_v14  ;;  %v3089_v14 = vld [vmem:[#allocation6 + $0x20] sm:$0xff] (%p498_p5)  ;;  %v3107_v24 = vld [vmem:[#allocation6 + $0x68] sm:$0xff] (%p498_p5)  ;;  %v3109_v25 = vld [vmem:[#allocation6 + $0x70] sm:$0xff] (%p498_p5) }
 0x15c   : >> { %v518_v55 = vadd.f32 %v515_v52, %v514_v51  ;;  %v3111_v26 = vld [vmem:[#allocation6 + $0x78] sm:$0xff] (%p498_p5)  ;;  %v3113_v27 = vld [vmem:[#allocation6 + $0x80] sm:$0xff] (%p498_p5)  ;;  %v3115_v28 = vld [vmem:[#allocation6 + $0x88] sm:$0xff] (%p498_p5) }
 0x15d   : > { %531 = vmatpush.msra.mxu2 (%p498_p5), %v2948_v12  ;;  %v3117_v29 = vld [vmem:[#allocation6 + $0x90] sm:$0xff] (%p498_p5)  ;;  %v3119_v30 = vld [vmem:[#allocation6 + $0x98] sm:$0xff] (%p498_p5)  ;;  %v3121_v31 = vld [vmem:[#allocation6 + $0xa0] sm:$0xff] (%p498_p5) }
 0x15e   : >> { %v519_v56 = vadd.f32 %v518_v55, %v516_v53  ;;  %v3123_v32 = vld [vmem:[#allocation6 + $0xa8] sm:$0xff] (%p498_p5)  ;;  %v3125_v33 = vld [vmem:[#allocation6 + $0xb0] sm:$0xff] (%p498_p5)  ;;  %v3127_v34 = vld [vmem:[#allocation6 + $0xb8] sm:$0xff] (%p498_p5) }
 0x15f   : > { %532 = vmatpush.msra.mxu2 (%p498_p5), %v2943_v11  ;;  %1744 = vmatpush.xpose.msk.msra.mxu3 (%p498_p5), %vm424_vm0, %v2953_v13  ;;  %v3087_v13 = vld [vmem:[#allocation6 + $0x18] sm:$0xff] (%p498_p5)  ;;  %v3129_v35 = vld [vmem:[#allocation6 + $0xc0] sm:$0xff] (%p498_p5)  ;;  %v3131_v36 = vld [vmem:[#allocation6 + $0xc8] sm:$0xff] (%p498_p5) }
 0x160   : >> { %v520_v57 = vadd.f32 %v519_v56, %v517_v54  ;;  %v3135_v38 = vld [vmem:[#allocation6 + $0xd8] sm:$0xff] (%p498_p5)  ;;  %v3137_v39 = vld [vmem:[#allocation6 + $0xe0] sm:$0xff] (%p498_p5)  ;;  %v3141_v42 = vld [vmem:[#allocation6 + $0xf0] sm:$0xff] (%p498_p5) }
 0x161   : > { %533 = vmatpush.msra.mxu2 (%p498_p5), %v2938_v10  ;;  %v3143_v43 = vld [vmem:[#allocation6 + $0xf8] sm:$0xff] (%p498_p5)  ;;  %v3145_v44 = vld [vmem:[#allocation6 + $0x100] sm:$0xff] (%p498_p5)  ;;  %v3147_v45 = vld [vmem:[#allocation6 + $0x108] sm:$0xff] (%p498_p5) }
 0x162   : >> { %v521_v58 = vrot.slane %v520_v57, 4  ;;  %v3149_v46 = vld [vmem:[#allocation6 + $0x110] sm:$0xff] (%p498_p5)  ;;  %v3151_v47 = vld [vmem:[#allocation6 + $0x118] sm:$0xff] (%p498_p5)  ;;  %v3153_v48 = vld [vmem:[#allocation6 + $0x120] sm:$0xff] (%p498_p5) }
 0x163   : > { %534 = vmatpush.msra.mxu2 (%p498_p5), %v2933_v9  ;;  %1745 = vmatpush.xpose.msk.msra.mxu3 (%p498_p5), %vm424_vm0, %v2948_v12  ;;  %v3085_v12 = vld [vmem:[#allocation6 + $0x10] sm:$0xff] (%p498_p5)  ;;  %v3155_v49 = vld [vmem:[#allocation6 + $0x128] sm:$0xff] (%p498_p5)  ;;  %v3159_v51 = vld [vmem:[#allocation6 + $0x138] sm:$0xff] (%p498_p5) }
 0x164   : >> { %v522_v59 = vadd.f32 %v521_v58, %v520_v57  ;;  %v3157_v50 = vld [vmem:[#allocation6 + $0x130] sm:$0xff] (%p498_p5)  ;;  %v3161_v52 = vld [vmem:[#allocation6 + $0x140] sm:$0xff] (%p498_p5)  ;;  %v3163_v53 = vld [vmem:[#allocation6 + $0x148] sm:$0xff] (%p498_p5) }
 0x165   : > { %535 = vmatpush.msra.mxu2 (%p498_p5), %v2928_v8  ;;  %v3165_v54 = vld [vmem:[#allocation6 + $0x150] sm:$0xff] (%p498_p5)  ;;  %v3167_v55 = vld [vmem:[#allocation6 + $0x158] sm:$0xff] (%p498_p5)  ;;  %v3169_v56 = vld [vmem:[#allocation6 + $0x160] sm:$0xff] (%p498_p5) }
 0x166   : >> { %v523_v60 = vrot.slane %v522_v59, 2  ;;  %v3171_v57 = vld [vmem:[#allocation6 + $0x168] sm:$0xff] (%p498_p5)  ;;  %v3173_v58 = vld [vmem:[#allocation6 + $0x170] sm:$0xff] (%p498_p5) }
 0x167   : > { %536 = vmatpush.msra.mxu2 (%p498_p5), %v2923_v7  ;;  %1746 = vmatpush.xpose.msk.msra.mxu3 (%p498_p5), %vm424_vm0, %v2943_v11 }
 0x168   : >> { %v524_v61 = vadd.f32 %v523_v60, %v522_v59  ;;  %v3175_v59 = vld [vmem:[#allocation6 + $0x178] sm:$0xff] (%p498_p5)  ;;  %v3180_v60 = vld [vmem:[%s3992_s2] sm:$0x7] (%p498_p5) }
 0x169   : > { %537 = vmatpush.msra.mxu2 (%p498_p5), %v2918_v6 }
 0x16a   : >> { %v525_v62 = vrot.slane %v524_v61, 1 }
 0x16b   : > { %538 = vmatpush.msra.mxu2 (%p498_p5), %v2913_v5  ;;  %1747 = vmatpush.xpose.msk.msra.mxu3 (%p498_p5), %vm424_vm0, %v2938_v10 }
 0x16c   : >> { %v526_v63 = vadd.f32 %v525_v62, %v524_v61  ;;  %500 = sbr.rel (!%p498_p5) target bundleno = 341 (0x155), region = 162  ;;  %v583_v61 = vld [vmem:[%s3995_s5] sm:$0x1] (%p498_p5) }
 0x16d   : > { %539 = vmatpush.msra.mxu2 (%p498_p5), %v2908_v4 }
 0x16e   : >> { %v527_v16 = vadd.f32 %v2603_v41, %v526_v63  }
 0x16f   : > { %540 = vmatpush.msra.mxu2 (%p498_p5), %v2903_v3  ;;  %1748 = vmatpush.xpose.msk.msra.mxu3 (%p498_p5), %vm424_vm0, %v2933_v9 }
 0x170   : >> { %v2602_v41 = vmov %v527_v16  }
 0x171   : > { %541 = vmatpush.msra.mxu2 %v2898_v2  ;;  %v3139_v41 = vld [vmem:[#allocation6 + $0xe8] sm:$0xff] }
 0x173   : > { %542 = vmatpush.msra.mxu2 %v2893_v1  ;;  %1749 = vmatpush.xpose.msk.msra.mxu3 %vm424_vm0, %v2928_v8 }
 0x175   : > { %543 = vmatpush.msra.mxu2 %v2888_v0 }
 0x176   : > { %544 = vmatmul.f32.vlgmr.msra.gmra.mxu2 %v527_v16  ;;  %v3190_v16 = vld [vmem:[%s3996_s6] sm:$0x1] }
 0x177   : > { %1750 = vmatpush.xpose.msk.msra.mxu3 %vm424_vm0, %v2923_v7 }
 0x17b   : > { %1751 = vmatpush.xpose.msk.msra.mxu3 %vm424_vm0, %v2918_v6 }
 0x17f   : > { %1752 = vmatpush.xpose.msk.msra.mxu3 %vm424_vm0, %v2913_v5 }
 0x183   : > { %1753 = vmatpush.xpose.msk.msra.mxu3 %vm424_vm0, %v2908_v4 }
 0x187   : > { %1754 = vmatpush.xpose.msk.msra.mxu3 %vm424_vm0, %v2903_v3 }
 0x18b   : > { %1755 = vmatpush.xpose.msk.msra.mxu3 %vm424_vm0, %v2898_v2 }
 0x18f   : > { %1756 = vmatpush.xpose.msk.msra.mxu3 %vm424_vm0, %v2893_v1  ;;  %v3081_v1 = vld [vmem:[#allocation6] sm:$0xff] }
 0x193   : > { %1757 = vmatpush.xpose.msk.msra.mxu3 %vm424_vm0, %v2888_v0  ;;  %v3083_v0 = vld [vmem:[#allocation6 + $0x8] sm:$0xff] }
 0x194   : > { %4015 = vst [vmem:[#allocation21_spill] sm:$0xff] %v3083_v0 }
 0x1f9   : > { %v545_v7 = vpop.f32.mrf.mxu2 }
 0x1fa   : > { %v548_v6 = vmul.f32 %v545_v7, %v3014_v37  ;;  %v3133_v37 = vld [vmem:[#allocation6 + $0xd0] sm:$0xff] }
 0x1fc   : > { %v549_v8 = vadd.f32 1e-05, %v548_v6 }
 0x1fe   : > { %2254 = vrsqrt.f32 %v549_v8  ;;  %vm556_vm3 = vweird.f32 %v549_v8 }
 0x204   : > { %v2255_v5 = vpop.eup %2254 }
 0x205   : > { %v551_v9 = vmul.f32 %v2255_v5, %v549_v8  ;;  %vm557_vm2 = vweird.f32 %v2255_v5 }
 0x206   : > { %vm558_vm4 = vmor %vm556_vm3, %vm557_vm2 }
 0x207   : > { %v552_v4 = vmul.f32 %v2255_v5, %v551_v9 }
 0x209   : > { %v553_v10 = vmul.f32 0.5, %v552_v4 }
 0x20b   : > { %v554_v11 = vsub.f32 1.5, %v553_v10 }
 0x20d   : > { %v555_v3 = vmul.f32 %v2255_v5, %v554_v11 }
 0x20f   : > { %v559_v2 = vsel %vm558_vm4, %v2255_v5, %v555_v3 }
 0x210   : > { %1758 = vmatmul.msk.f32.vlgmr.msra.gmra.mxu3 %vm424_vm0, %v559_v2 }
 0x293   : > { %v580_v62 = vpop.f32.mrf.mxu3 }
 0x294   : > { %v3185_v63 = vmul.f32 %v583_v61, %v580_v62 }
 0x296   : > { %v3194_v7 = vmul.f32 %v3185_v63, %v3018_v40 }
 0x297 LB: >> { %668 = vmatpush.msra.mxu0 %v3171_v57  ;;  %1823 = vmatpush.msra.mxu3 %v3171_v57  ;;  %s3234_s16 = sshll.u32 %s2611_s11, 5  ;;  %v649_v40 = vperm.slane %v3185_v63, 0  ;;  %v4017_v0 = vld [vmem:[#allocation21_spill] sm:$0xff]  ;;  %vm756_vm5 = vcmask 523264   ;;  %s2724_s24 = smov 64   ;;  %s2611_s11 = sphi %s3198_s11, %s642_s11  }
 0x298   : >> { %697 = vmatpush.msra.mxu1 %v3173_v58  ;;  %726 = vmatpush.msra.mxu2 %v3175_v59  ;;  %s3244_s20 = scalar_lea.vmem %s2880_s26, %s3234_s16  ;;  %v4016_v6 = vsub.f32 %v3190_v16, %v3194_v7  ;;  %s3285_s23 = scalar_lea.vmem [#allocation2], %s3234_s16 }
 0x299   : >> { %669 = vmatpush.msra.mxu0 %v3165_v54  ;;  %1824 = vmatpush.msra.mxu3 %v3165_v54  ;;  %v645_v8 = vld [vmem:[%s3244_s20] sm:$0xff]  ;;  %v646_v5 = vld [vmem:[%s3244_s20 + $0x8] sm:$0xff]  ;;  %v647_v2 = vld [vmem:[%s3244_s20 + $0x10] sm:$0xff]  ;;  %s3291_s18 = scalar_lea.vmem [#allocation3], %s3234_s16  ;;  %s3301_s21 = scalar_lea.vmem [#allocation4], %s3234_s16 }
 0x29a   : >> { %698 = vmatpush.msra.mxu1 %v3167_v55  ;;  %727 = vmatpush.msra.mxu2 %v3169_v56  ;;  %v650_v9 = vmul.f32 %v649_v40, %v645_v8  ;;  %v655_v4 = vperm.slane %v4016_v6, 0  ;;  %v651_v10 = vmul.f32 %v649_v40, %v646_v5  ;;  %v652_v61 = vmul.f32 %v649_v40, %v647_v2  ;;  %v648_v8 = vld [vmem:[%s3244_s20 + $0x18] sm:$0xff]  ;;  %s642_s11 = sadd.s32 1, %s2611_s11  }
 0x29b   : >> { %670 = vmatpush.msra.mxu0 %v3159_v51  ;;  %1825 = vmatpush.msra.mxu3 %v3159_v51  ;;  %v653_v5 = vmul.f32 %v649_v40, %v648_v8  ;;  %v663_v2 = vperm.slane %v3180_v60, 1  ;;  %p639_p6 = scmp.ge.s32.totalorder %s642_s11, 2  }
 0x29c   : >> { %699 = vmatpush.msra.mxu1 %v3161_v52  ;;  %728 = vmatpush.msra.mxu2 %v3163_v53  ;;  %v657_v11 = vadd.f32 %v655_v4, %v650_v9  ;;  %v658_v3 = vadd.f32 %v655_v4, %v651_v10  ;;  %v659_v62 = vadd.f32 %v655_v4, %v652_v61  ;;  %v662_v10 = vperm.slane %v3180_v60, 0 }
 0x29d   : >> { %671 = vmatpush.msra.mxu0 %v3153_v48  ;;  %1826 = vmatpush.msra.mxu3 %v3153_v48  ;;  %v660_v9 = vadd.f32 %v655_v4, %v653_v5 }
 0x29e   : >> { %700 = vmatpush.msra.mxu1 %v3155_v49  ;;  %729 = vmatpush.msra.mxu2 %v3157_v50 }
 0x29f   : >> { %672 = vmatpush.msra.mxu0 %v3147_v45  ;;  %1827 = vmatpush.msra.mxu3 %v3147_v45 }
 0x2a0   : >> { %701 = vmatpush.msra.mxu1 %v3149_v46  ;;  %730 = vmatpush.msra.mxu2 %v3151_v47 }
 0x2a1   : >> { %673 = vmatpush.msra.mxu0 %v3141_v42  ;;  %1828 = vmatpush.msra.mxu3 %v3141_v42 }
 0x2a2   : >> { %702 = vmatpush.msra.mxu1 %v3143_v43  ;;  %731 = vmatpush.msra.mxu2 %v3145_v44 }
 0x2a3   : >> { %674 = vmatpush.msra.mxu0 %v3135_v38  ;;  %1829 = vmatpush.msra.mxu3 %v3135_v38 }
 0x2a4   : >> { %703 = vmatpush.msra.mxu1 %v3137_v39  ;;  %732 = vmatpush.msra.mxu2 %v3139_v41 }
 0x2a5   : >> { %675 = vmatpush.msra.mxu0 %v3129_v35  ;;  %1830 = vmatpush.msra.mxu3 %v3129_v35 }
 0x2a6   : >> { %704 = vmatpush.msra.mxu1 %v3131_v36  ;;  %733 = vmatpush.msra.mxu2 %v3133_v37 }
 0x2a7   : >> { %676 = vmatpush.msra.mxu0 %v3123_v32  ;;  %1831 = vmatpush.msra.mxu3 %v3123_v32 }
 0x2a8   : >> { %705 = vmatpush.msra.mxu1 %v3125_v33  ;;  %734 = vmatpush.msra.mxu2 %v3127_v34 }
 0x2a9   : >> { %677 = vmatpush.msra.mxu0 %v3117_v29  ;;  %1832 = vmatpush.msra.mxu3 %v3117_v29 }
 0x2aa   : >> { %706 = vmatpush.msra.mxu1 %v3119_v30  ;;  %735 = vmatpush.msra.mxu2 %v3121_v31 }
 0x2ab   : >> { %678 = vmatpush.msra.mxu0 %v3111_v26  ;;  %1833 = vmatpush.msra.mxu3 %v3111_v26 }
 0x2ac   : >> { %707 = vmatpush.msra.mxu1 %v3113_v27  ;;  %736 = vmatpush.msra.mxu2 %v3115_v28 }
 0x2ad   : >> { %679 = vmatpush.msra.mxu0 %v3105_v23  ;;  %1834 = vmatpush.msra.mxu3 %v3105_v23 }
 0x2ae   : >> { %708 = vmatpush.msra.mxu1 %v3107_v24  ;;  %737 = vmatpush.msra.mxu2 %v3109_v25 }
 0x2af   : >> { %680 = vmatpush.msra.mxu0 %v3099_v20  ;;  %1835 = vmatpush.msra.mxu3 %v3099_v20 }
 0x2b0   : >> { %709 = vmatpush.msra.mxu1 %v3101_v21  ;;  %738 = vmatpush.msra.mxu2 %v3103_v22 }
 0x2b1   : >> { %681 = vmatpush.msra.mxu0 %v3093_v17  ;;  %1836 = vmatpush.msra.mxu3 %v3093_v17 }
 0x2b2   : >> { %710 = vmatpush.msra.mxu1 %v3095_v18  ;;  %739 = vmatpush.msra.mxu2 %v3097_v19 }
 0x2b3   : >> { %682 = vmatpush.msra.mxu0 %v3087_v13  ;;  %1837 = vmatpush.msra.mxu3 %v3087_v13 }
 0x2b4   : >> { %711 = vmatpush.msra.mxu1 %v3089_v14  ;;  %740 = vmatpush.msra.mxu2 %v3091_v15 }
 0x2b5   : >> { %683 = vmatpush.msra.mxu0 %v3081_v1  ;;  %1838 = vmatpush.msra.mxu3 %v3081_v1 }
 0x2b6   : >> { %712 = vmatpush.msra.mxu1 %v4017_v0  ;;  %684 = vmatmul.f32.vlgmr.msra.gmra.mxu0 %v657_v11 }
 0x2b7   : >> { %687 = vmatmul.f32.vlgmr.msra.gmra.mxu3 %v658_v3  ;;  %713 = vmatmul.f32.vlgmr.msra.gmra.mxu1 %v657_v11 }
 0x2b8   : >> { %741 = vmatpush.msra.mxu2 %v3085_v12 }
 0x2b9   : >> { %742 = vmatmul.f32.vlgmr.msra.gmra.mxu2 %v657_v11 }
 0x2bf   : >> { %690 = vmatmul.f32.gmra.mxu3 %v659_v62  ;;  %716 = vmatmul.f32.gmra.mxu1 %v658_v3 }
 0x2c1   : >> { %745 = vmatmul.f32.gmra.mxu2 %v658_v3 }
 0x2c7   : >> { %693 = vmatmul.f32.gmra.mxu3 %v660_v9  ;;  %719 = vmatmul.f32.gmra.mxu1 %v659_v62 }
 0x2c9   : >> { %748 = vmatmul.f32.gmra.mxu2 %v659_v62 }
 0x2cf   : >> { %722 = vmatmul.f32.gmra.mxu1 %v660_v9 }
 0x2d1   : >> { %751 = vmatmul.f32.gmra.mxu2 %v660_v9 }
 0x333   : >> { %v685_v6 = vpop.f32.mrf.mxu0 }
 0x334   : >> { %v686_v11 = vadd.f32 %v685_v6, %v662_v10  ;;  %v714_v61 = vpop.f32.mrf.mxu1  ;;  %v664_v6 = vperm.slane %v3180_v60, 2 }
 0x335   : >> { %v715_v0 = vadd.f32 %v714_v61, %v663_v2 }
 0x336   : >> { %757 = vst.msk [vmem:[%s3285_s23] sm:$0xff] %vm756_vm5, %v686_v11  ;;  %775 = vrot.lane.b32.xlu0 %v686_v11, %s2724_s24 }
 0x337   : >> { %762 = vst.msk [vmem:[%s3291_s18] sm:$0xff] %vm756_vm5, %v715_v0  ;;  %797 = vrot.lane.b32.xlu2 %v715_v0, %s2724_s24 }
 0x33a   : >> { %v688_v40 = vpop.f32.mrf.mxu3 }
 0x33b   : >> { %v689_v4 = vadd.f32 %v688_v40, %v662_v10 }
 0x33c   : >> { %v743_v3 = vpop.f32.mrf.mxu2  ;;  %v717_v62 = vpop.f32.mrf.mxu1 }
 0x33d   : >> { %758 = vst.msk [vmem:[%s3285_s23 + $0x8] sm:$0xff] %vm756_vm5, %v689_v4  ;;  %v744_v8 = vadd.f32 %v743_v3, %v664_v6  ;;  %v718_v5 = vadd.f32 %v717_v62, %v663_v2 }
 0x33e   : >> { %777 = vrot.lane.b32.xlu0 %v689_v4, %s2724_s24 }
 0x33f   : >> { %767 = vst.msk [vmem:[%s3301_s21] sm:$0xff] %vm756_vm5, %v744_v8  ;;  %818 = vrot.lane.b32.xlu2 %v744_v8, %s2724_s24 }
 0x340   : >> { %763 = vst.msk [vmem:[%s3291_s18 + $0x8] sm:$0xff] %vm756_vm5, %v718_v5 }
 0x342   : >> { %v691_v0 = vpop.f32.mrf.mxu3 }
 0x343   : >> { %v692_v9 = vadd.f32 %v691_v0, %v662_v10 }
 0x344   : >> { %v720_v11 = vpop.f32.mrf.mxu1  ;;  %v746_v61 = vpop.f32.mrf.mxu2 }
 0x345   : >> { %759 = vst.msk [vmem:[%s3285_s23 + $0x10] sm:$0xff] %vm756_vm5, %v692_v9  ;;  %779 = vrot.lane.b32.xlu1 %v692_v9, %s2724_s24  ;;  %v721_v40 = vadd.f32 %v720_v11, %v663_v2  ;;  %v747_v4 = vadd.f32 %v746_v61, %v664_v6 }
 0x347   : >> { %799 = vrot.lane.b32.xlu2 %v718_v5, %s2724_s24  ;;  %764 = vst.msk [vmem:[%s3291_s18 + $0x10] sm:$0xff] %vm756_vm5, %v721_v40  ;;  %801 = vrot.lane.b32.xlu0 %v721_v40, %s2724_s24 }
 0x348   : >> { %768 = vst.msk [vmem:[%s3301_s21 + $0x8] sm:$0xff] %vm756_vm5, %v747_v4 }
 0x34a   : >> { %v694_v3 = vpop.f32.mrf.mxu3 }
 0x34b   : >> { %v695_v62 = vadd.f32 %v694_v3, %v662_v10 }
 0x34c   : >> { %v723_v8 = vpop.f32.mrf.mxu1  ;;  %v749_v0 = vpop.f32.mrf.mxu2 }
 0x34d   : >> { %760 = vst.msk [vmem:[%s3285_s23 + $0x18] sm:$0xff] %vm756_vm5, %v695_v62  ;;  %781 = vrot.lane.b32.xlu1 %v695_v62, %s2724_s24  ;;  %v724_v9 = vadd.f32 %v723_v8, %v663_v2  ;;  %v750_v5 = vadd.f32 %v749_v0, %v664_v6 }
 0x34f   : >> { %765 = vst.msk [vmem:[%s3291_s18 + $0x18] sm:$0xff] %vm756_vm5, %v724_v9  ;;  %820 = vrot.lane.b32.xlu0 %v747_v4, %s2724_s24 }
 0x350   : >> { %769 = vst.msk [vmem:[%s3301_s21 + $0x10] sm:$0xff] %vm756_vm5, %v750_v5 }
 0x354   : >> { %v752_v10 = vpop.f32.mrf.mxu2 }
 0x355   : >> { %803 = vrot.lane.b32.xlu1 %v724_v9, %s2724_s24  ;;  %v753_v11 = vadd.f32 %v752_v10, %v664_v6 }
 0x357   : >> { %770 = vst.msk [vmem:[%s3301_s21 + $0x18] sm:$0xff] %vm756_vm5, %v753_v11  ;;  %824 = vrot.lane.b32.xlu2 %v753_v11, %s2724_s24 }
 0x35d   : >> { %822 = vrot.lane.b32.xlu1 %v750_v5, %s2724_s24 }
 0x391   : >> { %v798_v2 = vpop.permute.xlu2 %797 }
 0x392   : >> { %1766 = vst.msk [vmem:[%s3291_s18 + $0x40] sm:$0xff] %vm756_vm5, %v798_v2 }
 0x399   : >> { %v819_v61 = vpop.permute.xlu2 %818 }
 0x39a   : >> { %1771 = vst.msk [vmem:[%s3301_s21 + $0x40] sm:$0xff] %vm756_vm5, %v819_v61 }
 0x3a1   : >> { %v800_v40 = vpop.permute.xlu2 %799 }
 0x3a2   : >> { %1767 = vst.msk [vmem:[%s3291_s18 + $0x48] sm:$0xff] %vm756_vm5, %v800_v40 }
 0x3a8   : >> { %v776_v6 = vpop.permute.xlu0 %775 }
 0x3a9   : >> { %1761 = vst.msk [vmem:[%s3285_s23 + $0x40] sm:$0xff] %vm756_vm5, %v776_v6 }
 0x3b0   : >> { %v778_v4 = vpop.permute.xlu0 %777 }
 0x3b1   : >> { %1762 = vst.msk [vmem:[%s3285_s23 + $0x48] sm:$0xff] %vm756_vm5, %v778_v4  ;;  %v825_v3 = vpop.permute.xlu2 %824 }
 0x3b2   : >> { %1774 = vst.msk [vmem:[%s3301_s21 + $0x58] sm:$0xff] %vm756_vm5, %v825_v3 }
 0x3b7   : >> { %v780_v62 = vpop.permute.xlu1 %779 }
 0x3b8   : >> { %1763 = vst.msk [vmem:[%s3285_s23 + $0x50] sm:$0xff] %vm756_vm5, %v780_v62 }
 0x3b9   : >> { %v802_v8 = vpop.permute.xlu0 %801 }
 0x3ba   : >> { %1768 = vst.msk [vmem:[%s3291_s18 + $0x50] sm:$0xff] %vm756_vm5, %v802_v8 }
 0x3bf   : >> { %v782_v0 = vpop.permute.xlu1 %781 }
 0x3c0   : >> { %1764 = vst.msk [vmem:[%s3285_s23 + $0x58] sm:$0xff] %vm756_vm5, %v782_v0 }
 0x3c1   : >> { %v821_v9 = vpop.permute.xlu0 %820 }
 0x3c2   : >> { %1772 = vst.msk [vmem:[%s3301_s21 + $0x48] sm:$0xff] %vm756_vm5, %v821_v9 }
 0x3c7   : >> { %v804_v5 = vpop.permute.xlu1 %803 }
 0x3c8   : >> { %1769 = vst.msk [vmem:[%s3291_s18 + $0x58] sm:$0xff] %vm756_vm5, %v804_v5 }
 0x3cc   : > { %641 = sbr.rel (!%p639_p6) target bundleno = 663 (0x297), region = 173 }
 0x3cf   : >> { %v823_v10 = vpop.permute.xlu1 %822 }
 0x3d0   : >> { %1773 = vst.msk [vmem:[%s3301_s21 + $0x50] sm:$0xff] %vm756_vm5, %v823_v10 }
 0x3d1 PF: > { %s1775_s22 = sshll.u32 %s2575_s30, 5  ;;  %v3374_v6 = vmov 0.0   ;;  %v3376_v1 = vmov 0.0   ;;  %v3378_v12 = vmov 0.0   ;;  %v3380_v13 = vmov 0.0   ;;  %s3398_s25 = smov 0  }
 0x3d2   : > { %s3360_s13 = scalar_lea.vmem [#allocation2], %s1775_s22  ;;  %v3382_v14 = vmov 0.0   ;;  %v3384_v15 = vmov 0.0   ;;  %v3386_v17 = vmov 0.0   ;;  %v3388_v18 = vmov 0.0  }
 0x3d3   : > { %v3363_v11 = vld [vmem:[%s3360_s13] sm:$0xff]  ;;  %v3366_v2 = vld [vmem:[%s3360_s13 + $0x8] sm:$0xff]  ;;  %v3369_v61 = vld [vmem:[%s3360_s13 + $0x10] sm:$0xff]  ;;  %v3390_v19 = vmov -1e+30  }
 0x3d4   : > { %v3372_v40 = vld [vmem:[%s3360_s13 + $0x18] sm:$0xff]  ;;  %v3392_v20 = vmov -1e+30   ;;  %v3394_v21 = vmov -1e+30  }
 0x3d5   : > { %v3396_v22 = vmov -1e+30  }
 0x3d6 LB: >> { %s1776_s17 = sshll.u32 %s2663_s25, 5  ;;  %vm870_vm6 = vcmask 523264   ;;  %vm924_vm7 = vcmask 261120   ;;  %s846_s25 = sadd.s32 1, %s2663_s25   ;;  %s2663_s25 = sphi %s3398_s25, %s846_s25   ;;  %v2659_v22 = vphi %v3396_v22, %v4038_v22   ;;  %v2655_v21 = vphi %v3394_v21, %v4037_v21   ;;  %v2651_v20 = vphi %v3392_v20, %v4036_v20   ;;  %v2647_v19 = vphi %v3390_v19, %v4035_v19   ;;  %v2643_v18 = vphi %v3388_v18, %v4034_v18   ;;  %v2639_v17 = vphi %v3386_v17, %v4033_v17   ;;  %v2635_v15 = vphi %v3384_v15, %v4032_v15   ;;  %v2631_v14 = vphi %v3382_v14, %v4031_v14   ;;  %v2627_v13 = vphi %v3380_v13, %v4030_v13   ;;  %v2623_v12 = vphi %v3378_v12, %v4029_v12   ;;  %v2619_v1 = vphi %v3376_v1, %v4028_v1   ;;  %v2615_v6 = vphi %v3374_v6, %v4027_v6  }
 0x3d7   : >> { %s860_s10 = scalar_lea.vmem [#allocation3], %s1776_s17  ;;  %s865_s11 = scalar_lea.vmem [#allocation4], %s1776_s17 }
 0x3d8   : >> { %v864_v23 = vld [vmem:[%s860_s10 + $0x18] sm:$0xff]  ;;  %v863_v24 = vld [vmem:[%s860_s10 + $0x10] sm:$0xff]  ;;  %v862_v25 = vld [vmem:[%s860_s10 + $0x8] sm:$0xff]  ;;  %p3521_p7 = scmp.ge.s32.totalorder %s846_s25, 2  }
 0x3d9   : >> { %1777 = vmatpush.xpose.msk.msra.mxu0 %vm870_vm6, %v864_v23  ;;  %1839 = vmatpush.xpose.msk.msra.mxu2 %vm870_vm6, %v864_v23  ;;  %v861_v26 = vld [vmem:[%s860_s10] sm:$0xff]  ;;  %v869_v35 = vld [vmem:[%s865_s11 + $0x18] sm:$0xff]  ;;  %v868_v36 = vld [vmem:[%s865_s11 + $0x10] sm:$0xff]  ;;  %s3661_s20 = smov (%p3521_p7), 0  }
 0x3da   : >> { %1843 = vmatpush.msra.mxu3 %v869_v35  ;;  %1013 = vmatpush.msra.mxu1 %v869_v35  ;;  %v867_v37 = vld [vmem:[%s865_s11 + $0x8] sm:$0xff]  ;;  %v866_v38 = vld [vmem:[%s865_s11] sm:$0xff] }
 0x3dc   : >> { %1844 = vmatpush.msra.mxu3 %v868_v36  ;;  %1014 = vmatpush.msra.mxu1 %v868_v36 }
 0x3dd   : >> { %1778 = vmatpush.xpose.msk.msra.mxu0 %vm870_vm6, %v863_v24  ;;  %1840 = vmatpush.xpose.msk.msra.mxu2 %vm870_vm6, %v863_v24 }
 0x3de   : >> { %1845 = vmatpush.msra.mxu3 %v867_v37  ;;  %1015 = vmatpush.msra.mxu1 %v867_v37 }
 0x3e0   : >> { %1846 = vmatpush.msra.mxu3 %v866_v38  ;;  %1016 = vmatpush.msra.mxu1 %v866_v38 }
 0x3e1   : >> { %1779 = vmatpush.xpose.msk.msra.mxu0 %vm870_vm6, %v862_v25  ;;  %1841 = vmatpush.xpose.msk.msra.mxu2 %vm870_vm6, %v862_v25 }
 0x3e5   : >> { %1780 = vmatpush.xpose.msk.msra.mxu0 %vm870_vm6, %v861_v26  ;;  %1842 = vmatpush.xpose.msk.msra.mxu2 %vm870_vm6, %v861_v26 }
 0x3e8   : >> { %1781 = vmatmul.msk.f32.vlgmr.msra.gmra.mxu0 %vm870_vm6, %v3363_v11  ;;  %1783 = vmatmul.msk.f32.vlgmr.msra.gmra.mxu2 %vm870_vm6, %v3369_v61 }
 0x3f0   : >> { %1782 = vmatmul.msk.f32.gmra.mxu0 %vm870_vm6, %v3366_v2  ;;  %1784 = vmatmul.msk.f32.gmra.mxu2 %vm870_vm6, %v3372_v40 }
 0x465   : >> { %v912_v27 = vpop.f32.mrf.mxu0 }
 0x466   : >> { %v925_v34 = vsel %vm924_vm7, %v912_v27, -inf }
 0x46b   : >> { %v918_v28 = vpop.f32.mrf.mxu2 }
 0x46c   : >> { %v931_v33 = vsel %vm924_vm7, %v918_v28, -inf }
 0x46d   : >> { %v915_v29 = vpop.f32.mrf.mxu0 }
 0x46e   : >> { %v928_v30 = vsel %vm924_vm7, %v915_v29, -inf }
 0x46f   : >> { %929 = vmax.xlane.f32.xlu0 %v928_v30 }
 0x473   : >> { %v921_v31 = vpop.f32.mrf.mxu2 }
 0x474   : >> { %v934_v32 = vsel %vm924_vm7, %v921_v31, -inf }
 0x475   : >> { %935 = vmax.xlane.f32.xlu1 %v934_v32 }
 0x477   : >> { %932 = vmax.xlane.f32.xlu0 %v931_v33 }
 0x47d   : >> { %926 = vmax.xlane.f32.xlu1 %v925_v34 }
 0x4e2   : >> { %v930_v39 = vpop.xlane.xlu0 %929 }
 0x4e3   : >> { %v3465_v41 = vmax.f32 %v2655_v21, %v930_v39  }
 0x4e5   : >> { %v942_v42 = vsub.f32 %v2655_v21, %v3465_v41  ;;  %v954_v43 = vsub.f32 %v915_v29, %v3465_v41 }
 0x4e7   : >> { %v959_v44 = vmul.f32 1.442695, %v954_v43  ;;  %v947_v10 = vmul.f32 1.442695, %v942_v42 }
 0x4e8   : >> { %v936_v45 = vpop.xlane.xlu1 %935 }
 0x4e9   : >> { %v3471_v46 = vmax.f32 %v2647_v19, %v936_v45   ;;  %2256 = vpow2.f32 %v959_v44 }
 0x4ea   : >> { %v933_v47 = vpop.xlane.xlu0 %932 }
 0x4eb   : >> { %v944_v48 = vsub.f32 %v2647_v19, %v3471_v46  ;;  %v956_v49 = vsub.f32 %v921_v31, %v3471_v46  ;;  %v3477_v50 = vmax.f32 %v2651_v20, %v933_v47   ;;  %v3570_v47 = vld [vmem:[%s3360_s13 + $0x48] sm:$0xff] (%p3521_p7) }
 0x4ed   : >> { %v963_v51 = vmul.f32 1.442695, %v956_v49  ;;  %v943_v52 = vsub.f32 %v2651_v20, %v3477_v50  ;;  %v955_v53 = vsub.f32 %v918_v28, %v3477_v50  ;;  %v951_v0 = vmul.f32 1.442695, %v944_v48  ;;  %v3573_v48 = vld [vmem:[%s3360_s13 + $0x50] sm:$0xff] (%p3521_p7) }
 0x4ef   : >> { %v961_v54 = vmul.f32 1.442695, %v955_v53  ;;  %v2257_v55 = vpop.eup %2256  ;;  %2258 = vpow2.f32 %v963_v51  ;;  %v949_v9 = vmul.f32 1.442695, %v943_v52 }
 0x4f0   : >> { %v927_v56 = vpop.xlane.xlu1 %926  ;;  %1786 = vmatmul.msk.f32.vlgmr.msra.gmra.mxu3 %vm924_vm7, %v2257_v55  ;;  %v972_v8 = vsel %vm924_vm7, %v2257_v55, 0.0 }
 0x4f1   : >> { %v3483_v57 = vmax.f32 %v2659_v22, %v927_v56   ;;  %2260 = vpow2.f32 %v961_v54 }
 0x4f3   : >> { %v941_v58 = vsub.f32 %v2659_v22, %v3483_v57  ;;  %v953_v59 = vsub.f32 %v912_v27, %v3483_v57 }
 0x4f5   : >> { %v957_v60 = vmul.f32 1.442695, %v953_v59  ;;  %v2259_v63 = vpop.eup %2258  ;;  %v945_v5 = vmul.f32 1.442695, %v941_v58 }
 0x4f6   : >> { %v978_v16 = vsel %vm924_vm7, %v2259_v63, 0.0 }
 0x4f7   : >> { %v2261_v7 = vpop.eup %2260  ;;  %2262 = vpow2.f32 %v957_v60  ;;  %979 = vadd.xlane.f32.xlu1 %v978_v16 }
 0x4f8   : >> { %1787 = vmatmul.msk.f32.gmra.mxu3 %vm924_vm7, %v2261_v7  ;;  %v975_v4 = vsel %vm924_vm7, %v2261_v7, 0.0  ;;  %2264 = vpow2.f32 %v951_v0 }
 0x4f9   : >> { %976 = vadd.xlane.f32.xlu0 %v975_v4  ;;  %2266 = vpow2.f32 %v949_v9 }
 0x4fa   : >> { %2268 = vpow2.f32 %v945_v5 }
 0x4fb   : >> { %2270 = vpow2.f32 %v947_v10 }
 0x4fd   : >> { %v2263_v3 = vpop.eup %2262 }
 0x4fe   : >> { %1785 = vmatmul.msk.f32.vlgmr.msra.gmra.mxu1 %vm924_vm7, %v2263_v3  ;;  %v969_v62 = vsel %vm924_vm7, %v2263_v3, 0.0  ;;  %v2265_v19 = vpop.eup %2264 }
 0x4ff   : >> { %970 = vadd.xlane.f32.xlu2 %v969_v62  ;;  %v2267_v20 = vpop.eup %2266  ;;  %v968_v21 = vmul.f32 %v2631_v14, %v2265_v19 }
 0x500   : >> { %1788 = vmatmul.msk.f32.gmra.mxu3 %vm924_vm7, %v2259_v63  ;;  %v967_v24 = vmul.f32 %v2635_v15, %v2267_v20  ;;  %v2269_v27 = vpop.eup %2268  ;;  %v987_v37 = vmul.f32 %v2619_v1, %v2267_v20  ;;  %v4036_v20 = vmov %v3477_v50 }
 0x501   : >> { %v2271_v28 = vpop.eup %2270  ;;  %v965_v29 = vmul.f32 %v2643_v18, %v2269_v27  ;;  %v985_v36 = vmul.f32 %v2627_v13, %v2269_v27 }
 0x502   : >> { %v986_v31 = vmul.f32 %v2623_v12, %v2271_v28  ;;  %v966_v35 = vmul.f32 %v2639_v17, %v2271_v28 }
 0x507   : >> { %973 = vadd.xlane.f32.xlu2 %v972_v8 }
 0x56a   : >> { %v980_v22 = vpop.xlane.xlu1 %979 }
 0x56b   : >> { %v3497_v14 = vadd.f32 %v980_v22, %v968_v21   ;;  %v4037_v21 = vmov %v3465_v41  ;;  %v4038_v22 = vmov %v3483_v57  ;;  %v3577_v41 = vld [vmem:[%s3360_s13 + $0x58] sm:$0xff] (%p3521_p7) }
 0x56c   : >> { %v977_v25 = vpop.xlane.xlu0 %976 }
 0x56d   : >> { %v4018_v23 = vmov %v3497_v14  ;;  %v3500_v15 = vadd.f32 %v977_v25, %v967_v24  }
 0x56e   : > { %vm1084_vm0 = vweird.f32 (%p3521_p7), %v4018_v23  ;;  %v1088_v7 = vand.u32 (%p3521_p7), 2147483647, %v4018_v23  ;;  %v1090_v4 = vand.u32 (%p3521_p7), 2147483648, %v4018_v23 }
 0x56f   : >> { %v4019_v26 = vmov %v3500_v15 }
 0x570   : > { %vm1069_vm11 = vweird.f32 (%p3521_p7), %v4019_v26  ;;  %v1073_v56 = vand.u32 (%p3521_p7), 2147483647, %v4019_v26  ;;  %v1075_v57 = vand.u32 (%p3521_p7), 2147483648, %v4019_v26  ;;  %v1091_v25 = vor.u32 (%p3521_p7), 1.1754944e-38, %v1090_v4 }
 0x572   : >> { %v971_v30 = vpop.xlane.xlu2 %970  ;;  %v1076_v10 = vor.u32 (%p3521_p7), 1.1754944e-38, %v1075_v57  ;;  %vm1074_vm5 = vcmp.eq.f32.partialorder (%p3521_p7), %v1073_v56, 8.507059e+37 }
 0x573   : >> { %v3504_v18 = vadd.f32 %v971_v30, %v965_v29   ;;  %v1021_v33 = vpop.f32.mrf.mxu3 }
 0x574   : >> { %v3506_v12 = vadd.f32 %v1021_v33, %v986_v31  }
 0x575   : >> { %v4020_v32 = vmov %v3504_v18  ;;  %v988_v18 = vmul.f32 %v2615_v6, %v2265_v19  ;;  %v4035_v19 = vmov %v3471_v46  ;;  %v3567_v46 = vld [vmem:[%s3360_s13 + $0x40] sm:$0xff] (%p3521_p7) }
 0x576   : >> { %v4021_v34 = vmov %v3506_v12  ;;  %2272 = vrcp.f32 (%p3521_p7), %v4020_v32  ;;  %v1043_v49 = vand.u32 (%p3521_p7), 2147483647, %v4020_v32  ;;  %v1045_v11 = vand.u32 (%p3521_p7), 2147483648, %v4020_v32 }
 0x577   : >> { %v4029_v12 = vmov %v4021_v34  ;;  %vm1039_vm8 = vweird.f32 (%p3521_p7), %v4020_v32 }
 0x578   : > { %vm3588_vm10 = vcmp.eq.f32.partialorder (%p3521_p7), %v1043_v49, 8.507059e+37 }
 0x57a   : >> { %v974_v14 = vpop.xlane.xlu2 %973 }
 0x57b   : >> { %v3511_v17 = vadd.f32 %v974_v14, %v966_v35   ;;  %v1018_v15 = vpop.f32.mrf.mxu1  ;;  %v1024_v39 = vpop.f32.mrf.mxu3  ;;  %v4031_v14 = vmov %v4018_v23 }
 0x57c   : >> { %v3513_v13 = vadd.f32 %v1018_v15, %v985_v36   ;;  %v3515_v1 = vadd.f32 %v1024_v39, %v987_v37   ;;  %v4032_v15 = vmov %v4019_v26  ;;  %v2273_v61 = vpop.eup (%p3521_p7), %2272  ;;  %v3637_v14 = vmov (%p3521_p7), 0.0  }
 0x57d   : >> { %v4022_v38 = vmov %v3511_v17  ;;  %vm1040_vm12 = vweird.f32 (%p3521_p7), %v2273_v61  ;;  %v3639_v36 = vmov (%p3521_p7), 0.0   ;;  %v3643_v37 = vmov (%p3521_p7), 0.0  }
 0x57e   : >> { %v4023_v42 = vmov %v3513_v13  ;;  %v4024_v43 = vmov %v3515_v1  ;;  %v4033_v17 = vmov %v4022_v38  ;;  %2274 = vrcp.f32 (%p3521_p7), %v4022_v38  ;;  %vm3600_vm15 = vmor (%p3521_p7), %vm1039_vm8, %vm1040_vm12 }
 0x57f   : >> { %v4028_v1 = vmov %v4024_v43  ;;  %v4030_v13 = vmov %v4023_v42  ;;  %2276 = vrcp.f32 (%p3521_p7), %v4019_v26  ;;  %v1060_v2 = vand.u32 (%p3521_p7), 2147483648, %v4022_v38 }
 0x580   : > { %2278 = vrcp.f32 (%p3521_p7), %v4018_v23  ;;  %vm1054_vm9 = vweird.f32 (%p3521_p7), %v4022_v38  ;;  %v1058_v1 = vand.u32 (%p3521_p7), 2147483647, %v4022_v38  ;;  %v1046_v17 = vor.u32 (%p3521_p7), 1.1754944e-38, %v1045_v11 }
 0x581   : > { %v1061_v52 = vor.u32 (%p3521_p7), 1.1754944e-38, %v1060_v2  ;;  %v3647_v15 = vmov (%p3521_p7), 0.0   ;;  %v3649_v39 = vmov (%p3521_p7), 0.0  }
 0x582   : > { %vm1059_vm3 = vcmp.eq.f32.partialorder (%p3521_p7), %v1058_v1, 8.507059e+37 }
 0x583   : >> { %v1027_v44 = vpop.f32.mrf.mxu3  ;;  %845 = sbr.rel (!%p3521_p7) target bundleno = 982 (0x3d6), region = 184 }
 0x584   : >> { %v3518_v6 = vadd.f32 %v1027_v44, %v988_v18   ;;  %v4034_v18 = vmov %v4020_v32  ;;  %v2275_v40 = vpop.eup (%p3521_p7), %2274  ;;  %v3657_v44 = vmov (%p3521_p7), -1e+30  }
 0x585   : > { %v2277_v12 = vpop.eup (%p3521_p7), %2276  ;;  %v1050_v50 = vmul.f32 (%p3521_p7), %v2275_v40, %v4022_v38  ;;  %vm1055_vm13 = vweird.f32 (%p3521_p7), %v2275_v40  ;;  %v3645_v38 = vmov (%p3521_p7), 0.0   ;;  %v3655_v18 = vmov (%p3521_p7), -1e+30  }
 0x586   : >> { %v4025_v45 = vmov %v3518_v6  ;;  %v1065_v53 = vmul.f32 (%p3521_p7), %v2277_v12, %v4019_v26  ;;  %v2279_v54 = vpop.eup (%p3521_p7), %2278  ;;  %vm1070_vm14 = vweird.f32 (%p3521_p7), %v2277_v12  ;;  %vm3609_vm1 = vmor (%p3521_p7), %vm1054_vm9, %vm1055_vm13  ;;  %vm1089_vm9 = vcmp.eq.f32.partialorder (%p3521_p7), %v1088_v7, 8.507059e+37 }
 0x587   : >> { %v4027_v6 = vmov %v4025_v45  ;;  %v1051_v55 = vsub.f32 (%p3521_p7), 1.0, %v1050_v50  ;;  %v1080_v60 = vmul.f32 (%p3521_p7), %v2279_v54, %v4018_v23  ;;  %vm1085_vm2 = vweird.f32 (%p3521_p7), %v2279_v54  ;;  %vm3615_vm4 = vmor (%p3521_p7), %vm1069_vm11, %vm1070_vm14 }
 0x588   : > { %v1035_v6 = vmul.f32 %v2273_v61, %v4020_v32  ;;  %v1066_v59 = vsub.f32 1.0, %v1065_v53  ;;  %vm1086_vm8 = vmor %vm1084_vm0, %vm1085_vm2 }
 0x589   : > { %v1052_v16 = vmul.f32 %v2275_v40, %v1051_v55  ;;  %v1081_v0 = vsub.f32 1.0, %v1080_v60 }
 0x58a   : > { %v1036_v51 = vsub.f32 1.0, %v1035_v6  ;;  %v1067_v8 = vmul.f32 %v2277_v12, %v1066_v59 }
 0x58b   : > { %v1053_v9 = vadd.f32 %v2275_v40, %v1052_v16  ;;  %v1082_v21 = vmul.f32 %v2279_v54, %v1081_v0 }
 0x58c   : > { %v1037_v58 = vmul.f32 %v2273_v61, %v1036_v51  ;;  %v1068_v20 = vadd.f32 %v2277_v12, %v1067_v8 }
 0x58d   : > { %v1057_v24 = vsel %vm3609_vm1, %v2275_v40, %v1053_v9  ;;  %v1083_v29 = vadd.f32 %v2279_v54, %v1082_v21 }
 0x58e   : > { %v1038_v3 = vadd.f32 %v2273_v61, %v1037_v58  ;;  %v1062_v27 = vsel %vm1059_vm3, %v1061_v52, %v1057_v24  ;;  %v1072_v28 = vsel %vm3615_vm4, %v2277_v12, %v1068_v20 }
 0x58f   : > { %v1095_v30 = vmul.f32 %v1062_v27, %v4021_v34  ;;  %v1077_v31 = vsel %vm1074_vm5, %v1076_v10, %v1072_v28  ;;  %v1087_v33 = vsel %vm1086_vm8, %v2279_v54, %v1083_v29  ;;  %v3641_v34 = vmov 0.0  }
 0x590   : > { %v1042_v19 = vsel %vm3600_vm15, %v2273_v61, %v1038_v3  ;;  %v1096_v32 = vmul.f32 %v1077_v31, %v4024_v43  ;;  %v1092_v23 = vsel %vm1089_vm9, %v1091_v25, %v1087_v33  ;;  %v3653_v43 = vmov -1e+30  }
 0x591   : > { %v1047_v22 = vsel %vm3588_vm10, %v1046_v17, %v1042_v19  ;;  %1100 = vst.msk [vmem:[#allocation5 + $0x8] sm:$0xff] %vm870_vm6, %v1095_v30  ;;  %v1097_v35 = vmul.f32 %v1092_v23, %v4025_v45  ;;  %v3659_v45 = vmov -1e+30  }
 0x592   : > { %v1094_v26 = vmul.f32 %v1047_v22, %v4023_v42  ;;  %1101 = vst.msk [vmem:[#allocation5 + $0x10] sm:$0xff] %vm870_vm6, %v1096_v32  ;;  %v3651_v42 = vmov 0.0  }
 0x593   : > { %1102 = vst.msk [vmem:[#allocation5 + $0x18] sm:$0xff] %vm870_vm6, %v1097_v35 }
 0x594   : > { %1099 = vst.msk [vmem:[#allocation5] sm:$0xff] %vm870_vm6, %v1094_v26 }
 0x595 LB: >> { %s1794_s23 = sshll.u32 %s2715_s20, 5  ;;  %s1114_s20 = sadd.s32 1, %s2715_s20   ;;  %s2715_s20 = sphi %s3661_s20, %s1114_s20   ;;  %v2711_v45 = vphi %v3659_v45, %v4067_v45   ;;  %v2707_v44 = vphi %v3657_v44, %v4066_v44   ;;  %v2703_v18 = vphi %v3655_v18, %v4065_v18   ;;  %v2699_v43 = vphi %v3653_v43, %v4064_v43   ;;  %v2695_v42 = vphi %v3651_v42, %v4063_v42   ;;  %v2691_v39 = vphi %v3649_v39, %v4062_v39   ;;  %v2687_v15 = vphi %v3647_v15, %v4061_v15   ;;  %v2683_v38 = vphi %v3645_v38, %v4060_v38   ;;  %v2679_v37 = vphi %v3643_v37, %v4059_v37   ;;  %v2675_v34 = vphi %v3641_v34, %v4058_v34   ;;  %v2671_v36 = vphi %v3639_v36, %v4057_v36   ;;  %v2667_v14 = vphi %v3637_v14, %v4056_v14  }
 0x596   : >> { %s1539_s24 = scalar_lea.vmem [#allocation3], %s1794_s23  ;;  %s1542_s18 = scalar_lea.vmem [#allocation4], %s1794_s23 }
 0x597   : >> { %v1798_v49 = vld [vmem:[%s1539_s24 + $0x58] sm:$0xff]  ;;  %v1797_v11 = vld [vmem:[%s1539_s24 + $0x50] sm:$0xff]  ;;  %v1796_v2 = vld [vmem:[%s1539_s24 + $0x48] sm:$0xff]  ;;  %p3780_p9 = scmp.ge.s32.totalorder %s1114_s20, 2  }
 0x598   : >> { %1804 = vmatpush.xpose.msk.msra.mxu0 %vm870_vm6, %v1798_v49  ;;  %1847 = vmatpush.xpose.msk.msra.mxu2 %vm870_vm6, %v1798_v49  ;;  %v1795_v61 = vld [vmem:[%s1539_s24 + $0x40] sm:$0xff]  ;;  %v1803_v52 = vld [vmem:[%s1542_s18 + $0x58] sm:$0xff]  ;;  %v1802_v53 = vld [vmem:[%s1542_s18 + $0x50] sm:$0xff]  ;;  %s2725_s13 = smov (%p3780_p9), 64   ;;  %s1407_s25 = scalar_lea.vmem (%p3780_p9), %s2880_s26, %s1775_s22 }
 0x599   : >> { %1851 = vmatpush.msra.mxu3 %v1803_v52  ;;  %1281 = vmatpush.msra.mxu1 %v1803_v52  ;;  %v1801_v54 = vld [vmem:[%s1542_s18 + $0x48] sm:$0xff]  ;;  %v1800_v55 = vld [vmem:[%s1542_s18 + $0x40] sm:$0xff]  ;;  %s1817_s11 = sshll.u32 (%p3780_p9), %s2575_s30, 2  ;;  %s1818_s16 = sshll.u32 (%p3780_p9), %s2579_s9, 3 }
 0x59a   : > { %s1465_s20 = sadd.s32 (%p3780_p9), %s1818_s16, %s1817_s11  ;;  %s1468_s9 = sshll.u32 (%p3780_p9), %s2882_s14, 4  ;;  %s1469_s9 = int_to_ptr.vmem [resolvable:$true] %s1468_s9 }
 0x59b   : >> { %1852 = vmatpush.msra.mxu3 %v1802_v53  ;;  %1282 = vmatpush.msra.mxu1 %v1802_v53  ;;  %s1819_s23 = sshll.u32 (%p3780_p9), %s1465_s20, 3  ;;  %s1454_s18 = scalar_lea.sflag (%p3780_p9), [#allocation8], %s344_s27 }
 0x59c   : >> { %1805 = vmatpush.xpose.msk.msra.mxu0 %vm870_vm6, %v1797_v11  ;;  %1848 = vmatpush.xpose.msk.msra.mxu2 %vm870_vm6, %v1797_v11  ;;  %s1467_s30 = scalar_lea.hbm (%p3780_p9), %s3998_s8, %s1819_s23  ;;  %s2385_s11 = scalar_lea.hbm (%p3780_p9), %s3998_s8, 128 }
 0x59d   : >> { %1853 = vmatpush.msra.mxu3 %v1801_v54  ;;  %1283 = vmatpush.msra.mxu1 %v1801_v54  ;;  %s1470_s24 = sshll.u32 (%p3780_p9), %s1467_s30, 4  ;;  %s1471_s24 = int_to_ptr.hbm [resolvable:$true] %s1470_s24 }
 0x59e   : > { %s2379_s21 = sshra.s32 (%p3780_p9), %s1471_s24, 4  ;;  %s2380_s21 = int_to_ptr.hbm [resolvable:$true] %s2379_s21 }
 0x59f   : >> { %1854 = vmatpush.msra.mxu3 %v1800_v55  ;;  %1284 = vmatpush.msra.mxu1 %v1800_v55  ;;  %p2386_p13 = scmp.lt.s32.totalorder (%p3780_p9), %s2380_s21, %s3998_s8 }
 0x5a0   : >> { %1806 = vmatpush.xpose.msk.msra.mxu0 %vm870_vm6, %v1796_v2  ;;  %1849 = vmatpush.xpose.msk.msra.mxu2 %vm870_vm6, %v1796_v2 }
 0x5a4   : >> { %1807 = vmatpush.xpose.msk.msra.mxu0 %vm870_vm6, %v1795_v61  ;;  %1850 = vmatpush.xpose.msk.msra.mxu2 %vm870_vm6, %v1795_v61 }
 0x5a7   : >> { %1808 = vmatmul.msk.f32.vlgmr.msra.gmra.mxu0 %vm870_vm6, %v3567_v46  ;;  %1810 = vmatmul.msk.f32.vlgmr.msra.gmra.mxu2 %vm870_vm6, %v3573_v48  ;;  %v1403_v46 = vld [vmem:[#allocation9 + $0x60] sm:$0xff] (%p3780_p9) }
 0x5af   : >> { %1809 = vmatmul.msk.f32.gmra.mxu0 %vm870_vm6, %v3570_v47  ;;  %1811 = vmatmul.msk.f32.gmra.mxu2 %vm870_vm6, %v3577_v41  ;;  %v1402_v41 = vld [vmem:[#allocation9 + $0x58] sm:$0xff] (%p3780_p9) }
 0x624   : >> { %v1180_v40 = vpop.f32.mrf.mxu0 }
 0x625   : >> { %v1193_v51 = vsel %vm924_vm7, %v1180_v40, -inf }
 0x62a   : >> { %v1186_v6 = vpop.f32.mrf.mxu2 }
 0x62b   : >> { %v1199_v50 = vsel %vm924_vm7, %v1186_v6, -inf }
 0x62c   : >> { %v1183_v1 = vpop.f32.mrf.mxu0 }
 0x62d   : >> { %v1196_v12 = vsel %vm924_vm7, %v1183_v1, -inf }
 0x62e   : >> { %1197 = vmax.xlane.f32.xlu0 %v1196_v12 }
 0x632   : >> { %v1189_v13 = vpop.f32.mrf.mxu2 }
 0x633   : >> { %v1202_v17 = vsel %vm924_vm7, %v1189_v13, -inf }
 0x634   : >> { %1203 = vmax.xlane.f32.xlu1 %v1202_v17 }
 0x636   : >> { %1200 = vmax.xlane.f32.xlu0 %v1199_v50 }
 0x63c   : >> { %1194 = vmax.xlane.f32.xlu1 %v1193_v51 }
 0x6a1   : >> { %v1198_v56 = vpop.xlane.xlu0 %1197 }
 0x6a2   : >> { %v3724_v57 = vmax.f32 %v2707_v44, %v1198_v56  }
 0x6a4   : >> { %v1210_v58 = vsub.f32 %v2707_v44, %v3724_v57  ;;  %v1222_v59 = vsub.f32 %v1183_v1, %v3724_v57 }
 0x6a6   : >> { %v1227_v60 = vmul.f32 1.442695, %v1222_v59  ;;  %v1215_v35 = vmul.f32 1.442695, %v1210_v58 }
 0x6a7   : >> { %v1204_v63 = vpop.xlane.xlu1 %1203 }
 0x6a8   : >> { %v3730_v16 = vmax.f32 %v2699_v43, %v1204_v63   ;;  %2280 = vpow2.f32 %v1227_v60 }
 0x6a9   : >> { %v1201_v7 = vpop.xlane.xlu0 %1200 }
 0x6aa   : >> { %v1212_v4 = vsub.f32 %v2699_v43, %v3730_v16  ;;  %v1224_v3 = vsub.f32 %v1189_v13, %v3730_v16  ;;  %v3736_v62 = vmax.f32 %v2703_v18, %v1201_v7   ;;  %v1406_v7 = vld [vmem:[#allocation9 + $0x78] sm:$0xff] (%p3780_p9) }
 0x6ab   : > { %1856 = vmatpush.msra.mxu2 (%p3780_p9), %v1406_v7  ;;  %1416 = vmatpush.msra.mxu0 (%p3780_p9), %v1406_v7 }
 0x6ac   : >> { %v1231_v8 = vmul.f32 1.442695, %v1224_v3  ;;  %v1211_v0 = vsub.f32 %v2703_v18, %v3736_v62  ;;  %v1223_v9 = vsub.f32 %v1186_v6, %v3736_v62  ;;  %v1219_v32 = vmul.f32 1.442695, %v1212_v4  ;;  %v1405_v4 = vld [vmem:[#allocation9 + $0x70] sm:$0xff] (%p3780_p9) }
 0x6ad   : > { %1859 = vmatpush.msra.mxu2 (%p3780_p9), %v1405_v4  ;;  %1417 = vmatpush.msra.mxu0 (%p3780_p9), %v1405_v4 }
 0x6ae   : >> { %v1229_v5 = vmul.f32 1.442695, %v1223_v9  ;;  %v2281_v10 = vpop.eup %2280  ;;  %2282 = vpow2.f32 %v1231_v8  ;;  %v1217_v33 = vmul.f32 1.442695, %v1211_v0  ;;  %v1401_v0 = vld [vmem:[#allocation9 + $0x50] sm:$0xff] (%p3780_p9) }
 0x6af   : >> { %v1195_v19 = vpop.xlane.xlu1 %1194  ;;  %1813 = vmatmul.msk.f32.vlgmr.msra.gmra.mxu3 %vm924_vm7, %v2281_v10  ;;  %v1240_v31 = vsel %vm924_vm7, %v2281_v10, 0.0 }
 0x6b0   : >> { %v3742_v20 = vmax.f32 %v2711_v45, %v1195_v19   ;;  %2284 = vpow2.f32 %v1229_v5  ;;  %1857 = vmatpush.msra.mxu3 (%p3780_p9), %v1406_v7 }
 0x6b2   : >> { %v1209_v21 = vsub.f32 %v2711_v45, %v3742_v20  ;;  %v1221_v22 = vsub.f32 %v1180_v40, %v3742_v20  ;;  %1860 = vmatpush.msra.mxu3 (%p3780_p9), %v1405_v4 }
 0x6b4   : >> { %v1225_v24 = vmul.f32 1.442695, %v1221_v22  ;;  %v2283_v25 = vpop.eup %2282  ;;  %v1213_v23 = vmul.f32 1.442695, %v1209_v21  ;;  %v1400_v22 = vld [vmem:[#allocation9 + $0x48] sm:$0xff] (%p3780_p9) }
 0x6b5   : >> { %v1246_v26 = vsel %vm924_vm7, %v2283_v25, 0.0 }
 0x6b6   : >> { %v2285_v27 = vpop.eup %2284  ;;  %2286 = vpow2.f32 %v1225_v24  ;;  %1247 = vadd.xlane.f32.xlu1 %v1246_v26 }
 0x6b7   : >> { %1814 = vmatmul.msk.f32.gmra.mxu3 %vm924_vm7, %v2285_v27  ;;  %v1243_v28 = vsel %vm924_vm7, %v2285_v27, 0.0  ;;  %2288 = vpow2.f32 %v1219_v32 }
 0x6b8   : >> { %1244 = vadd.xlane.f32.xlu0 %v1243_v28  ;;  %2290 = vpow2.f32 %v1217_v33 }
 0x6b9   : >> { %2292 = vpow2.f32 %v1213_v23 }
 0x6ba   : >> { %2294 = vpow2.f32 %v1215_v35 }
 0x6bc   : >> { %v2287_v29 = vpop.eup %2286 }
 0x6bd   : >> { %1812 = vmatmul.msk.f32.vlgmr.msra.gmra.mxu1 %vm924_vm7, %v2287_v29  ;;  %v1237_v30 = vsel %vm924_vm7, %v2287_v29, 0.0  ;;  %v2289_v43 = vpop.eup %2288 }
 0x6be   : >> { %1238 = vadd.xlane.f32.xlu2 %v1237_v30  ;;  %v2291_v18 = vpop.eup %2290  ;;  %v1236_v44 = vmul.f32 %v2683_v38, %v2289_v43  ;;  %1855 = vmatpush.msra.mxu1 (%p3780_p9), %v1406_v7 }
 0x6bf   : >> { %1815 = vmatmul.msk.f32.gmra.mxu3 %vm924_vm7, %v2283_v25  ;;  %v1235_v11 = vmul.f32 %v2687_v15, %v2291_v18  ;;  %v2293_v40 = vpop.eup %2292  ;;  %v1255_v54 = vmul.f32 %v2671_v36, %v2291_v18  ;;  %v4065_v18 = vmov %v3736_v62 }
 0x6c0   : >> { %v2295_v6 = vpop.eup %2294  ;;  %v1233_v1 = vmul.f32 %v2695_v42, %v2293_v40  ;;  %v1253_v53 = vmul.f32 %v2679_v37, %v2293_v40  ;;  %1858 = vmatpush.msra.mxu1 (%p3780_p9), %v1405_v4  ;;  %v1394_v4 = vld [vmem:[#allocation9 + $0x18] sm:$0xff] (%p3780_p9) }
 0x6c1   : >> { %v1254_v13 = vmul.f32 %v2675_v34, %v2295_v6  ;;  %v1234_v52 = vmul.f32 %v2691_v39, %v2295_v6 }
 0x6c6   : >> { %1241 = vadd.xlane.f32.xlu2 %v1240_v31  ;;  %v1399_v31 = vld [vmem:[#allocation9 + $0x40] sm:$0xff] (%p3780_p9) }
 0x729   : >> { %v1248_v45 = vpop.xlane.xlu1 %1247 }
 0x72a   : >> { %v3756_v38 = vadd.f32 %v1248_v45, %v1236_v44   ;;  %v4066_v44 = vmov %v3724_v57  ;;  %v4067_v45 = vmov %v3742_v20 }
 0x72b   : >> { %v1245_v2 = vpop.xlane.xlu0 %1244 }
 0x72c   : >> { %v4047_v49 = vmov %v3756_v38  ;;  %v3759_v15 = vadd.f32 %v1245_v2, %v1235_v11   ;;  %v1398_v11 = vld [vmem:[#allocation9 + $0x38] sm:$0xff] (%p3780_p9) }
 0x72d   : > { %vm1352_vm12 = vweird.f32 (%p3780_p9), %v4047_v49  ;;  %v1356_v21 = vand.u32 (%p3780_p9), 2147483647, %v4047_v49  ;;  %v1358_v29 = vand.u32 (%p3780_p9), 2147483648, %v4047_v49 }
 0x72e   : >> { %v4048_v61 = vmov %v3759_v15 }
 0x72f   : > { %2297 = vrcp.f32 (%p3780_p9), %v4048_v61  ;;  %v1341_v57 = vand.u32 (%p3780_p9), 2147483647, %v4048_v61  ;;  %v1343_v3 = vand.u32 (%p3780_p9), 2147483648, %v4048_v61  ;;  %vm1337_vm6 = vweird.f32 (%p3780_p9), %v4048_v61 }
 0x730   : > { %vm3901_vm5 = vcmp.eq.f32.partialorder (%p3780_p9), %v1356_v21, 8.507059e+37 }
 0x731   : >> { %v1239_v12 = vpop.xlane.xlu2 %1238  ;;  %vm3841_vm10 = vcmp.eq.f32.partialorder (%p3780_p9), %v1341_v57, 8.507059e+37  ;;  %v1392_v57 = vld [vmem:[#allocation9 + $0x8] sm:$0xff] (%p3780_p9) }
 0x732   : >> { %v3763_v42 = vadd.f32 %v1239_v12, %v1233_v1   ;;  %v1289_v50 = vpop.f32.mrf.mxu3  ;;  %v1359_v12 = vor.u32 (%p3780_p9), 1.1754944e-38, %v1358_v29 }
 0x733   : >> { %v3765_v34 = vadd.f32 %v1289_v50, %v1254_v13   ;;  %v1397_v50 = vld [vmem:[#allocation9 + $0x30] sm:$0xff] (%p3780_p9) }
 0x734   : >> { %v4049_v17 = vmov %v3763_v42  ;;  %v1256_v42 = vmul.f32 %v2667_v14, %v2289_v43  ;;  %v4064_v43 = vmov %v3730_v16  ;;  %v1404_v16 = vld [vmem:[#allocation9 + $0x68] sm:$0xff] (%p3780_p9) }
 0x735   : >> { %v4050_v51 = vmov %v3765_v34  ;;  %2299 = vrcp.f32 (%p3780_p9), %v4049_v17  ;;  %1862 = vmatpush.msra.mxu2 (%p3780_p9), %v1404_v16  ;;  %1418 = vmatpush.msra.mxu0 (%p3780_p9), %v1404_v16  ;;  %v3830_v47 = vpop.eup (%p3780_p9), %2297  ;;  %v1313_v48 = vand.u32 (%p3780_p9), 2147483648, %v4049_v17  ;;  %vm1307_vm7 = vweird.f32 (%p3780_p9), %v4049_v17 }
 0x736   : >> { %v4058_v34 = vmov %v4050_v51  ;;  %2301 = vrcp.f32 (%p3780_p9), %v4047_v49  ;;  %1863 = vmatpush.msra.mxu3 (%p3780_p9), %v1404_v16  ;;  %1861 = vmatpush.msra.mxu1 (%p3780_p9), %v1404_v16  ;;  %v1311_v8 = vand.u32 (%p3780_p9), 2147483647, %v4049_v17  ;;  %vm1338_vm11 = vweird.f32 (%p3780_p9), %v3830_v47  ;;  %v1393_v16 = vld [vmem:[#allocation9 + $0x10] sm:$0xff] (%p3780_p9) }
 0x737   : > { %1865 = vmatpush.msra.mxu2 (%p3780_p9), %v1403_v46  ;;  %1419 = vmatpush.msra.mxu0 (%p3780_p9), %v1403_v46  ;;  %v1314_v20 = vor.u32 (%p3780_p9), 1.1754944e-38, %v1313_v48  ;;  %vm3864_vm15 = vmor (%p3780_p9), %vm1337_vm6, %vm1338_vm11  ;;  %vm1382_vm6 = vcmask (%p3780_p9), 1048064  }
 0x738   : > { %1866 = vmatpush.msra.mxu3 (%p3780_p9), %v1403_v46  ;;  %1864 = vmatpush.msra.mxu1 (%p3780_p9), %v1403_v46  ;;  %vm3884_vm3 = vcmp.eq.f32.partialorder (%p3780_p9), %v1311_v8, 8.507059e+37 }
 0x739   : >> { %v1242_v38 = vpop.xlane.xlu2 %1241  ;;  %1868 = vmatpush.msra.mxu2 (%p3780_p9), %v1402_v41  ;;  %1420 = vmatpush.msra.mxu0 (%p3780_p9), %v1402_v41 }
 0x73a   : >> { %v3770_v39 = vadd.f32 %v1242_v38, %v1234_v52   ;;  %v1286_v15 = vpop.f32.mrf.mxu1  ;;  %v1292_v56 = vpop.f32.mrf.mxu3  ;;  %v4060_v38 = vmov %v4047_v49  ;;  %1869 = vmatpush.msra.mxu3 (%p3780_p9), %v1402_v41  ;;  %1867 = vmatpush.msra.mxu1 (%p3780_p9), %v1402_v41 }
 0x73b   : >> { %v3772_v37 = vadd.f32 %v1286_v15, %v1253_v53   ;;  %v3774_v36 = vadd.f32 %v1292_v56, %v1255_v54   ;;  %v4061_v15 = vmov %v4048_v61  ;;  %1871 = vmatpush.msra.mxu2 (%p3780_p9), %v1401_v0  ;;  %1421 = vmatpush.msra.mxu0 (%p3780_p9), %v1401_v0 }
 0x73c   : >> { %v4051_v55 = vmov %v3770_v39  ;;  %1872 = vmatpush.msra.mxu3 (%p3780_p9), %v1401_v0  ;;  %1870 = vmatpush.msra.mxu1 (%p3780_p9), %v1401_v0  ;;  %v1396_v15 = vld [vmem:[#allocation9 + $0x28] sm:$0xff] (%p3780_p9)  ;;  %v1410_v0 = vld [vmem:[%s1407_s25 + $0x10] sm:$0xff] (%p3780_p9) }
 0x73d   : >> { %v4052_v58 = vmov %v3772_v37  ;;  %v4053_v59 = vmov %v3774_v36  ;;  %v4062_v39 = vmov %v4051_v55  ;;  %2303 = vrcp.f32 (%p3780_p9), %v4051_v55  ;;  %1874 = vmatpush.msra.mxu2 (%p3780_p9), %v1400_v22  ;;  %1422 = vmatpush.msra.mxu0 (%p3780_p9), %v1400_v22 }
 0x73e   : >> { %v4057_v36 = vmov %v4053_v59  ;;  %v4059_v37 = vmov %v4052_v58  ;;  %v1344_v39 = vor.u32 (%p3780_p9), 1.1754944e-38, %v1343_v3  ;;  %vm1322_vm0 = vweird.f32 (%p3780_p9), %v4051_v55  ;;  %1875 = vmatpush.msra.mxu3 (%p3780_p9), %v1400_v22  ;;  %1873 = vmatpush.msra.mxu1 (%p3780_p9), %v1400_v22 }
 0x73f   : > { %v1333_v36 = vmul.f32 (%p3780_p9), %v3830_v47, %v4048_v61  ;;  %v1328_v30 = vand.u32 (%p3780_p9), 2147483648, %v4051_v55  ;;  %v1326_v45 = vand.u32 (%p3780_p9), 2147483647, %v4051_v55  ;;  %1877 = vmatpush.msra.mxu2 (%p3780_p9), %v1399_v31  ;;  %1423 = vmatpush.msra.mxu0 (%p3780_p9), %v1399_v31  ;;  %v1408_v37 = vld [vmem:[%s1407_s25] sm:$0xff] (%p3780_p9) }
 0x740   : > { %1878 = vmatpush.msra.mxu3 (%p3780_p9), %v1399_v31  ;;  %1876 = vmatpush.msra.mxu1 (%p3780_p9), %v1399_v31 }
 0x741   : > { %v1334_v9 = vsub.f32 (%p3780_p9), 1.0, %v1333_v36  ;;  %1880 = vmatpush.msra.mxu2 (%p3780_p9), %v1398_v11  ;;  %vm1327_vm9 = vcmp.eq.f32.partialorder (%p3780_p9), %v1326_v45, 8.507059e+37  ;;  %1424 = vmatpush.msra.mxu0 (%p3780_p9), %v1398_v11 }
 0x742   : >> { %v1295_v60 = vpop.f32.mrf.mxu3  ;;  %1113 = sbr.rel (!%p3780_p9) target bundleno = 1429 (0x595), region = 195  ;;  %1881 = vmatpush.msra.mxu3 (%p3780_p9), %v1398_v11  ;;  %1879 = vmatpush.msra.mxu1 (%p3780_p9), %v1398_v11 }
 0x743   : >> { %v3777_v14 = vadd.f32 %v1295_v60, %v1256_v42   ;;  %v4063_v42 = vmov %v4049_v17  ;;  %v1335_v24 = vmul.f32 (%p3780_p9), %v3830_v47, %v1334_v9  ;;  %1883 = vmatpush.msra.mxu2 (%p3780_p9), %v1397_v50  ;;  %1425 = vmatpush.msra.mxu0 (%p3780_p9), %v1397_v50 }
 0x744   : > { %v1395_v42 = vld [vmem:[#allocation9 + $0x20] sm:$0xff] (%p3780_p9)  ;;  %1884 = vmatpush.msra.mxu3 (%p3780_p9), %v1397_v50  ;;  %1882 = vmatpush.msra.mxu1 (%p3780_p9), %v1397_v50 }
 0x745   : >> { %v4054_v63 = vmov %v3777_v14  ;;  %v1336_v32 = vadd.f32 (%p3780_p9), %v3830_v47, %v1335_v24  ;;  %1886 = vmatpush.msra.mxu2 (%p3780_p9), %v1396_v15  ;;  %1426 = vmatpush.msra.mxu0 (%p3780_p9), %v1396_v15  ;;  %v1411_v24 = vld [vmem:[%s1407_s25 + $0x18] sm:$0xff] (%p3780_p9) }
 0x746   : >> { %v4056_v14 = vmov %v4054_v63  ;;  %1887 = vmatpush.msra.mxu3 (%p3780_p9), %v1396_v15  ;;  %1885 = vmatpush.msra.mxu1 (%p3780_p9), %v1396_v15 }
 0x747   : > { %v3833_v14 = vpop.eup %2299  ;;  %v1340_v2 = vsel %vm3864_vm15, %v3830_v47, %v1336_v32  ;;  %1889 = vmatpush.msra.mxu2 %v1395_v42  ;;  %1427 = vmatpush.msra.mxu0 %v1395_v42 }
 0x748   : > { %v3839_v34 = vpop.eup %2301  ;;  %v1303_v62 = vmul.f32 %v3833_v14, %v4049_v17  ;;  %vm1308_vm13 = vweird.f32 %v3833_v14  ;;  %v1345_v6 = vsel %vm3841_vm10, %v1344_v39, %v1340_v2  ;;  %v1329_v17 = vor.u32 1.1754944e-38, %v1328_v30  ;;  %1890 = vmatpush.msra.mxu3 %v1395_v42  ;;  %1888 = vmatpush.msra.mxu1 %v1395_v42 }
 0x749   : > { %v1348_v5 = vmul.f32 %v3839_v34, %v4047_v49  ;;  %v3852_v10 = vpop.eup %2303  ;;  %vm1353_vm14 = vweird.f32 %v3839_v34  ;;  %vm3877_vm1 = vmor %vm1307_vm7, %vm1308_vm13  ;;  %v1364_v52 = vmul.f32 %v1345_v6, %v4053_v59  ;;  %1892 = vmatpush.msra.mxu2 %v1394_v4  ;;  %1428 = vmatpush.msra.mxu0 %v1394_v4 }
 0x74a   : > { %v1304_v19 = vsub.f32 1.0, %v1303_v62  ;;  %v1318_v26 = vmul.f32 %v3852_v10, %v4051_v55  ;;  %vm1323_vm2 = vweird.f32 %v3852_v10  ;;  %vm3892_vm4 = vmor %vm1352_vm12, %vm1353_vm14  ;;  %1893 = vmatpush.msra.mxu3 %v1394_v4  ;;  %1891 = vmatpush.msra.mxu1 %v1394_v4 }
 0x74b   : > { %v1349_v25 = vsub.f32 1.0, %v1348_v5  ;;  %vm3915_vm8 = vmor %vm1322_vm0, %vm1323_vm2  ;;  %1374 = vrot.lane.b32.xlu0 %v1364_v52, %s2725_s13  ;;  %1895 = vmatpush.msra.mxu2 %v1393_v16 }
 0x74c   : > { %v1305_v28 = vmul.f32 %v3833_v14, %v1304_v19  ;;  %v1319_v35 = vsub.f32 1.0, %v1318_v26  ;;  %1429 = vmatpush.msra.mxu0 %v1393_v16  ;;  %1896 = vmatpush.msra.mxu3 %v1393_v16  ;;  %v1409_v19 = vld [vmem:[%s1407_s25 + $0x8] sm:$0xff] }
 0x74d   : > { %v1350_v23 = vmul.f32 %v3839_v34, %v1349_v25  ;;  %1894 = vmatpush.msra.mxu1 %v1393_v16  ;;  %1898 = vmatpush.msra.mxu2 %v1392_v57 }
 0x74e   : > { %v1306_v43 = vadd.f32 %v3833_v14, %v1305_v28  ;;  %v1320_v49 = vmul.f32 %v3852_v10, %v1319_v35  ;;  %1430 = vmatpush.msra.mxu0 %v1392_v57  ;;  %1899 = vmatpush.msra.mxu3 %v1392_v57 }
 0x74f   : > { %v1351_v61 = vadd.f32 %v3839_v34, %v1350_v23  ;;  %1897 = vmatpush.msra.mxu1 %v1392_v57 }
 0x750   : > { %v1310_v1 = vsel %vm3877_vm1, %v3833_v14, %v1306_v43  ;;  %v1321_v54 = vadd.f32 %v3852_v10, %v1320_v49 }
 0x751   : > { %v1315_v38 = vsel %vm3884_vm3, %v1314_v20, %v1310_v1  ;;  %v1355_v53 = vsel %vm3892_vm4, %v3839_v34, %v1351_v61  ;;  %v2296_v34 = vld [vmem:[%s3994_s4] ss:$0 sm:$0xff] }
 0x752   : > { %v1362_v55 = vmul.f32 %v1315_v38, %v4052_v58  ;;  %v1325_v56 = vsel %vm3915_vm8, %v3852_v10, %v1321_v54  ;;  %v1360_v59 = vsel %vm3901_vm5, %v1359_v12, %v1355_v53 }
 0x753   : > { %v1330_v60 = vsel %vm1327_vm9, %v1329_v17, %v1325_v56  ;;  %v1365_v58 = vmul.f32 %v1360_v59, %v4054_v63  ;;  %v1391_v63 = vld [vmem:[#allocation9] sm:$0xff] }
 0x754   : > { %1370 = vrot.lane.b32.xlu1 %v1362_v55, %s2725_s13  ;;  %v1363_v7 = vmul.f32 %v1330_v60, %v4050_v51  ;;  %1901 = vmatpush.msra.mxu2 %v1391_v63 }
 0x755   : > { %1376 = vrot.lane.b32.xlu0 %v1365_v58, %s2725_s13  ;;  %1431 = vmatpush.msra.mxu0 %v1391_v63 }
 0x756   : > { %1902 = vmatpush.msra.mxu3 %v1391_v63  ;;  %1900 = vmatpush.msra.mxu1 %v1391_v63 }
 0x75c   : > { %1372 = vrot.lane.b32.xlu1 %v1363_v7, %s2725_s13  ;;  %s2381_s13 = scalar_lea.hbm %s2380_s21, 32 }
 0x75d   : > { %p2382_p10 = scmp.ne.s32.totalorder %s2380_s21, %s2381_s13  ;;  %p2387_p0 = scmp.lt.s32.totalorder %s2385_s11, %s2381_s13 }
 0x75f   : > { %p2383_p11 = pnand %p2382_p10, %p2825_p3  ;;  %p2388_p1 = por %p2387_p0, %p2386_p13 }
 0x761   : > { %p2384_p12 = pneg %p2383_p11 }
 0x763   : > { %p2389_p2 = pnand %p2388_p1, %p2384_p12 }
 0x7bd   : > { %v1375_v51 = vpop.permute.xlu0 %1374 }
 0x7be   : > { %1385 = vst.msk [vmem:[#allocation5 + $0x10] sm:$0xff] %vm1382_vm6, %v1375_v51 }
 0x7c5   : > { %v1389_v47 = vld [vmem:[#allocation5 + $0x10] sm:$0xff] }
 0x7c6   : > { %v1371_v3 = vpop.permute.xlu1 %1370  ;;  %1438 = vmatmul.f32.vlgmr.msra.gmra.mxu2 %v1389_v47 }
 0x7c7   : > { %1383 = vst.msk [vmem:[#allocation5] sm:$0xff] %vm1382_vm6, %v1371_v3  ;;  %v1377_v46 = vpop.permute.xlu0 %1376 }
 0x7c8   : > { %1386 = vst.msk [vmem:[#allocation5 + $0x18] sm:$0xff] %vm1382_vm6, %v1377_v46 }
 0x7ce   : > { %v1373_v48 = vpop.permute.xlu1 %1372  ;;  %v1387_v41 = vld [vmem:[#allocation5] sm:$0xff] }
 0x7cf   : > { %1384 = vst.msk [vmem:[#allocation5 + $0x8] sm:$0xff] %vm1382_vm6, %v1373_v48  ;;  %1432 = vmatmul.f32.vlgmr.msra.gmra.mxu0 %v1387_v41  ;;  %v1390_v14 = vld [vmem:[#allocation5 + $0x18] sm:$0xff] }
 0x7d0   : > { %1441 = vmatmul.f32.vlgmr.msra.gmra.mxu3 %v1390_v14 }
 0x7d6   : > { %v1388_v36 = vld [vmem:[#allocation5 + $0x8] sm:$0xff] }
 0x7d7   : > { %1435 = vmatmul.f32.vlgmr.msra.gmra.mxu1 %v1388_v36 }
 0x849   : > { %v1439_v9 = vpop.f32.mrf.mxu2 }
 0x84a   : > { %v1440_v5 = vadd.f32 %v2296_v34, %v1439_v9 }
 0x84c   : > { %v1433_v39 = vpop.f32.mrf.mxu0  ;;  %v1447_v10 = vadd.f32 %v1440_v5, %v1410_v0 }
 0x84d   : > { %v1434_v62 = vadd.f32 %v2296_v34, %v1433_v39 }
 0x84e   : > { %1451 = vst [vmem:[%s2882_s14 + $0x10] sm:$0xff] %v1447_v10 }
 0x84f   : > { %v1445_v8 = vadd.f32 %v1434_v62, %v1408_v37 }
 0x851   : > { %1449 = vst [vmem:[%s2882_s14] sm:$0xff] %v1445_v8 }
 0x853   : > { %v1442_v25 = vpop.f32.mrf.mxu3 }
 0x854   : > { %v1436_v20 = vpop.f32.mrf.mxu1  ;;  %v1443_v26 = vadd.f32 %v2296_v34, %v1442_v25 }
 0x855   : > { %v1437_v21 = vadd.f32 %v2296_v34, %v1436_v20 }
 0x856   : > { %v1448_v27 = vadd.f32 %v1443_v26, %v1411_v24 }
 0x857   : > { %v1446_v22 = vadd.f32 %v1437_v21, %v1409_v19 }
 0x858   : > { %1452 = vst [vmem:[%s2882_s14 + $0x18] sm:$0xff] %v1448_v27 }
 0x859   : > { %1450 = vst [vmem:[%s2882_s14 + $0x8] sm:$0xff] %v1446_v22 }
 0x85a   : > { %2392 = shalt.err (!%p2389_p2)
}
 0x85b   : > { %s2726_s27 = smov 128   ;;  %s2727_s14 = smov 8  }
 0x85c   : > { %1911 = dma.vmem_to_hbm [thread:$0]  (%p2825_p3), %s1469_s9, 512, %s1471_s24, %s1454_s18, %s2726_s27, %s2726_s27, %s2727_s14  }
 0x85d PF: > { %s4082_s20 = sld [smem:[#allocation15_spill]]  ;;  %p1928_p4 = scmp.ge.s32.totalorder %s2591_s12, 2 }
 0x85f   : > { %p1921_p5 = pnand %p1928_p4, %p2834_p8 }
 0x861   : > { %p1922_p6 = pneg %p1921_p5 }
 0x863   : > { %s1485_s26 = sand.u32 1, %s4082_s20  }
 0x864   : > { %s1486_s22 = scalar_lea.sflag [#allocation8], %s1485_s26 }
 0x865   : > { %2558 = dma.done.wait (%p1922_p6), %s1486_s22, 512  }
 0x866   : > { %2560 = vsyncadd (%p1922_p6), %s1486_s22, 4294966784  ;;  %s23_s12 = sadd.s32 1, %s2591_s12   ;;  %s4084_s30 = sld [smem:[#allocation16_spill]] }
 0x867   : > { %p20_p7 = scmp.ge.s32.totalorder %s23_s12, 6   ;;  %s4085_s9 = sld [smem:[#allocation17_spill]] }
 0x868   : > { %s4086_s10 = sld [smem:[#allocation18_spill]]  ;;  %s4088_s27 = smov %s2567_s28 }
 0x869   : > { %s4087_s11 = sld [smem:[#allocation19_spill]]  ;;  %s4089_s28 = smov %s2571_s29 }
 0x86a   : > { %s4090_s29 = smov %s2855_s15  ;;  %22 = sbr.rel (!%p20_p7) target bundleno = 7 (0x7), region = 206 }
 0x86f   :  { %1492 = vsyncpa [#allocation7], 1 }
 0x870   :  { %1494 = vsyncpa [#allocation7 + $0x1], 1 }
 0x871   :  { %1495 = vsyncpa [#allocation10], 1 }
 0x872   :  { %1496 = vsyncpa [#allocation8], 1 }
 0x873   :  { %1498 = vsyncpa [#allocation8 + $0x1], 1 }

// kernel: tpu_custom_call.1
= control target key start
LH: loop header
LB: loop body
LE: loop exit
PB: predicated region body
PF: predicated region fallthrough
CT: control target
= control target key end

     0   :  { %13 = vsyncpa [#allocation7], 0  ;;  %s3990_s0 = inlined_call_operand.vmem [shape: f32[2,64,128], index: 0, kind: input, shape index: {}]   ;;  %s3991_s1 = inlined_call_operand.hbm [shape: f32[128,384], index: 1, kind: input, shape index: {}]   ;;  %s3992_s2 = inlined_call_operand.vmem [shape: f32[1,384], index: 2, kind: input, shape index: {}]   ;;  %s3993_s3 = inlined_call_operand.hbm [shape: f32[128,128], index: 3, kind: input, shape index: {}]   ;;  %s3994_s4 = inlined_call_operand.vmem [shape: f32[1,128], index: 4, kind: input, shape index: {}]   ;;  %s3995_s5 = inlined_call_operand.vmem [shape: f32[1,128], index: 5, kind: input, shape index: {}]   ;;  %s3996_s6 = inlined_call_operand.vmem [shape: f32[1,128], index: 6, kind: input, shape index: {}]   ;;  %s3997_s7 = inlined_call_operand.vmem [shape: f32[128,32], index: 7, kind: input, shape index: {}]   ;;  %s3998_s8 = inlined_call_operand.hbm [shape: f32[2,64,128], index: 8, kind: output, shape index: {}]  }
   0x1   :  { %14 = vsyncpa [#allocation10], 0 }
   0x2   :  { %15 = vsyncpa [#allocation8], 0 }
   0x3   :  { %17 = vsyncpa [#allocation8 + $0x1], 0  ;;  %s2773_s27 = smov 0   ;;  %s2775_s28 = smov 0  }
   0x4   :  { %s2777_s29 = smov 0   ;;  %s2779_s30 = smov 0  }
   0x5   :  { %s2781_s9 = smov 0   ;;  %s2783_s10 = smov 0  }
   0x6   :  { %s2785_s11 = smov 0   ;;  %s2787_s12 = smov 0  }
   0x7 LB: > { %4005 = sst [smem:[#allocation15_spill]] %s2563_s27  ;;  %s1710_s13 = sadd.s32 4294967295, %s2591_s12   ;;  %s2591_s12 = sphi %s2787_s12, %s23_s12   ;;  %s2587_s11 = sphi %s2785_s11, %s4087_s11   ;;  %s2583_s10 = sphi %s2783_s10, %s4086_s10   ;;  %s2579_s9 = sphi %s2781_s9, %s4085_s9   ;;  %s2575_s30 = sphi %s2779_s30, %s4084_s30   ;;  %s2571_s29 = sphi %s2777_s29, %s4090_s29   ;;  %s2567_s28 = sphi %s2775_s28, %s4089_s28   ;;  %s2563_s27 = sphi %s2773_s27, %s4088_s27  }
   0x8   : > { %4006 = sst [smem:[#allocation16_spill]] %s2583_s10  ;;  %s1711_s14 = sadd.s32 4294967294, %s2591_s12  }
   0x9   : > { %4007 = sst [smem:[#allocation17_spill]] %s2587_s11  ;;  %s32_s15 = sadd.s32 1, %s2583_s10 }
   0xa   : > { %s35_s16 = sadd.s32 1, %s2587_s11  ;;  %p33_p0 = scmp.ge.s32.totalorder %s32_s15, 2 }
   0xb   : > { %s217_s17 = sadd.s32 1, %s2571_s29  ;;  %p227_p1 = scmp.ne.s32.totalorder %s2571_s29, %s2567_s28 }
   0xc   : > { %p228_p2 = scmp.eq.s32.totalorder %s1710_s13, 3  ;;  %s4092_s15 = smov (%p33_p0, %s32_s15), 0 }
   0xd   : > { %4008 = sst [smem:[#allocation18_spill]] %s4092_s15  ;;  %s4094_s16 = smov (!%p33_p0, %s35_s16), %s2587_s11 }
   0xe   : > { %s213_s18 = ssub.s32 %s2583_s10, %s4092_s15  ;;  %p2825_p3 = por %p228_p2, %p227_p1 }
   0xf   : > { %p37_p4 = scmp.ge.s32.totalorder %s4094_s16, 2  ;;  %p233_p5 = scmp.ne.s32.totalorder %s2567_s28, %s2563_s27 }
  0x10   : > { %p234_p6 = scmp.eq.s32.totalorder %s1711_s14, 3  ;;  %p1712_p7 = scmp.ge.s32.totalorder %s2591_s12, 1 }
  0x11   : > { %s4096_s16 = smov (%p37_p4, %s4094_s16), 0  ;;  %p241_p9 = scmp.lt.s32.totalorder %s2591_s12, 5 }
  0x12   : > { %4010 = sst [smem:[#allocation19_spill]] %s4096_s16  ;;  %p2834_p8 = por %p234_p6, %p233_p5 }
  0x13   : > { %s212_s21 = ssub.s32 %s2587_s11, %s4096_s16  ;;  %p2841_p10 = pnand %p1712_p7, %p241_p9 }
  0x14   : > { %s4011_s20 = scalar_select %p2834_p8, 1, 0 }
  0x15   : > { %s214_s22 = sor.u32 %s213_s18, %s212_s21  ;;  %p2845_p12 = scmp.eq.s32.totalorder %s1710_s13, 0 }
  0x16   : > { %4012 = sst [smem:[#allocation20_spill]] %s4011_s20  ;;  %p215_p11 = scmp.eq.s32.totalorder %s214_s22, 0 }
  0x17   : > { %p1913_p13 = pneg %p2841_p10  ;;  %s252_s14 = sshll.u32 %s3991_s1, 4  ;;  %s253_s14 = int_to_ptr.hbm [resolvable:$true] %s252_s14 }
  0x18   : > { %s2855_s15 = scalar_select %p215_p11, %s2571_s29, %s217_s17  }
  0x19   : > { %s2717_s18 = smov [#allocation6]   ;;  %p1914_p0 = pnand %p2845_p12, %p1913_p13 }
  0x1a   : > { %s254_s21 = sshll.u32 %s2717_s18, 4  ;;  %s2718_s22 = smov 384   ;;  %s255_s21 = int_to_ptr.vmem [resolvable:$true] %s254_s21 }
  0x1b   : > { %s2719_s13 = smov 24   ;;  %s269_s10 = sshll.u32 %s3993_s3, 4  ;;  %s270_s10 = int_to_ptr.hbm [resolvable:$true] %s269_s10 }
  0x1c   : > { %1916 = dma.hbm_to_vmem [thread:$0]  (!%p1914_p0), %s253_s14, 6144, %s255_s21, [#allocation7], %s2718_s22, %s2718_s22, %s2719_s13  }
  0x1d   : > { %s2720_s20 = smov [#allocation9]   ;;  %s2721_s25 = smov 128  }
  0x1e   : > { %s271_s27 = sshll.u32 %s2720_s20, 4  ;;  %s2722_s17 = smov 8   ;;  %s272_s27 = int_to_ptr.vmem [resolvable:$true] %s271_s27 }
  0x1f   : > { %1919 = dma.hbm_to_vmem [thread:$0]  (!%p1914_p0), %s270_s10, 2048, %s272_s27, [#allocation10], %s2721_s25, %s2721_s25, %s2722_s17  }
  0x20   : > { %307 = sbr.rel (%p2841_p10) target bundleno = 2141 (0x85d), region = 52 }
  0x25   : > { %2550 = dma.done.wait (%p2845_p12), [#allocation7], 6144  }
  0x26   : > { %2552 = vsyncadd (%p2845_p12), [#allocation7], 4294961152 }
  0x27   : > { %2554 = dma.done.wait (%p2845_p12), [#allocation10], 2048  }
  0x28   : > { %2556 = vsyncadd (%p2845_p12), [#allocation10], 4294965248  ;;  %s344_s27 = sand.u32 1, %s2567_s28   ;;  %p347_p1 = scmp.lt.s32.totalorder %s2579_s9, 1 }
  0x29   : > { %s1719_s10 = sshll.u32 %s344_s27, 5  ;;  %p1722_p2 = scmp.ne.s32.totalorder %s2575_s30, 0 }
  0x2a   : > { %s348_s11 = scalar_select %p347_p1, %s2579_s9, 1 }
  0x2b   : > { %s2882_s14 = scalar_lea.vmem [#allocation11], %s1719_s10  ;;  %356 = sbr.rel (%p1722_p2) target bundleno = 977 (0x3d1), region = 64 }
  0x2c   : > { %s1822_s16 = sshll.u32 %s348_s11, 6  ;;  %s2597_s11 = smov (!%p1722_p2), 0  }
  0x2d   : > { %s2880_s26 = scalar_lea.vmem %s3990_s0, %s1822_s16 }
  0x30   : > { %v2888_v0 = vld [vmem:[%s3997_s7] sm:$0xff]  ;;  %v2893_v1 = vld [vmem:[%s3997_s7 + $0x8] sm:$0xff]  ;;  %v2898_v2 = vld [vmem:[%s3997_s7 + $0x10] sm:$0xff]  ;;  %v2593_v16 = vmov 0.0  }
  0x31   : > { %v2903_v3 = vld [vmem:[%s3997_s7 + $0x18] sm:$0xff]  ;;  %v2908_v4 = vld [vmem:[%s3997_s7 + $0x20] sm:$0xff]  ;;  %v2913_v5 = vld [vmem:[%s3997_s7 + $0x28] sm:$0xff] }
  0x32   : > { %v2918_v6 = vld [vmem:[%s3997_s7 + $0x30] sm:$0xff]  ;;  %v2923_v7 = vld [vmem:[%s3997_s7 + $0x38] sm:$0xff]  ;;  %v2928_v8 = vld [vmem:[%s3997_s7 + $0x40] sm:$0xff] }
  0x33   : > { %v2933_v9 = vld [vmem:[%s3997_s7 + $0x48] sm:$0xff]  ;;  %v2938_v10 = vld [vmem:[%s3997_s7 + $0x50] sm:$0xff]  ;;  %v2943_v11 = vld [vmem:[%s3997_s7 + $0x58] sm:$0xff] }
  0x34   : > { %v2948_v12 = vld [vmem:[%s3997_s7 + $0x60] sm:$0xff]  ;;  %v2953_v13 = vld [vmem:[%s3997_s7 + $0x68] sm:$0xff]  ;;  %v2958_v14 = vld [vmem:[%s3997_s7 + $0x70] sm:$0xff] }
  0x35   : > { %v2963_v15 = vld [vmem:[%s3997_s7 + $0x78] sm:$0xff] }
  0x36 LB: >> { %s1723_s16 = sshll.u32 %s2599_s11, 5  ;;  %s378_s11 = sadd.s32 1, %s2599_s11   ;;  %s2599_s11 = sphi %s2597_s11, %s378_s11   ;;  %v2595_v16 = vphi %v2593_v16, %v2594_v16  }
  0x37   : >> { %s381_s20 = scalar_lea.vmem %s2880_s26, %s1723_s16  ;;  %p375_p4 = scmp.ge.s32.totalorder %s378_s11, 2  }
  0x38   : >> { %v382_v17 = vld [vmem:[%s381_s20] sm:$0xff]  ;;  %v383_v18 = vld [vmem:[%s381_s20 + $0x8] sm:$0xff]  ;;  %v384_v19 = vld [vmem:[%s381_s20 + $0x10] sm:$0xff]  ;;  %396 = vmatpush.msra.mxu0 (%p375_p4), %v2963_v15  ;;  %vm424_vm0 = vcmask (%p375_p4), 261120   ;;  %v2723_v31 = vmov (%p375_p4), 256.0   ;;  %v2601_v41 = vmov (%p375_p4), 0.0  }
  0x39   : >> { %v386_v20 = vadd.f32 %v383_v18, %v382_v17  ;;  %v385_v21 = vld [vmem:[%s381_s20 + $0x18] sm:$0xff]  ;;  %1724 = vmatpush.xpose.msk.msra.mxu1 (%p375_p4), %vm424_vm0, %v2963_v15  ;;  %2252 = vrcp.f32 (%p375_p4), %v2723_v31  ;;  %s3020_s23 = smov (%p375_p4), 0  }
  0x3a   : > { %397 = vmatpush.msra.mxu0 (%p375_p4), %v2958_v14 }
  0x3b   : >> { %v387_v22 = vadd.f32 %v386_v20, %v384_v19 }
  0x3c   : > { %398 = vmatpush.msra.mxu0 (%p375_p4), %v2953_v13 }
  0x3d   : >> { %v388_v23 = vadd.f32 %v387_v22, %v385_v21  ;;  %1725 = vmatpush.xpose.msk.msra.mxu1 (%p375_p4), %vm424_vm0, %v2958_v14 }
  0x3e   : > { %399 = vmatpush.msra.mxu0 (%p375_p4), %v2948_v12 }
  0x3f   : >> { %v389_v24 = vrot.slane %v388_v23, 4  ;;  %v2253_v32 = vpop.eup (%p375_p4), %2252 }
  0x40   : > { %400 = vmatpush.msra.mxu0 (%p375_p4), %v2943_v11  ;;  %v417_v33 = vmul.f32 (%p375_p4), 256.0, %v2253_v32  ;;  %vm421_vm1 = vweird.f32 (%p375_p4), %v2253_v32 }
  0x41   : >> { %v390_v25 = vadd.f32 %v389_v24, %v388_v23  ;;  %1726 = vmatpush.xpose.msk.msra.mxu1 (%p375_p4), %vm424_vm0, %v2953_v13 }
  0x42   : > { %401 = vmatpush.msra.mxu0 (%p375_p4), %v2938_v10  ;;  %v418_v34 = vsub.f32 (%p375_p4), 1.0, %v417_v33 }
  0x43   : >> { %v391_v26 = vrot.slane %v390_v25, 2 }
  0x44   : > { %402 = vmatpush.msra.mxu0 (%p375_p4), %v2933_v9  ;;  %v419_v35 = vmul.f32 (%p375_p4), %v2253_v32, %v418_v34 }
  0x45   : >> { %v392_v27 = vadd.f32 %v391_v26, %v390_v25  ;;  %1727 = vmatpush.xpose.msk.msra.mxu1 (%p375_p4), %vm424_vm0, %v2948_v12 }
  0x46   : > { %403 = vmatpush.msra.mxu0 (%p375_p4), %v2928_v8  ;;  %v420_v36 = vadd.f32 (%p375_p4), %v2253_v32, %v419_v35 }
  0x47   : >> { %v393_v28 = vrot.slane %v392_v27, 1 }
  0x48   : > { %404 = vmatpush.msra.mxu0 (%p375_p4), %v2923_v7  ;;  %v3014_v37 = vsel (%p375_p4), %vm421_vm1, %v2253_v32, %v420_v36 }
  0x49   : >> { %v394_v29 = vadd.f32 %v393_v28, %v392_v27  ;;  %377 = sbr.rel (!%p375_p4) target bundleno = 54 (0x36), region = 151  ;;  %1728 = vmatpush.xpose.msk.msra.mxu1 (%p375_p4), %vm424_vm0, %v2943_v11 }
  0x4a   : > { %405 = vmatpush.msra.mxu0 (%p375_p4), %v2918_v6 }
  0x4b   : >> { %v395_v30 = vadd.f32 %v2595_v16, %v394_v29  }
  0x4c   : > { %406 = vmatpush.msra.mxu0 (%p375_p4), %v2913_v5 }
  0x4d   : >> { %v2594_v16 = vmov %v395_v30   ;;  %1729 = vmatpush.xpose.msk.msra.mxu1 (%p375_p4), %vm424_vm0, %v2938_v10 }
  0x4e   : > { %407 = vmatpush.msra.mxu0 %v2908_v4 }
  0x50   : > { %408 = vmatpush.msra.mxu0 %v2903_v3 }
  0x51   : > { %1730 = vmatpush.xpose.msk.msra.mxu1 %vm424_vm0, %v2933_v9 }
  0x52   : > { %409 = vmatpush.msra.mxu0 %v2898_v2 }
  0x54   : > { %410 = vmatpush.msra.mxu0 %v2893_v1 }
  0x55   : > { %1731 = vmatpush.xpose.msk.msra.mxu1 %vm424_vm0, %v2928_v8 }
  0x56   : > { %411 = vmatpush.msra.mxu0 %v2888_v0 }
  0x57   : > { %412 = vmatmul.f32.vlgmr.msra.gmra.mxu0 %v395_v30 }
  0x59   : > { %1732 = vmatpush.xpose.msk.msra.mxu1 %vm424_vm0, %v2923_v7 }
  0x5d   : > { %1733 = vmatpush.xpose.msk.msra.mxu1 %vm424_vm0, %v2918_v6 }
  0x61   : > { %1734 = vmatpush.xpose.msk.msra.mxu1 %vm424_vm0, %v2913_v5 }
  0x65   : > { %1735 = vmatpush.xpose.msk.msra.mxu1 %vm424_vm0, %v2908_v4 }
  0x69   : > { %1736 = vmatpush.xpose.msk.msra.mxu1 %vm424_vm0, %v2903_v3 }
  0x6d   : > { %1737 = vmatpush.xpose.msk.msra.mxu1 %vm424_vm0, %v2898_v2 }
  0x71   : > { %1738 = vmatpush.xpose.msk.msra.mxu1 %vm424_vm0, %v2893_v1 }
  0x75   : > { %1739 = vmatpush.xpose.msk.msra.mxu1 %vm424_vm0, %v2888_v0 }
  0xd4   : > { %v413_v38 = vpop.f32.mrf.mxu0 }
  0xd5   : > { %v423_v39 = vmul.f32 %v3014_v37, %v413_v38 }
  0xd7   : > { %1740 = vmatmul.msk.f32.vlgmr.msra.gmra.mxu1 %vm424_vm0, %v423_v39 }
 0x154   : > { %v3018_v40 = vpop.f32.mrf.mxu1 }
 0x155 LB: >> { %v509_v42 = vperm.slane %v3018_v40, 0  ;;  %s1741_s24 = sshll.u32 %s2607_s23, 5  ;;  %s501_s23 = sadd.s32 1, %s2607_s23   ;;  %s2607_s23 = sphi %s3020_s23, %s501_s23   ;;  %v2603_v41 = vphi %v2601_v41, %v2602_v41  }
 0x156   : >> { %s504_s18 = scalar_lea.vmem %s2880_s26, %s1741_s24  ;;  %p498_p5 = scmp.ge.s32.totalorder %s501_s23, 2  }
 0x157   : >> { %v505_v43 = vld [vmem:[%s504_s18] sm:$0xff]  ;;  %v506_v44 = vld [vmem:[%s504_s18 + $0x8] sm:$0xff]  ;;  %v507_v45 = vld [vmem:[%s504_s18 + $0x10] sm:$0xff]  ;;  %528 = vmatpush.msra.mxu2 (%p498_p5), %v2963_v15  ;;  %1742 = vmatpush.xpose.msk.msra.mxu3 (%p498_p5), %vm424_vm0, %v2963_v15  ;;  %s3198_s11 = smov (%p498_p5), 0  }
 0x158   : >> { %v508_v46 = vld [vmem:[%s504_s18 + $0x18] sm:$0xff]  ;;  %v510_v47 = vsub.f32 %v505_v43, %v509_v42  ;;  %v511_v48 = vsub.f32 %v506_v44, %v509_v42  ;;  %v512_v49 = vsub.f32 %v507_v45, %v509_v42  ;;  %v3091_v15 = vld [vmem:[#allocation6 + $0x28] sm:$0xff] (%p498_p5)  ;;  %v3093_v17 = vld [vmem:[#allocation6 + $0x30] sm:$0xff] (%p498_p5) }
 0x159   : >> { %v513_v50 = vsub.f32 %v508_v46, %v509_v42  ;;  %529 = vmatpush.msra.mxu2 (%p498_p5), %v2958_v14  ;;  %v3095_v18 = vld [vmem:[#allocation6 + $0x38] sm:$0xff] (%p498_p5)  ;;  %v3097_v19 = vld [vmem:[#allocation6 + $0x40] sm:$0xff] (%p498_p5)  ;;  %v3099_v20 = vld [vmem:[#allocation6 + $0x48] sm:$0xff] (%p498_p5) }
 0x15a   : >> { %v514_v51 = vmul.f32 %v510_v47, %v510_v47  ;;  %v515_v52 = vmul.f32 %v511_v48, %v511_v48  ;;  %v516_v53 = vmul.f32 %v512_v49, %v512_v49  ;;  %v3101_v21 = vld [vmem:[#allocation6 + $0x50] sm:$0xff] (%p498_p5)  ;;  %v3103_v22 = vld [vmem:[#allocation6 + $0x58] sm:$0xff] (%p498_p5)  ;;  %v3105_v23 = vld [vmem:[#allocation6 + $0x60] sm:$0xff] (%p498_p5) }
 0x15b   : >> { %v517_v54 = vmul.f32 %v513_v50, %v513_v50  ;;  %530 = vmatpush.msra.mxu2 (%p498_p5), %v2953_v13  ;;  %1743 = vmatpush.xpose.msk.msra.mxu3 (%p498_p5), %vm424_vm0, %v2958_v14  ;;  %v3089_v14 = vld [vmem:[#allocation6 + $0x20] sm:$0xff] (%p498_p5)  ;;  %v3107_v24 = vld [vmem:[#allocation6 + $0x68] sm:$0xff] (%p498_p5)  ;;  %v3109_v25 = vld [vmem:[#allocation6 + $0x70] sm:$0xff] (%p498_p5) }
 0x15c   : >> { %v518_v55 = vadd.f32 %v515_v52, %v514_v51  ;;  %v3111_v26 = vld [vmem:[#allocation6 + $0x78] sm:$0xff] (%p498_p5)  ;;  %v3113_v27 = vld [vmem:[#allocation6 + $0x80] sm:$0xff] (%p498_p5)  ;;  %v3115_v28 = vld [vmem:[#allocation6 + $0x88] sm:$0xff] (%p498_p5) }
 0x15d   : > { %531 = vmatpush.msra.mxu2 (%p498_p5), %v2948_v12  ;;  %v3117_v29 = vld [vmem:[#allocation6 + $0x90] sm:$0xff] (%p498_p5)  ;;  %v3119_v30 = vld [vmem:[#allocation6 + $0x98] sm:$0xff] (%p498_p5)  ;;  %v3121_v31 = vld [vmem:[#allocation6 + $0xa0] sm:$0xff] (%p498_p5) }
 0x15e   : >> { %v519_v56 = vadd.f32 %v518_v55, %v516_v53  ;;  %v3123_v32 = vld [vmem:[#allocation6 + $0xa8] sm:$0xff] (%p498_p5)  ;;  %v3125_v33 = vld [vmem:[#allocation6 + $0xb0] sm:$0xff] (%p498_p5)  ;;  %v3127_v34 = vld [vmem:[#allocation6 + $0xb8] sm:$0xff] (%p498_p5) }
 0x15f   : > { %532 = vmatpush.msra.mxu2 (%p498_p5), %v2943_v11  ;;  %1744 = vmatpush.xpose.msk.msra.mxu3 (%p498_p5), %vm424_vm0, %v2953_v13  ;;  %v3087_v13 = vld [vmem:[#allocation6 + $0x18] sm:$0xff] (%p498_p5)  ;;  %v3129_v35 = vld [vmem:[#allocation6 + $0xc0] sm:$0xff] (%p498_p5)  ;;  %v3131_v36 = vld [vmem:[#allocation6 + $0xc8] sm:$0xff] (%p498_p5) }
 0x160   : >> { %v520_v57 = vadd.f32 %v519_v56, %v517_v54  ;;  %v3135_v38 = vld [vmem:[#allocation6 + $0xd8] sm:$0xff] (%p498_p5)  ;;  %v3137_v39 = vld [vmem:[#allocation6 + $0xe0] sm:$0xff] (%p498_p5)  ;;  %v3141_v42 = vld [vmem:[#allocation6 + $0xf0] sm:$0xff] (%p498_p5) }
 0x161   : > { %533 = vmatpush.msra.mxu2 (%p498_p5), %v2938_v10  ;;  %v3143_v43 = vld [vmem:[#allocation6 + $0xf8] sm:$0xff] (%p498_p5)  ;;  %v3145_v44 = vld [vmem:[#allocation6 + $0x100] sm:$0xff] (%p498_p5)  ;;  %v3147_v45 = vld [vmem:[#allocation6 + $0x108] sm:$0xff] (%p498_p5) }
 0x162   : >> { %v521_v58 = vrot.slane %v520_v57, 4  ;;  %v3149_v46 = vld [vmem:[#allocation6 + $0x110] sm:$0xff] (%p498_p5)  ;;  %v3151_v47 = vld [vmem:[#allocation6 + $0x118] sm:$0xff] (%p498_p5)  ;;  %v3153_v48 = vld [vmem:[#allocation6 + $0x120] sm:$0xff] (%p498_p5) }
 0x163   : > { %534 = vmatpush.msra.mxu2 (%p498_p5), %v2933_v9  ;;  %1745 = vmatpush.xpose.msk.msra.mxu3 (%p498_p5), %vm424_vm0, %v2948_v12  ;;  %v3085_v12 = vld [vmem:[#allocation6 + $0x10] sm:$0xff] (%p498_p5)  ;;  %v3155_v49 = vld [vmem:[#allocation6 + $0x128] sm:$0xff] (%p498_p5)  ;;  %v3159_v51 = vld [vmem:[#allocation6 + $0x138] sm:$0xff] (%p498_p5) }
 0x164   : >> { %v522_v59 = vadd.f32 %v521_v58, %v520_v57  ;;  %v3157_v50 = vld [vmem:[#allocation6 + $0x130] sm:$0xff] (%p498_p5)  ;;  %v3161_v52 = vld [vmem:[#allocation6 + $0x140] sm:$0xff] (%p498_p5)  ;;  %v3163_v53 = vld [vmem:[#allocation6 + $0x148] sm:$0xff] (%p498_p5) }
 0x165   : > { %535 = vmatpush.msra.mxu2 (%p498_p5), %v2928_v8  ;;  %v3165_v54 = vld [vmem:[#allocation6 + $0x150] sm:$0xff] (%p498_p5)  ;;  %v3167_v55 = vld [vmem:[#allocation6 + $0x158] sm:$0xff] (%p498_p5)  ;;  %v3169_v56 = vld [vmem:[#allocation6 + $0x160] sm:$0xff] (%p498_p5) }
 0x166   : >> { %v523_v60 = vrot.slane %v522_v59, 2  ;;  %v3171_v57 = vld [vmem:[#allocation6 + $0x168] sm:$0xff] (%p498_p5)  ;;  %v3173_v58 = vld [vmem:[#allocation6 + $0x170] sm:$0xff] (%p498_p5) }
 0x167   : > { %536 = vmatpush.msra.mxu2 (%p498_p5), %v2923_v7  ;;  %1746 = vmatpush.xpose.msk.msra.mxu3 (%p498_p5), %vm424_vm0, %v2943_v11 }
 0x168   : >> { %v524_v61 = vadd.f32 %v523_v60, %v522_v59  ;;  %v3175_v59 = vld [vmem:[#allocation6 + $0x178] sm:$0xff] (%p498_p5)  ;;  %v3180_v60 = vld [vmem:[%s3992_s2] sm:$0x7] (%p498_p5) }
 0x169   : > { %537 = vmatpush.msra.mxu2 (%p498_p5), %v2918_v6 }
 0x16a   : >> { %v525_v62 = vrot.slane %v524_v61, 1 }
 0x16b   : > { %538 = vmatpush.msra.mxu2 (%p498_p5), %v2913_v5  ;;  %1747 = vmatpush.xpose.msk.msra.mxu3 (%p498_p5), %vm424_vm0, %v2938_v10 }
 0x16c   : >> { %v526_v63 = vadd.f32 %v525_v62, %v524_v61  ;;  %500 = sbr.rel (!%p498_p5) target bundleno = 341 (0x155), region = 162  ;;  %v583_v61 = vld [vmem:[%s3995_s5] sm:$0x1] (%p498_p5) }
 0x16d   : > { %539 = vmatpush.msra.mxu2 (%p498_p5), %v2908_v4 }
 0x16e   : >> { %v527_v16 = vadd.f32 %v2603_v41, %v526_v63  }
 0x16f   : > { %540 = vmatpush.msra.mxu2 (%p498_p5), %v2903_v3  ;;  %1748 = vmatpush.xpose.msk.msra.mxu3 (%p498_p5), %vm424_vm0, %v2933_v9 }
 0x170   : >> { %v2602_v41 = vmov %v527_v16  }
 0x171   : > { %541 = vmatpush.msra.mxu2 %v2898_v2  ;;  %v3139_v41 = vld [vmem:[#allocation6 + $0xe8] sm:$0xff] }
 0x173   : > { %542 = vmatpush.msra.mxu2 %v2893_v1  ;;  %1749 = vmatpush.xpose.msk.msra.mxu3 %vm424_vm0, %v2928_v8 }
 0x175   : > { %543 = vmatpush.msra.mxu2 %v2888_v0 }
 0x176   : > { %544 = vmatmul.f32.vlgmr.msra.gmra.mxu2 %v527_v16  ;;  %v3190_v16 = vld [vmem:[%s3996_s6] sm:$0x1] }
 0x177   : > { %1750 = vmatpush.xpose.msk.msra.mxu3 %vm424_vm0, %v2923_v7 }
 0x17b   : > { %1751 = vmatpush.xpose.msk.msra.mxu3 %vm424_vm0, %v2918_v6 }
 0x17f   : > { %1752 = vmatpush.xpose.msk.msra.mxu3 %vm424_vm0, %v2913_v5 }
 0x183   : > { %1753 = vmatpush.xpose.msk.msra.mxu3 %vm424_vm0, %v2908_v4 }
 0x187   : > { %1754 = vmatpush.xpose.msk.msra.mxu3 %vm424_vm0, %v2903_v3 }
 0x18b   : > { %1755 = vmatpush.xpose.msk.msra.mxu3 %vm424_vm0, %v2898_v2 }
 0x18f   : > { %1756 = vmatpush.xpose.msk.msra.mxu3 %vm424_vm0, %v2893_v1  ;;  %v3081_v1 = vld [vmem:[#allocation6] sm:$0xff] }
 0x193   : > { %1757 = vmatpush.xpose.msk.msra.mxu3 %vm424_vm0, %v2888_v0  ;;  %v3083_v0 = vld [vmem:[#allocation6 + $0x8] sm:$0xff] }
 0x194   : > { %4015 = vst [vmem:[#allocation21_spill] sm:$0xff] %v3083_v0 }
 0x1f9   : > { %v545_v7 = vpop.f32.mrf.mxu2 }
 0x1fa   : > { %v548_v6 = vmul.f32 %v545_v7, %v3014_v37  ;;  %v3133_v37 = vld [vmem:[#allocation6 + $0xd0] sm:$0xff] }
 0x1fc   : > { %v549_v8 = vadd.f32 1e-05, %v548_v6 }
 0x1fe   : > { %2254 = vrsqrt.f32 %v549_v8  ;;  %vm556_vm3 = vweird.f32 %v549_v8 }
 0x204   : > { %v2255_v5 = vpop.eup %2254 }
 0x205   : > { %v551_v9 = vmul.f32 %v2255_v5, %v549_v8  ;;  %vm557_vm2 = vweird.f32 %v2255_v5 }
 0x206   : > { %vm558_vm4 = vmor %vm556_vm3, %vm557_vm2 }
 0x207   : > { %v552_v4 = vmul.f32 %v2255_v5, %v551_v9 }
 0x209   : > { %v553_v10 = vmul.f32 0.5, %v552_v4 }
 0x20b   : > { %v554_v11 = vsub.f32 1.5, %v553_v10 }
 0x20d   : > { %v555_v3 = vmul.f32 %v2255_v5, %v554_v11 }
 0x20f   : > { %v559_v2 = vsel %vm558_vm4, %v2255_v5, %v555_v3 }
 0x210   : > { %1758 = vmatmul.msk.f32.vlgmr.msra.gmra.mxu3 %vm424_vm0, %v559_v2 }
 0x293   : > { %v580_v62 = vpop.f32.mrf.mxu3 }
 0x294   : > { %v3185_v63 = vmul.f32 %v583_v61, %v580_v62 }
 0x296   : > { %v3194_v7 = vmul.f32 %v3185_v63, %v3018_v40 }
 0x297 LB: >> { %668 = vmatpush.msra.mxu0 %v3171_v57  ;;  %1823 = vmatpush.msra.mxu3 %v3171_v57  ;;  %s3234_s16 = sshll.u32 %s2611_s11, 5  ;;  %v649_v40 = vperm.slane %v3185_v63, 0  ;;  %v4017_v0 = vld [vmem:[#allocation21_spill] sm:$0xff]  ;;  %vm756_vm5 = vcmask 523264   ;;  %s2724_s24 = smov 64   ;;  %s2611_s11 = sphi %s3198_s11, %s642_s11  }
 0x298   : >> { %697 = vmatpush.msra.mxu1 %v3173_v58  ;;  %726 = vmatpush.msra.mxu2 %v3175_v59  ;;  %s3244_s20 = scalar_lea.vmem %s2880_s26, %s3234_s16  ;;  %v4016_v6 = vsub.f32 %v3190_v16, %v3194_v7  ;;  %s3285_s23 = scalar_lea.vmem [#allocation2], %s3234_s16 }
 0x299   : >> { %669 = vmatpush.msra.mxu0 %v3165_v54  ;;  %1824 = vmatpush.msra.mxu3 %v3165_v54  ;;  %v645_v8 = vld [vmem:[%s3244_s20] sm:$0xff]  ;;  %v646_v5 = vld [vmem:[%s3244_s20 + $0x8] sm:$0xff]  ;;  %v647_v2 = vld [vmem:[%s3244_s20 + $0x10] sm:$0xff]  ;;  %s3291_s18 = scalar_lea.vmem [#allocation3], %s3234_s16  ;;  %s3301_s21 = scalar_lea.vmem [#allocation4], %s3234_s16 }
 0x29a   : >> { %698 = vmatpush.msra.mxu1 %v3167_v55  ;;  %727 = vmatpush.msra.mxu2 %v3169_v56  ;;  %v650_v9 = vmul.f32 %v649_v40, %v645_v8  ;;  %v655_v4 = vperm.slane %v4016_v6, 0  ;;  %v651_v10 = vmul.f32 %v649_v40, %v646_v5  ;;  %v652_v61 = vmul.f32 %v649_v40, %v647_v2  ;;  %v648_v8 = vld [vmem:[%s3244_s20 + $0x18] sm:$0xff]  ;;  %s642_s11 = sadd.s32 1, %s2611_s11  }
 0x29b   : >> { %670 = vmatpush.msra.mxu0 %v3159_v51  ;;  %1825 = vmatpush.msra.mxu3 %v3159_v51  ;;  %v653_v5 = vmul.f32 %v649_v40, %v648_v8  ;;  %v663_v2 = vperm.slane %v3180_v60, 1  ;;  %p639_p6 = scmp.ge.s32.totalorder %s642_s11, 2  }
 0x29c   : >> { %699 = vmatpush.msra.mxu1 %v3161_v52  ;;  %728 = vmatpush.msra.mxu2 %v3163_v53  ;;  %v657_v11 = vadd.f32 %v655_v4, %v650_v9  ;;  %v658_v3 = vadd.f32 %v655_v4, %v651_v10  ;;  %v659_v62 = vadd.f32 %v655_v4, %v652_v61  ;;  %v662_v10 = vperm.slane %v3180_v60, 0 }
 0x29d   : >> { %671 = vmatpush.msra.mxu0 %v3153_v48  ;;  %1826 = vmatpush.msra.mxu3 %v3153_v48  ;;  %v660_v9 = vadd.f32 %v655_v4, %v653_v5 }
 0x29e   : >> { %700 = vmatpush.msra.mxu1 %v3155_v49  ;;  %729 = vmatpush.msra.mxu2 %v3157_v50 }
 0x29f   : >> { %672 = vmatpush.msra.mxu0 %v3147_v45  ;;  %1827 = vmatpush.msra.mxu3 %v3147_v45 }
 0x2a0   : >> { %701 = vmatpush.msra.mxu1 %v3149_v46  ;;  %730 = vmatpush.msra.mxu2 %v3151_v47 }
 0x2a1   : >> { %673 = vmatpush.msra.mxu0 %v3141_v42  ;;  %1828 = vmatpush.msra.mxu3 %v3141_v42 }
 0x2a2   : >> { %702 = vmatpush.msra.mxu1 %v3143_v43  ;;  %731 = vmatpush.msra.mxu2 %v3145_v44 }
 0x2a3   : >> { %674 = vmatpush.msra.mxu0 %v3135_v38  ;;  %1829 = vmatpush.msra.mxu3 %v3135_v38 }
 0x2a4   : >> { %703 = vmatpush.msra.mxu1 %v3137_v39  ;;  %732 = vmatpush.msra.mxu2 %v3139_v41 }
 0x2a5   : >> { %675 = vmatpush.msra.mxu0 %v3129_v35  ;;  %1830 = vmatpush.msra.mxu3 %v3129_v35 }
 0x2a6   : >> { %704 = vmatpush.msra.mxu1 %v3131_v36  ;;  %733 = vmatpush.msra.mxu2 %v3133_v37 }
 0x2a7   : >> { %676 = vmatpush.msra.mxu0 %v3123_v32  ;;  %1831 = vmatpush.msra.mxu3 %v3123_v32 }
 0x2a8   : >> { %705 = vmatpush.msra.mxu1 %v3125_v33  ;;  %734 = vmatpush.msra.mxu2 %v3127_v34 }
 0x2a9   : >> { %677 = vmatpush.msra.mxu0 %v3117_v29  ;;  %1832 = vmatpush.msra.mxu3 %v3117_v29 }
 0x2aa   : >> { %706 = vmatpush.msra.mxu1 %v3119_v30  ;;  %735 = vmatpush.msra.mxu2 %v3121_v31 }
 0x2ab   : >> { %678 = vmatpush.msra.mxu0 %v3111_v26  ;;  %1833 = vmatpush.msra.mxu3 %v3111_v26 }
 0x2ac   : >> { %707 = vmatpush.msra.mxu1 %v3113_v27  ;;  %736 = vmatpush.msra.mxu2 %v3115_v28 }
 0x2ad   : >> { %679 = vmatpush.msra.mxu0 %v3105_v23  ;;  %1834 = vmatpush.msra.mxu3 %v3105_v23 }
 0x2ae   : >> { %708 = vmatpush.msra.mxu1 %v3107_v24  ;;  %737 = vmatpush.msra.mxu2 %v3109_v25 }
 0x2af   : >> { %680 = vmatpush.msra.mxu0 %v3099_v20  ;;  %1835 = vmatpush.msra.mxu3 %v3099_v20 }
 0x2b0   : >> { %709 = vmatpush.msra.mxu1 %v3101_v21  ;;  %738 = vmatpush.msra.mxu2 %v3103_v22 }
 0x2b1   : >> { %681 = vmatpush.msra.mxu0 %v3093_v17  ;;  %1836 = vmatpush.msra.mxu3 %v3093_v17 }
 0x2b2   : >> { %710 = vmatpush.msra.mxu1 %v3095_v18  ;;  %739 = vmatpush.msra.mxu2 %v3097_v19 }
 0x2b3   : >> { %682 = vmatpush.msra.mxu0 %v3087_v13  ;;  %1837 = vmatpush.msra.mxu3 %v3087_v13 }
 0x2b4   : >> { %711 = vmatpush.msra.mxu1 %v3089_v14  ;;  %740 = vmatpush.msra.mxu2 %v3091_v15 }
 0x2b5   : >> { %683 = vmatpush.msra.mxu0 %v3081_v1  ;;  %1838 = vmatpush.msra.mxu3 %v3081_v1 }
 0x2b6   : >> { %712 = vmatpush.msra.mxu1 %v4017_v0  ;;  %684 = vmatmul.f32.vlgmr.msra.gmra.mxu0 %v657_v11 }
 0x2b7   : >> { %687 = vmatmul.f32.vlgmr.msra.gmra.mxu3 %v658_v3  ;;  %713 = vmatmul.f32.vlgmr.msra.gmra.mxu1 %v657_v11 }
 0x2b8   : >> { %741 = vmatpush.msra.mxu2 %v3085_v12 }
 0x2b9   : >> { %742 = vmatmul.f32.vlgmr.msra.gmra.mxu2 %v657_v11 }
 0x2bf   : >> { %690 = vmatmul.f32.gmra.mxu3 %v659_v62  ;;  %716 = vmatmul.f32.gmra.mxu1 %v658_v3 }
 0x2c1   : >> { %745 = vmatmul.f32.gmra.mxu2 %v658_v3 }
 0x2c7   : >> { %693 = vmatmul.f32.gmra.mxu3 %v660_v9  ;;  %719 = vmatmul.f32.gmra.mxu1 %v659_v62 }
 0x2c9   : >> { %748 = vmatmul.f32.gmra.mxu2 %v659_v62 }
 0x2cf   : >> { %722 = vmatmul.f32.gmra.mxu1 %v660_v9 }
 0x2d1   : >> { %751 = vmatmul.f32.gmra.mxu2 %v660_v9 }
 0x333   : >> { %v685_v6 = vpop.f32.mrf.mxu0 }
 0x334   : >> { %v686_v11 = vadd.f32 %v685_v6, %v662_v10  ;;  %v714_v61 = vpop.f32.mrf.mxu1  ;;  %v664_v6 = vperm.slane %v3180_v60, 2 }
 0x335   : >> { %v715_v0 = vadd.f32 %v714_v61, %v663_v2 }
 0x336   : >> { %757 = vst.msk [vmem:[%s3285_s23] sm:$0xff] %vm756_vm5, %v686_v11  ;;  %775 = vrot.lane.b32.xlu0 %v686_v11, %s2724_s24 }
 0x337   : >> { %762 = vst.msk [vmem:[%s3291_s18] sm:$0xff] %vm756_vm5, %v715_v0  ;;  %797 = vrot.lane.b32.xlu2 %v715_v0, %s2724_s24 }
 0x33a   : >> { %v688_v40 = vpop.f32.mrf.mxu3 }
 0x33b   : >> { %v689_v4 = vadd.f32 %v688_v40, %v662_v10 }
 0x33c   : >> { %v743_v3 = vpop.f32.mrf.mxu2  ;;  %v717_v62 = vpop.f32.mrf.mxu1 }
 0x33d   : >> { %758 = vst.msk [vmem:[%s3285_s23 + $0x8] sm:$0xff] %vm756_vm5, %v689_v4  ;;  %v744_v8 = vadd.f32 %v743_v3, %v664_v6  ;;  %v718_v5 = vadd.f32 %v717_v62, %v663_v2 }
 0x33e   : >> { %777 = vrot.lane.b32.xlu0 %v689_v4, %s2724_s24 }
 0x33f   : >> { %767 = vst.msk [vmem:[%s3301_s21] sm:$0xff] %vm756_vm5, %v744_v8  ;;  %818 = vrot.lane.b32.xlu2 %v744_v8, %s2724_s24 }
 0x340   : >> { %763 = vst.msk [vmem:[%s3291_s18 + $0x8] sm:$0xff] %vm756_vm5, %v718_v5 }
 0x342   : >> { %v691_v0 = vpop.f32.mrf.mxu3 }
 0x343   : >> { %v692_v9 = vadd.f32 %v691_v0, %v662_v10 }
 0x344   : >> { %v720_v11 = vpop.f32.mrf.mxu1  ;;  %v746_v61 = vpop.f32.mrf.mxu2 }
 0x345   : >> { %759 = vst.msk [vmem:[%s3285_s23 + $0x10] sm:$0xff] %vm756_vm5, %v692_v9  ;;  %779 = vrot.lane.b32.xlu1 %v692_v9, %s2724_s24  ;;  %v721_v40 = vadd.f32 %v720_v11, %v663_v2  ;;  %v747_v4 = vadd.f32 %v746_v61, %v664_v6 }
 0x347   : >> { %799 = vrot.lane.b32.xlu2 %v718_v5, %s2724_s24  ;;  %764 = vst.msk [vmem:[%s3291_s18 + $0x10] sm:$0xff] %vm756_vm5, %v721_v40  ;;  %801 = vrot.lane.b32.xlu0 %v721_v40, %s2724_s24 }
 0x348   : >> { %768 = vst.msk [vmem:[%s3301_s21 + $0x8] sm:$0xff] %vm756_vm5, %v747_v4 }
 0x34a   : >> { %v694_v3 = vpop.f32.mrf.mxu3 }
 0x34b   : >> { %v695_v62 = vadd.f32 %v694_v3, %v662_v10 }
 0x34c   : >> { %v723_v8 = vpop.f32.mrf.mxu1  ;;  %v749_v0 = vpop.f32.mrf.mxu2 }
 0x34d   : >> { %760 = vst.msk [vmem:[%s3285_s23 + $0x18] sm:$0xff] %vm756_vm5, %v695_v62  ;;  %781 = vrot.lane.b32.xlu1 %v695_v62, %s2724_s24  ;;  %v724_v9 = vadd.f32 %v723_v8, %v663_v2  ;;  %v750_v5 = vadd.f32 %v749_v0, %v664_v6 }
 0x34f   : >> { %765 = vst.msk [vmem:[%s3291_s18 + $0x18] sm:$0xff] %vm756_vm5, %v724_v9  ;;  %820 = vrot.lane.b32.xlu0 %v747_v4, %s2724_s24 }
 0x350   : >> { %769 = vst.msk [vmem:[%s3301_s21 + $0x10] sm:$0xff] %vm756_vm5, %v750_v5 }
 0x354   : >> { %v752_v10 = vpop.f32.mrf.mxu2 }
 0x355   : >> { %803 = vrot.lane.b32.xlu1 %v724_v9, %s2724_s24  ;;  %v753_v11 = vadd.f32 %v752_v10, %v664_v6 }
 0x357   : >> { %770 = vst.msk [vmem:[%s3301_s21 + $0x18] sm:$0xff] %vm756_vm5, %v753_v11  ;;  %824 = vrot.lane.b32.xlu2 %v753_v11, %s2724_s24 }
 0x35d   : >> { %822 = vrot.lane.b32.xlu1 %v750_v5, %s2724_s24 }
 0x391   : >> { %v798_v2 = vpop.permute.xlu2 %797 }
 0x392   : >> { %1766 = vst.msk [vmem:[%s3291_s18 + $0x40] sm:$0xff] %vm756_vm5, %v798_v2 }
 0x399   : >> { %v819_v61 = vpop.permute.xlu2 %818 }
 0x39a   : >> { %1771 = vst.msk [vmem:[%s3301_s21 + $0x40] sm:$0xff] %vm756_vm5, %v819_v61 }
 0x3a1   : >> { %v800_v40 = vpop.permute.xlu2 %799 }
 0x3a2   : >> { %1767 = vst.msk [vmem:[%s3291_s18 + $0x48] sm:$0xff] %vm756_vm5, %v800_v40 }
 0x3a8   : >> { %v776_v6 = vpop.permute.xlu0 %775 }
 0x3a9   : >> { %1761 = vst.msk [vmem:[%s3285_s23 + $0x40] sm:$0xff] %vm756_vm5, %v776_v6 }
 0x3b0   : >> { %v778_v4 = vpop.permute.xlu0 %777 }
 0x3b1   : >> { %1762 = vst.msk [vmem:[%s3285_s23 + $0x48] sm:$0xff] %vm756_vm5, %v778_v4  ;;  %v825_v3 = vpop.permute.xlu2 %824 }
 0x3b2   : >> { %1774 = vst.msk [vmem:[%s3301_s21 + $0x58] sm:$0xff] %vm756_vm5, %v825_v3 }
 0x3b7   : >> { %v780_v62 = vpop.permute.xlu1 %779 }
 0x3b8   : >> { %1763 = vst.msk [vmem:[%s3285_s23 + $0x50] sm:$0xff] %vm756_vm5, %v780_v62 }
 0x3b9   : >> { %v802_v8 = vpop.permute.xlu0 %801 }
 0x3ba   : >> { %1768 = vst.msk [vmem:[%s3291_s18 + $0x50] sm:$0xff] %vm756_vm5, %v802_v8 }
 0x3bf   : >> { %v782_v0 = vpop.permute.xlu1 %781 }
 0x3c0   : >> { %1764 = vst.msk [vmem:[%s3285_s23 + $0x58] sm:$0xff] %vm756_vm5, %v782_v0 }
 0x3c1   : >> { %v821_v9 = vpop.permute.xlu0 %820 }
 0x3c2   : >> { %1772 = vst.msk [vmem:[%s3301_s21 + $0x48] sm:$0xff] %vm756_vm5, %v821_v9 }
 0x3c7   : >> { %v804_v5 = vpop.permute.xlu1 %803 }
 0x3c8   : >> { %1769 = vst.msk [vmem:[%s3291_s18 + $0x58] sm:$0xff] %vm756_vm5, %v804_v5 }
 0x3cc   : > { %641 = sbr.rel (!%p639_p6) target bundleno = 663 (0x297), region = 173 }
 0x3cf   : >> { %v823_v10 = vpop.permute.xlu1 %822 }
 0x3d0   : >> { %1773 = vst.msk [vmem:[%s3301_s21 + $0x50] sm:$0xff] %vm756_vm5, %v823_v10 }
 0x3d1 PF: > { %s1775_s22 = sshll.u32 %s2575_s30, 5  ;;  %v3374_v6 = vmov 0.0   ;;  %v3376_v1 = vmov 0.0   ;;  %v3378_v12 = vmov 0.0   ;;  %v3380_v13 = vmov 0.0   ;;  %s3398_s25 = smov 0  }
 0x3d2   : > { %s3360_s13 = scalar_lea.vmem [#allocation2], %s1775_s22  ;;  %v3382_v14 = vmov 0.0   ;;  %v3384_v15 = vmov 0.0   ;;  %v3386_v17 = vmov 0.0   ;;  %v3388_v18 = vmov 0.0  }
 0x3d3   : > { %v3363_v11 = vld [vmem:[%s3360_s13] sm:$0xff]  ;;  %v3366_v2 = vld [vmem:[%s3360_s13 + $0x8] sm:$0xff]  ;;  %v3369_v61 = vld [vmem:[%s3360_s13 + $0x10] sm:$0xff]  ;;  %v3390_v19 = vmov -1e+30  }
 0x3d4   : > { %v3372_v40 = vld [vmem:[%s3360_s13 + $0x18] sm:$0xff]  ;;  %v3392_v20 = vmov -1e+30   ;;  %v3394_v21 = vmov -1e+30  }
 0x3d5   : > { %v3396_v22 = vmov -1e+30  }
 0x3d6 LB: >> { %s1776_s17 = sshll.u32 %s2663_s25, 5  ;;  %vm870_vm6 = vcmask 523264   ;;  %vm924_vm7 = vcmask 261120   ;;  %s846_s25 = sadd.s32 1, %s2663_s25   ;;  %s2663_s25 = sphi %s3398_s25, %s846_s25   ;;  %v2659_v22 = vphi %v3396_v22, %v4038_v22   ;;  %v2655_v21 = vphi %v3394_v21, %v4037_v21   ;;  %v2651_v20 = vphi %v3392_v20, %v4036_v20   ;;  %v2647_v19 = vphi %v3390_v19, %v4035_v19   ;;  %v2643_v18 = vphi %v3388_v18, %v4034_v18   ;;  %v2639_v17 = vphi %v3386_v17, %v4033_v17   ;;  %v2635_v15 = vphi %v3384_v15, %v4032_v15   ;;  %v2631_v14 = vphi %v3382_v14, %v4031_v14   ;;  %v2627_v13 = vphi %v3380_v13, %v4030_v13   ;;  %v2623_v12 = vphi %v3378_v12, %v4029_v12   ;;  %v2619_v1 = vphi %v3376_v1, %v4028_v1   ;;  %v2615_v6 = vphi %v3374_v6, %v4027_v6  }
 0x3d7   : >> { %s860_s10 = scalar_lea.vmem [#allocation3], %s1776_s17  ;;  %s865_s11 = scalar_lea.vmem [#allocation4], %s1776_s17 }
 0x3d8   : >> { %v864_v23 = vld [vmem:[%s860_s10 + $0x18] sm:$0xff]  ;;  %v863_v24 = vld [vmem:[%s860_s10 + $0x10] sm:$0xff]  ;;  %v862_v25 = vld [vmem:[%s860_s10 + $0x8] sm:$0xff]  ;;  %p3521_p7 = scmp.ge.s32.totalorder %s846_s25, 2  }
 0x3d9   : >> { %1777 = vmatpush.xpose.msk.msra.mxu0 %vm870_vm6, %v864_v23  ;;  %1839 = vmatpush.xpose.msk.msra.mxu2 %vm870_vm6, %v864_v23  ;;  %v861_v26 = vld [vmem:[%s860_s10] sm:$0xff]  ;;  %v869_v35 = vld [vmem:[%s865_s11 + $0x18] sm:$0xff]  ;;  %v868_v36 = vld [vmem:[%s865_s11 + $0x10] sm:$0xff]  ;;  %s3661_s20 = smov (%p3521_p7), 0  }
 0x3da   : >> { %1843 = vmatpush.msra.mxu3 %v869_v35  ;;  %1013 = vmatpush.msra.mxu1 %v869_v35  ;;  %v867_v37 = vld [vmem:[%s865_s11 + $0x8] sm:$0xff]  ;;  %v866_v38 = vld [vmem:[%s865_s11] sm:$0xff] }
 0x3dc   : >> { %1844 = vmatpush.msra.mxu3 %v868_v36  ;;  %1014 = vmatpush.msra.mxu1 %v868_v36 }
 0x3dd   : >> { %1778 = vmatpush.xpose.msk.msra.mxu0 %vm870_vm6, %v863_v24  ;;  %1840 = vmatpush.xpose.msk.msra.mxu2 %vm870_vm6, %v863_v24 }
 0x3de   : >> { %1845 = vmatpush.msra.mxu3 %v867_v37  ;;  %1015 = vmatpush.msra.mxu1 %v867_v37 }
 0x3e0   : >> { %1846 = vmatpush.msra.mxu3 %v866_v38  ;;  %1016 = vmatpush.msra.mxu1 %v866_v38 }
 0x3e1   : >> { %1779 = vmatpush.xpose.msk.msra.mxu0 %vm870_vm6, %v862_v25  ;;  %1841 = vmatpush.xpose.msk.msra.mxu2 %vm870_vm6, %v862_v25 }
 0x3e5   : >> { %1780 = vmatpush.xpose.msk.msra.mxu0 %vm870_vm6, %v861_v26  ;;  %1842 = vmatpush.xpose.msk.msra.mxu2 %vm870_vm6, %v861_v26 }
 0x3e8   : >> { %1781 = vmatmul.msk.f32.vlgmr.msra.gmra.mxu0 %vm870_vm6, %v3363_v11  ;;  %1783 = vmatmul.msk.f32.vlgmr.msra.gmra.mxu2 %vm870_vm6, %v3369_v61 }
 0x3f0   : >> { %1782 = vmatmul.msk.f32.gmra.mxu0 %vm870_vm6, %v3366_v2  ;;  %1784 = vmatmul.msk.f32.gmra.mxu2 %vm870_vm6, %v3372_v40 }
 0x465   : >> { %v912_v27 = vpop.f32.mrf.mxu0 }
 0x466   : >> { %v925_v34 = vsel %vm924_vm7, %v912_v27, -inf }
 0x46b   : >> { %v918_v28 = vpop.f32.mrf.mxu2 }
 0x46c   : >> { %v931_v33 = vsel %vm924_vm7, %v918_v28, -inf }
 0x46d   : >> { %v915_v29 = vpop.f32.mrf.mxu0 }
 0x46e   : >> { %v928_v30 = vsel %vm924_vm7, %v915_v29, -inf }
 0x46f   : >> { %929 = vmax.xlane.f32.xlu0 %v928_v30 }
 0x473   : >> { %v921_v31 = vpop.f32.mrf.mxu2 }
 0x474   : >> { %v934_v32 = vsel %vm924_vm7, %v921_v31, -inf }
 0x475   : >> { %935 = vmax.xlane.f32.xlu1 %v934_v32 }
 0x477   : >> { %932 = vmax.xlane.f32.xlu0 %v931_v33 }
 0x47d   : >> { %926 = vmax.xlane.f32.xlu1 %v925_v34 }
 0x4e2   : >> { %v930_v39 = vpop.xlane.xlu0 %929 }
 0x4e3   : >> { %v3465_v41 = vmax.f32 %v2655_v21, %v930_v39  }
 0x4e5   : >> { %v942_v42 = vsub.f32 %v2655_v21, %v3465_v41  ;;  %v954_v43 = vsub.f32 %v915_v29, %v3465_v41 }
 0x4e7   : >> { %v959_v44 = vmul.f32 1.442695, %v954_v43  ;;  %v947_v10 = vmul.f32 1.442695, %v942_v42 }
 0x4e8   : >> { %v936_v45 = vpop.xlane.xlu1 %935 }
 0x4e9   : >> { %v3471_v46 = vmax.f32 %v2647_v19, %v936_v45   ;;  %2256 = vpow2.f32 %v959_v44 }
 0x4ea   : >> { %v933_v47 = vpop.xlane.xlu0 %932 }
 0x4eb   : >> { %v944_v48 = vsub.f32 %v2647_v19, %v3471_v46  ;;  %v956_v49 = vsub.f32 %v921_v31, %v3471_v46  ;;  %v3477_v50 = vmax.f32 %v2651_v20, %v933_v47   ;;  %v3570_v47 = vld [vmem:[%s3360_s13 + $0x48] sm:$0xff] (%p3521_p7) }
 0x4ed   : >> { %v963_v51 = vmul.f32 1.442695, %v956_v49  ;;  %v943_v52 = vsub.f32 %v2651_v20, %v3477_v50  ;;  %v955_v53 = vsub.f32 %v918_v28, %v3477_v50  ;;  %v951_v0 = vmul.f32 1.442695, %v944_v48  ;;  %v3573_v48 = vld [vmem:[%s3360_s13 + $0x50] sm:$0xff] (%p3521_p7) }
 0x4ef   : >> { %v961_v54 = vmul.f32 1.442695, %v955_v53  ;;  %v2257_v55 = vpop.eup %2256  ;;  %2258 = vpow2.f32 %v963_v51  ;;  %v949_v9 = vmul.f32 1.442695, %v943_v52 }
 0x4f0   : >> { %v927_v56 = vpop.xlane.xlu1 %926  ;;  %1786 = vmatmul.msk.f32.vlgmr.msra.gmra.mxu3 %vm924_vm7, %v2257_v55  ;;  %v972_v8 = vsel %vm924_vm7, %v2257_v55, 0.0 }
 0x4f1   : >> { %v3483_v57 = vmax.f32 %v2659_v22, %v927_v56   ;;  %2260 = vpow2.f32 %v961_v54 }
 0x4f3   : >> { %v941_v58 = vsub.f32 %v2659_v22, %v3483_v57  ;;  %v953_v59 = vsub.f32 %v912_v27, %v3483_v57 }
 0x4f5   : >> { %v957_v60 = vmul.f32 1.442695, %v953_v59  ;;  %v2259_v63 = vpop.eup %2258  ;;  %v945_v5 = vmul.f32 1.442695, %v941_v58 }
 0x4f6   : >> { %v978_v16 = vsel %vm924_vm7, %v2259_v63, 0.0 }
 0x4f7   : >> { %v2261_v7 = vpop.eup %2260  ;;  %2262 = vpow2.f32 %v957_v60  ;;  %979 = vadd.xlane.f32.xlu1 %v978_v16 }
 0x4f8   : >> { %1787 = vmatmul.msk.f32.gmra.mxu3 %vm924_vm7, %v2261_v7  ;;  %v975_v4 = vsel %vm924_vm7, %v2261_v7, 0.0  ;;  %2264 = vpow2.f32 %v951_v0 }
 0x4f9   : >> { %976 = vadd.xlane.f32.xlu0 %v975_v4  ;;  %2266 = vpow2.f32 %v949_v9 }
 0x4fa   : >> { %2268 = vpow2.f32 %v945_v5 }
 0x4fb   : >> { %2270 = vpow2.f32 %v947_v10 }
 0x4fd   : >> { %v2263_v3 = vpop.eup %2262 }
 0x4fe   : >> { %1785 = vmatmul.msk.f32.vlgmr.msra.gmra.mxu1 %vm924_vm7, %v2263_v3  ;;  %v969_v62 = vsel %vm924_vm7, %v2263_v3, 0.0  ;;  %v2265_v19 = vpop.eup %2264 }
 0x4ff   : >> { %970 = vadd.xlane.f32.xlu2 %v969_v62  ;;  %v2267_v20 = vpop.eup %2266  ;;  %v968_v21 = vmul.f32 %v2631_v14, %v2265_v19 }
 0x500   : >> { %1788 = vmatmul.msk.f32.gmra.mxu3 %vm924_vm7, %v2259_v63  ;;  %v967_v24 = vmul.f32 %v2635_v15, %v2267_v20  ;;  %v2269_v27 = vpop.eup %2268  ;;  %v987_v37 = vmul.f32 %v2619_v1, %v2267_v20  ;;  %v4036_v20 = vmov %v3477_v50 }
 0x501   : >> { %v2271_v28 = vpop.eup %2270  ;;  %v965_v29 = vmul.f32 %v2643_v18, %v2269_v27  ;;  %v985_v36 = vmul.f32 %v2627_v13, %v2269_v27 }
 0x502   : >> { %v986_v31 = vmul.f32 %v2623_v12, %v2271_v28  ;;  %v966_v35 = vmul.f32 %v2639_v17, %v2271_v28 }
 0x507   : >> { %973 = vadd.xlane.f32.xlu2 %v972_v8 }
 0x56a   : >> { %v980_v22 = vpop.xlane.xlu1 %979 }
 0x56b   : >> { %v3497_v14 = vadd.f32 %v980_v22, %v968_v21   ;;  %v4037_v21 = vmov %v3465_v41  ;;  %v4038_v22 = vmov %v3483_v57  ;;  %v3577_v41 = vld [vmem:[%s3360_s13 + $0x58] sm:$0xff] (%p3521_p7) }
 0x56c   : >> { %v977_v25 = vpop.xlane.xlu0 %976 }
 0x56d   : >> { %v4018_v23 = vmov %v3497_v14  ;;  %v3500_v15 = vadd.f32 %v977_v25, %v967_v24  }
 0x56e   : > { %vm1084_vm0 = vweird.f32 (%p3521_p7), %v4018_v23  ;;  %v1088_v7 = vand.u32 (%p3521_p7), 2147483647, %v4018_v23  ;;  %v1090_v4 = vand.u32 (%p3521_p7), 2147483648, %v4018_v23 }
 0x56f   : >> { %v4019_v26 = vmov %v3500_v15 }
 0x570   : > { %vm1069_vm11 = vweird.f32 (%p3521_p7), %v4019_v26  ;;  %v1073_v56 = vand.u32 (%p3521_p7), 2147483647, %v4019_v26  ;;  %v1075_v57 = vand.u32 (%p3521_p7), 2147483648, %v4019_v26  ;;  %v1091_v25 = vor.u32 (%p3521_p7), 1.1754944e-38, %v1090_v4 }
 0x572   : >> { %v971_v30 = vpop.xlane.xlu2 %970  ;;  %v1076_v10 = vor.u32 (%p3521_p7), 1.1754944e-38, %v1075_v57  ;;  %vm1074_vm5 = vcmp.eq.f32.partialorder (%p3521_p7), %v1073_v56, 8.507059e+37 }
 0x573   : >> { %v3504_v18 = vadd.f32 %v971_v30, %v965_v29   ;;  %v1021_v33 = vpop.f32.mrf.mxu3 }
 0x574   : >> { %v3506_v12 = vadd.f32 %v1021_v33, %v986_v31  }
 0x575   : >> { %v4020_v32 = vmov %v3504_v18  ;;  %v988_v18 = vmul.f32 %v2615_v6, %v2265_v19  ;;  %v4035_v19 = vmov %v3471_v46  ;;  %v3567_v46 = vld [vmem:[%s3360_s13 + $0x40] sm:$0xff] (%p3521_p7) }
 0x576   : >> { %v4021_v34 = vmov %v3506_v12  ;;  %2272 = vrcp.f32 (%p3521_p7), %v4020_v32  ;;  %v1043_v49 = vand.u32 (%p3521_p7), 2147483647, %v4020_v32  ;;  %v1045_v11 = vand.u32 (%p3521_p7), 2147483648, %v4020_v32 }
 0x577   : >> { %v4029_v12 = vmov %v4021_v34  ;;  %vm1039_vm8 = vweird.f32 (%p3521_p7), %v4020_v32 }
 0x578   : > { %vm3588_vm10 = vcmp.eq.f32.partialorder (%p3521_p7), %v1043_v49, 8.507059e+37 }
 0x57a   : >> { %v974_v14 = vpop.xlane.xlu2 %973 }
 0x57b   : >> { %v3511_v17 = vadd.f32 %v974_v14, %v966_v35   ;;  %v1018_v15 = vpop.f32.mrf.mxu1  ;;  %v1024_v39 = vpop.f32.mrf.mxu3  ;;  %v4031_v14 = vmov %v4018_v23 }
 0x57c   : >> { %v3513_v13 = vadd.f32 %v1018_v15, %v985_v36   ;;  %v3515_v1 = vadd.f32 %v1024_v39, %v987_v37   ;;  %v4032_v15 = vmov %v4019_v26  ;;  %v2273_v61 = vpop.eup (%p3521_p7), %2272  ;;  %v3637_v14 = vmov (%p3521_p7), 0.0  }
 0x57d   : >> { %v4022_v38 = vmov %v3511_v17  ;;  %vm1040_vm12 = vweird.f32 (%p3521_p7), %v2273_v61  ;;  %v3639_v36 = vmov (%p3521_p7), 0.0   ;;  %v3643_v37 = vmov (%p3521_p7), 0.0  }
 0x57e   : >> { %v4023_v42 = vmov %v3513_v13  ;;  %v4024_v43 = vmov %v3515_v1  ;;  %v4033_v17 = vmov %v4022_v38  ;;  %2274 = vrcp.f32 (%p3521_p7), %v4022_v38  ;;  %vm3600_vm15 = vmor (%p3521_p7), %vm1039_vm8, %vm1040_vm12 }
 0x57f   : >> { %v4028_v1 = vmov %v4024_v43  ;;  %v4030_v13 = vmov %v4023_v42  ;;  %2276 = vrcp.f32 (%p3521_p7), %v4019_v26  ;;  %v1060_v2 = vand.u32 (%p3521_p7), 2147483648, %v4022_v38 }
 0x580   : > { %2278 = vrcp.f32 (%p3521_p7), %v4018_v23  ;;  %vm1054_vm9 = vweird.f32 (%p3521_p7), %v4022_v38  ;;  %v1058_v1 = vand.u32 (%p3521_p7), 2147483647, %v4022_v38  ;;  %v1046_v17 = vor.u32 (%p3521_p7), 1.1754944e-38, %v1045_v11 }
 0x581   : > { %v1061_v52 = vor.u32 (%p3521_p7), 1.1754944e-38, %v1060_v2  ;;  %v3647_v15 = vmov (%p3521_p7), 0.0   ;;  %v3649_v39 = vmov (%p3521_p7), 0.0  }
 0x582   : > { %vm1059_vm3 = vcmp.eq.f32.partialorder (%p3521_p7), %v1058_v1, 8.507059e+37 }
 0x583   : >> { %v1027_v44 = vpop.f32.mrf.mxu3  ;;  %845 = sbr.rel (!%p3521_p7) target bundleno = 982 (0x3d6), region = 184 }
 0x584   : >> { %v3518_v6 = vadd.f32 %v1027_v44, %v988_v18   ;;  %v4034_v18 = vmov %v4020_v32  ;;  %v2275_v40 = vpop.eup (%p3521_p7), %2274  ;;  %v3657_v44 = vmov (%p3521_p7), -1e+30  }
 0x585   : > { %v2277_v12 = vpop.eup (%p3521_p7), %2276  ;;  %v1050_v50 = vmul.f32 (%p3521_p7), %v2275_v40, %v4022_v38  ;;  %vm1055_vm13 = vweird.f32 (%p3521_p7), %v2275_v40  ;;  %v3645_v38 = vmov (%p3521_p7), 0.0   ;;  %v3655_v18 = vmov (%p3521_p7), -1e+30  }
 0x586   : >> { %v4025_v45 = vmov %v3518_v6  ;;  %v1065_v53 = vmul.f32 (%p3521_p7), %v2277_v12, %v4019_v26  ;;  %v2279_v54 = vpop.eup (%p3521_p7), %2278  ;;  %vm1070_vm14 = vweird.f32 (%p3521_p7), %v2277_v12  ;;  %vm3609_vm1 = vmor (%p3521_p7), %vm1054_vm9, %vm1055_vm13  ;;  %vm1089_vm9 = vcmp.eq.f32.partialorder (%p3521_p7), %v1088_v7, 8.507059e+37 }
 0x587   : >> { %v4027_v6 = vmov %v4025_v45  ;;  %v1051_v55 = vsub.f32 (%p3521_p7), 1.0, %v1050_v50  ;;  %v1080_v60 = vmul.f32 (%p3521_p7), %v2279_v54, %v4018_v23  ;;  %vm1085_vm2 = vweird.f32 (%p3521_p7), %v2279_v54  ;;  %vm3615_vm4 = vmor (%p3521_p7), %vm1069_vm11, %vm1070_vm14 }
 0x588   : > { %v1035_v6 = vmul.f32 %v2273_v61, %v4020_v32  ;;  %v1066_v59 = vsub.f32 1.0, %v1065_v53  ;;  %vm1086_vm8 = vmor %vm1084_vm0, %vm1085_vm2 }
 0x589   : > { %v1052_v16 = vmul.f32 %v2275_v40, %v1051_v55  ;;  %v1081_v0 = vsub.f32 1.0, %v1080_v60 }
 0x58a   : > { %v1036_v51 = vsub.f32 1.0, %v1035_v6  ;;  %v1067_v8 = vmul.f32 %v2277_v12, %v1066_v59 }
 0x58b   : > { %v1053_v9 = vadd.f32 %v2275_v40, %v1052_v16  ;;  %v1082_v21 = vmul.f32 %v2279_v54, %v1081_v0 }
 0x58c   : > { %v1037_v58 = vmul.f32 %v2273_v61, %v1036_v51  ;;  %v1068_v20 = vadd.f32 %v2277_v12, %v1067_v8 }
 0x58d   : > { %v1057_v24 = vsel %vm3609_vm1, %v2275_v40, %v1053_v9  ;;  %v1083_v29 = vadd.f32 %v2279_v54, %v1082_v21 }
 0x58e   : > { %v1038_v3 = vadd.f32 %v2273_v61, %v1037_v58  ;;  %v1062_v27 = vsel %vm1059_vm3, %v1061_v52, %v1057_v24  ;;  %v1072_v28 = vsel %vm3615_vm4, %v2277_v12, %v1068_v20 }
 0x58f   : > { %v1095_v30 = vmul.f32 %v1062_v27, %v4021_v34  ;;  %v1077_v31 = vsel %vm1074_vm5, %v1076_v10, %v1072_v28  ;;  %v1087_v33 = vsel %vm1086_vm8, %v2279_v54, %v1083_v29  ;;  %v3641_v34 = vmov 0.0  }
 0x590   : > { %v1042_v19 = vsel %vm3600_vm15, %v2273_v61, %v1038_v3  ;;  %v1096_v32 = vmul.f32 %v1077_v31, %v4024_v43  ;;  %v1092_v23 = vsel %vm1089_vm9, %v1091_v25, %v1087_v33  ;;  %v3653_v43 = vmov -1e+30  }
 0x591   : > { %v1047_v22 = vsel %vm3588_vm10, %v1046_v17, %v1042_v19  ;;  %1100 = vst.msk [vmem:[#allocation5 + $0x8] sm:$0xff] %vm870_vm6, %v1095_v30  ;;  %v1097_v35 = vmul.f32 %v1092_v23, %v4025_v45  ;;  %v3659_v45 = vmov -1e+30  }
 0x592   : > { %v1094_v26 = vmul.f32 %v1047_v22, %v4023_v42  ;;  %1101 = vst.msk [vmem:[#allocation5 + $0x10] sm:$0xff] %vm870_vm6, %v1096_v32  ;;  %v3651_v42 = vmov 0.0  }
 0x593   : > { %1102 = vst.msk [vmem:[#allocation5 + $0x18] sm:$0xff] %vm870_vm6, %v1097_v35 }
 0x594   : > { %1099 = vst.msk [vmem:[#allocation5] sm:$0xff] %vm870_vm6, %v1094_v26 }
 0x595 LB: >> { %s1794_s23 = sshll.u32 %s2715_s20, 5  ;;  %s1114_s20 = sadd.s32 1, %s2715_s20   ;;  %s2715_s20 = sphi %s3661_s20, %s1114_s20   ;;  %v2711_v45 = vphi %v3659_v45, %v4067_v45   ;;  %v2707_v44 = vphi %v3657_v44, %v4066_v44   ;;  %v2703_v18 = vphi %v3655_v18, %v4065_v18   ;;  %v2699_v43 = vphi %v3653_v43, %v4064_v43   ;;  %v2695_v42 = vphi %v3651_v42, %v4063_v42   ;;  %v2691_v39 = vphi %v3649_v39, %v4062_v39   ;;  %v2687_v15 = vphi %v3647_v15, %v4061_v15   ;;  %v2683_v38 = vphi %v3645_v38, %v4060_v38   ;;  %v2679_v37 = vphi %v3643_v37, %v4059_v37   ;;  %v2675_v34 = vphi %v3641_v34, %v4058_v34   ;;  %v2671_v36 = vphi %v3639_v36, %v4057_v36   ;;  %v2667_v14 = vphi %v3637_v14, %v4056_v14  }
 0x596   : >> { %s1539_s24 = scalar_lea.vmem [#allocation3], %s1794_s23  ;;  %s1542_s18 = scalar_lea.vmem [#allocation4], %s1794_s23 }
 0x597   : >> { %v1798_v49 = vld [vmem:[%s1539_s24 + $0x58] sm:$0xff]  ;;  %v1797_v11 = vld [vmem:[%s1539_s24 + $0x50] sm:$0xff]  ;;  %v1796_v2 = vld [vmem:[%s1539_s24 + $0x48] sm:$0xff]  ;;  %p3780_p9 = scmp.ge.s32.totalorder %s1114_s20, 2  }
 0x598   : >> { %1804 = vmatpush.xpose.msk.msra.mxu0 %vm870_vm6, %v1798_v49  ;;  %1847 = vmatpush.xpose.msk.msra.mxu2 %vm870_vm6, %v1798_v49  ;;  %v1795_v61 = vld [vmem:[%s1539_s24 + $0x40] sm:$0xff]  ;;  %v1803_v52 = vld [vmem:[%s1542_s18 + $0x58] sm:$0xff]  ;;  %v1802_v53 = vld [vmem:[%s1542_s18 + $0x50] sm:$0xff]  ;;  %s2725_s13 = smov (%p3780_p9), 64   ;;  %s1407_s25 = scalar_lea.vmem (%p3780_p9), %s2880_s26, %s1775_s22 }
 0x599   : >> { %1851 = vmatpush.msra.mxu3 %v1803_v52  ;;  %1281 = vmatpush.msra.mxu1 %v1803_v52  ;;  %v1801_v54 = vld [vmem:[%s1542_s18 + $0x48] sm:$0xff]  ;;  %v1800_v55 = vld [vmem:[%s1542_s18 + $0x40] sm:$0xff]  ;;  %s1817_s11 = sshll.u32 (%p3780_p9), %s2575_s30, 2  ;;  %s1818_s16 = sshll.u32 (%p3780_p9), %s2579_s9, 3 }
 0x59a   : > { %s1465_s20 = sadd.s32 (%p3780_p9), %s1818_s16, %s1817_s11  ;;  %s1468_s9 = sshll.u32 (%p3780_p9), %s2882_s14, 4  ;;  %s1469_s9 = int_to_ptr.vmem [resolvable:$true] %s1468_s9 }
 0x59b   : >> { %1852 = vmatpush.msra.mxu3 %v1802_v53  ;;  %1282 = vmatpush.msra.mxu1 %v1802_v53  ;;  %s1819_s23 = sshll.u32 (%p3780_p9), %s1465_s20, 3  ;;  %s1454_s18 = scalar_lea.sflag (%p3780_p9), [#allocation8], %s344_s27 }
 0x59c   : >> { %1805 = vmatpush.xpose.msk.msra.mxu0 %vm870_vm6, %v1797_v11  ;;  %1848 = vmatpush.xpose.msk.msra.mxu2 %vm870_vm6, %v1797_v11  ;;  %s1467_s30 = scalar_lea.hbm (%p3780_p9), %s3998_s8, %s1819_s23  ;;  %s2385_s11 = scalar_lea.hbm (%p3780_p9), %s3998_s8, 128 }
 0x59d   : >> { %1853 = vmatpush.msra.mxu3 %v1801_v54  ;;  %1283 = vmatpush.msra.mxu1 %v1801_v54  ;;  %s1470_s24 = sshll.u32 (%p3780_p9), %s1467_s30, 4  ;;  %s1471_s24 = int_to_ptr.hbm [resolvable:$true] %s1470_s24 }
 0x59e   : > { %s2379_s21 = sshra.s32 (%p3780_p9), %s1471_s24, 4  ;;  %s2380_s21 = int_to_ptr.hbm [resolvable:$true] %s2379_s21 }
 0x59f   : >> { %1854 = vmatpush.msra.mxu3 %v1800_v55  ;;  %1284 = vmatpush.msra.mxu1 %v1800_v55  ;;  %p2386_p13 = scmp.lt.s32.totalorder (%p3780_p9), %s2380_s21, %s3998_s8 }
 0x5a0   : >> { %1806 = vmatpush.xpose.msk.msra.mxu0 %vm870_vm6, %v1796_v2  ;;  %1849 = vmatpush.xpose.msk.msra.mxu2 %vm870_vm6, %v1796_v2 }
 0x5a4   : >> { %1807 = vmatpush.xpose.msk.msra.mxu0 %vm870_vm6, %v1795_v61  ;;  %1850 = vmatpush.xpose.msk.msra.mxu2 %vm870_vm6, %v1795_v61 }
 0x5a7   : >> { %1808 = vmatmul.msk.f32.vlgmr.msra.gmra.mxu0 %vm870_vm6, %v3567_v46  ;;  %1810 = vmatmul.msk.f32.vlgmr.msra.gmra.mxu2 %vm870_vm6, %v3573_v48  ;;  %v1403_v46 = vld [vmem:[#allocation9 + $0x60] sm:$0xff] (%p3780_p9) }
 0x5af   : >> { %1809 = vmatmul.msk.f32.gmra.mxu0 %vm870_vm6, %v3570_v47  ;;  %1811 = vmatmul.msk.f32.gmra.mxu2 %vm870_vm6, %v3577_v41  ;;  %v1402_v41 = vld [vmem:[#allocation9 + $0x58] sm:$0xff] (%p3780_p9) }
 0x624   : >> { %v1180_v40 = vpop.f32.mrf.mxu0 }
 0x625   : >> { %v1193_v51 = vsel %vm924_vm7, %v1180_v40, -inf }
 0x62a   : >> { %v1186_v6 = vpop.f32.mrf.mxu2 }
 0x62b   : >> { %v1199_v50 = vsel %vm924_vm7, %v1186_v6, -inf }
 0x62c   : >> { %v1183_v1 = vpop.f32.mrf.mxu0 }
 0x62d   : >> { %v1196_v12 = vsel %vm924_vm7, %v1183_v1, -inf }
 0x62e   : >> { %1197 = vmax.xlane.f32.xlu0 %v1196_v12 }
 0x632   : >> { %v1189_v13 = vpop.f32.mrf.mxu2 }
 0x633   : >> { %v1202_v17 = vsel %vm924_vm7, %v1189_v13, -inf }
 0x634   : >> { %1203 = vmax.xlane.f32.xlu1 %v1202_v17 }
 0x636   : >> { %1200 = vmax.xlane.f32.xlu0 %v1199_v50 }
 0x63c   : >> { %1194 = vmax.xlane.f32.xlu1 %v1193_v51 }
 0x6a1   : >> { %v1198_v56 = vpop.xlane.xlu0 %1197 }
 0x6a2   : >> { %v3724_v57 = vmax.f32 %v2707_v44, %v1198_v56  }
 0x6a4   : >> { %v1210_v58 = vsub.f32 %v2707_v44, %v3724_v57  ;;  %v1222_v59 = vsub.f32 %v1183_v1, %v3724_v57 }
 0x6a6   : >> { %v1227_v60 = vmul.f32 1.442695, %v1222_v59  ;;  %v1215_v35 = vmul.f32 1.442695, %v1210_v58 }
 0x6a7   : >> { %v1204_v63 = vpop.xlane.xlu1 %1203 }
 0x6a8   : >> { %v3730_v16 = vmax.f32 %v2699_v43, %v1204_v63   ;;  %2280 = vpow2.f32 %v1227_v60 }
 0x6a9   : >> { %v1201_v7 = vpop.xlane.xlu0 %1200 }
 0x6aa   : >> { %v1212_v4 = vsub.f32 %v2699_v43, %v3730_v16  ;;  %v1224_v3 = vsub.f32 %v1189_v13, %v3730_v16  ;;  %v3736_v62 = vmax.f32 %v2703_v18, %v1201_v7   ;;  %v1406_v7 = vld [vmem:[#allocation9 + $0x78] sm:$0xff] (%p3780_p9) }
 0x6ab   : > { %1856 = vmatpush.msra.mxu2 (%p3780_p9), %v1406_v7  ;;  %1416 = vmatpush.msra.mxu0 (%p3780_p9), %v1406_v7 }
 0x6ac   : >> { %v1231_v8 = vmul.f32 1.442695, %v1224_v3  ;;  %v1211_v0 = vsub.f32 %v2703_v18, %v3736_v62  ;;  %v1223_v9 = vsub.f32 %v1186_v6, %v3736_v62  ;;  %v1219_v32 = vmul.f32 1.442695, %v1212_v4  ;;  %v1405_v4 = vld [vmem:[#allocation9 + $0x70] sm:$0xff] (%p3780_p9) }
 0x6ad   : > { %1859 = vmatpush.msra.mxu2 (%p3780_p9), %v1405_v4  ;;  %1417 = vmatpush.msra.mxu0 (%p3780_p9), %v1405_v4 }
 0x6ae   : >> { %v1229_v5 = vmul.f32 1.442695, %v1223_v9  ;;  %v2281_v10 = vpop.eup %2280  ;;  %2282 = vpow2.f32 %v1231_v8  ;;  %v1217_v33 = vmul.f32 1.442695, %v1211_v0  ;;  %v1401_v0 = vld [vmem:[#allocation9 + $0x50] sm:$0xff] (%p3780_p9) }
 0x6af   : >> { %v1195_v19 = vpop.xlane.xlu1 %1194  ;;  %1813 = vmatmul.msk.f32.vlgmr.msra.gmra.mxu3 %vm924_vm7, %v2281_v10  ;;  %v1240_v31 = vsel %vm924_vm7, %v2281_v10, 0.0 }
 0x6b0   : >> { %v3742_v20 = vmax.f32 %v2711_v45, %v1195_v19   ;;  %2284 = vpow2.f32 %v1229_v5  ;;  %1857 = vmatpush.msra.mxu3 (%p3780_p9), %v1406_v7 }
 0x6b2   : >> { %v1209_v21 = vsub.f32 %v2711_v45, %v3742_v20  ;;  %v1221_v22 = vsub.f32 %v1180_v40, %v3742_v20  ;;  %1860 = vmatpush.msra.mxu3 (%p3780_p9), %v1405_v4 }
 0x6b4   : >> { %v1225_v24 = vmul.f32 1.442695, %v1221_v22  ;;  %v2283_v25 = vpop.eup %2282  ;;  %v1213_v23 = vmul.f32 1.442695, %v1209_v21  ;;  %v1400_v22 = vld [vmem:[#allocation9 + $0x48] sm:$0xff] (%p3780_p9) }
 0x6b5   : >> { %v1246_v26 = vsel %vm924_vm7, %v2283_v25, 0.0 }
 0x6b6   : >> { %v2285_v27 = vpop.eup %2284  ;;  %2286 = vpow2.f32 %v1225_v24  ;;  %1247 = vadd.xlane.f32.xlu1 %v1246_v26 }
 0x6b7   : >> { %1814 = vmatmul.msk.f32.gmra.mxu3 %vm924_vm7, %v2285_v27  ;;  %v1243_v28 = vsel %vm924_vm7, %v2285_v27, 0.0  ;;  %2288 = vpow2.f32 %v1219_v32 }
 0x6b8   : >> { %1244 = vadd.xlane.f32.xlu0 %v1243_v28  ;;  %2290 = vpow2.f32 %v1217_v33 }
 0x6b9   : >> { %2292 = vpow2.f32 %v1213_v23 }
 0x6ba   : >> { %2294 = vpow2.f32 %v1215_v35 }
 0x6bc   : >> { %v2287_v29 = vpop.eup %2286 }
 0x6bd   : >> { %1812 = vmatmul.msk.f32.vlgmr.msra.gmra.mxu1 %vm924_vm7, %v2287_v29  ;;  %v1237_v30 = vsel %vm924_vm7, %v2287_v29, 0.0  ;;  %v2289_v43 = vpop.eup %2288 }
 0x6be   : >> { %1238 = vadd.xlane.f32.xlu2 %v1237_v30  ;;  %v2291_v18 = vpop.eup %2290  ;;  %v1236_v44 = vmul.f32 %v2683_v38, %v2289_v43  ;;  %1855 = vmatpush.msra.mxu1 (%p3780_p9), %v1406_v7 }
 0x6bf   : >> { %1815 = vmatmul.msk.f32.gmra.mxu3 %vm924_vm7, %v2283_v25  ;;  %v1235_v11 = vmul.f32 %v2687_v15, %v2291_v18  ;;  %v2293_v40 = vpop.eup %2292  ;;  %v1255_v54 = vmul.f32 %v2671_v36, %v2291_v18  ;;  %v4065_v18 = vmov %v3736_v62 }
 0x6c0   : >> { %v2295_v6 = vpop.eup %2294  ;;  %v1233_v1 = vmul.f32 %v2695_v42, %v2293_v40  ;;  %v1253_v53 = vmul.f32 %v2679_v37, %v2293_v40  ;;  %1858 = vmatpush.msra.mxu1 (%p3780_p9), %v1405_v4  ;;  %v1394_v4 = vld [vmem:[#allocation9 + $0x18] sm:$0xff] (%p3780_p9) }
 0x6c1   : >> { %v1254_v13 = vmul.f32 %v2675_v34, %v2295_v6  ;;  %v1234_v52 = vmul.f32 %v2691_v39, %v2295_v6 }
 0x6c6   : >> { %1241 = vadd.xlane.f32.xlu2 %v1240_v31  ;;  %v1399_v31 = vld [vmem:[#allocation9 + $0x40] sm:$0xff] (%p3780_p9) }
 0x729   : >> { %v1248_v45 = vpop.xlane.xlu1 %1247 }
 0x72a   : >> { %v3756_v38 = vadd.f32 %v1248_v45, %v1236_v44   ;;  %v4066_v44 = vmov %v3724_v57  ;;  %v4067_v45 = vmov %v3742_v20 }
 0x72b   : >> { %v1245_v2 = vpop.xlane.xlu0 %1244 }
 0x72c   : >> { %v4047_v49 = vmov %v3756_v38  ;;  %v3759_v15 = vadd.f32 %v1245_v2, %v1235_v11   ;;  %v1398_v11 = vld [vmem:[#allocation9 + $0x38] sm:$0xff] (%p3780_p9) }
 0x72d   : > { %vm1352_vm12 = vweird.f32 (%p3780_p9), %v4047_v49  ;;  %v1356_v21 = vand.u32 (%p3780_p9), 2147483647, %v4047_v49  ;;  %v1358_v29 = vand.u32 (%p3780_p9), 2147483648, %v4047_v49 }
 0x72e   : >> { %v4048_v61 = vmov %v3759_v15 }
 0x72f   : > { %2297 = vrcp.f32 (%p3780_p9), %v4048_v61  ;;  %v1341_v57 = vand.u32 (%p3780_p9), 2147483647, %v4048_v61  ;;  %v1343_v3 = vand.u32 (%p3780_p9), 2147483648, %v4048_v61  ;;  %vm1337_vm6 = vweird.f32 (%p3780_p9), %v4048_v61 }
 0x730   : > { %vm3901_vm5 = vcmp.eq.f32.partialorder (%p3780_p9), %v1356_v21, 8.507059e+37 }
 0x731   : >> { %v1239_v12 = vpop.xlane.xlu2 %1238  ;;  %vm3841_vm10 = vcmp.eq.f32.partialorder (%p3780_p9), %v1341_v57, 8.507059e+37  ;;  %v1392_v57 = vld [vmem:[#allocation9 + $0x8] sm:$0xff] (%p3780_p9) }
 0x732   : >> { %v3763_v42 = vadd.f32 %v1239_v12, %v1233_v1   ;;  %v1289_v50 = vpop.f32.mrf.mxu3  ;;  %v1359_v12 = vor.u32 (%p3780_p9), 1.1754944e-38, %v1358_v29 }
 0x733   : >> { %v3765_v34 = vadd.f32 %v1289_v50, %v1254_v13   ;;  %v1397_v50 = vld [vmem:[#allocation9 + $0x30] sm:$0xff] (%p3780_p9) }
 0x734   : >> { %v4049_v17 = vmov %v3763_v42  ;;  %v1256_v42 = vmul.f32 %v2667_v14, %v2289_v43  ;;  %v4064_v43 = vmov %v3730_v16  ;;  %v1404_v16 = vld [vmem:[#allocation9 + $0x68] sm:$0xff] (%p3780_p9) }
 0x735   : >> { %v4050_v51 = vmov %v3765_v34  ;;  %2299 = vrcp.f32 (%p3780_p9), %v4049_v17  ;;  %1862 = vmatpush.msra.mxu2 (%p3780_p9), %v1404_v16  ;;  %1418 = vmatpush.msra.mxu0 (%p3780_p9), %v1404_v16  ;;  %v3830_v47 = vpop.eup (%p3780_p9), %2297  ;;  %v1313_v48 = vand.u32 (%p3780_p9), 2147483648, %v4049_v17  ;;  %vm1307_vm7 = vweird.f32 (%p3780_p9), %v4049_v17 }
 0x736   : >> { %v4058_v34 = vmov %v4050_v51  ;;  %2301 = vrcp.f32 (%p3780_p9), %v4047_v49  ;;  %1863 = vmatpush.msra.mxu3 (%p3780_p9), %v1404_v16  ;;  %1861 = vmatpush.msra.mxu1 (%p3780_p9), %v1404_v16  ;;  %v1311_v8 = vand.u32 (%p3780_p9), 2147483647, %v4049_v17  ;;  %vm1338_vm11 = vweird.f32 (%p3780_p9), %v3830_v47  ;;  %v1393_v16 = vld [vmem:[#allocation9 + $0x10] sm:$0xff] (%p3780_p9) }
 0x737   : > { %1865 = vmatpush.msra.mxu2 (%p3780_p9), %v1403_v46  ;;  %1419 = vmatpush.msra.mxu0 (%p3780_p9), %v1403_v46  ;;  %v1314_v20 = vor.u32 (%p3780_p9), 1.1754944e-38, %v1313_v48  ;;  %vm3864_vm15 = vmor (%p3780_p9), %vm1337_vm6, %vm1338_vm11  ;;  %vm1382_vm6 = vcmask (%p3780_p9), 1048064  }
 0x738   : > { %1866 = vmatpush.msra.mxu3 (%p3780_p9), %v1403_v46  ;;  %1864 = vmatpush.msra.mxu1 (%p3780_p9), %v1403_v46  ;;  %vm3884_vm3 = vcmp.eq.f32.partialorder (%p3780_p9), %v1311_v8, 8.507059e+37 }
 0x739   : >> { %v1242_v38 = vpop.xlane.xlu2 %1241  ;;  %1868 = vmatpush.msra.mxu2 (%p3780_p9), %v1402_v41  ;;  %1420 = vmatpush.msra.mxu0 (%p3780_p9), %v1402_v41 }
 0x73a   : >> { %v3770_v39 = vadd.f32 %v1242_v38, %v1234_v52   ;;  %v1286_v15 = vpop.f32.mrf.mxu1  ;;  %v1292_v56 = vpop.f32.mrf.mxu3  ;;  %v4060_v38 = vmov %v4047_v49  ;;  %1869 = vmatpush.msra.mxu3 (%p3780_p9), %v1402_v41  ;;  %1867 = vmatpush.msra.mxu1 (%p3780_p9), %v1402_v41 }
 0x73b   : >> { %v3772_v37 = vadd.f32 %v1286_v15, %v1253_v53   ;;  %v3774_v36 = vadd.f32 %v1292_v56, %v1255_v54   ;;  %v4061_v15 = vmov %v4048_v61  ;;  %1871 = vmatpush.msra.mxu2 (%p3780_p9), %v1401_v0  ;;  %1421 = vmatpush.msra.mxu0 (%p3780_p9), %v1401_v0 }
 0x73c   : >> { %v4051_v55 = vmov %v3770_v39  ;;  %1872 = vmatpush.msra.mxu3 (%p3780_p9), %v1401_v0  ;;  %1870 = vmatpush.msra.mxu1 (%p3780_p9), %v1401_v0  ;;  %v1396_v15 = vld [vmem:[#allocation9 + $0x28] sm:$0xff] (%p3780_p9)  ;;  %v1410_v0 = vld [vmem:[%s1407_s25 + $0x10] sm:$0xff] (%p3780_p9) }
 0x73d   : >> { %v4052_v58 = vmov %v3772_v37  ;;  %v4053_v59 = vmov %v3774_v36  ;;  %v4062_v39 = vmov %v4051_v55  ;;  %2303 = vrcp.f32 (%p3780_p9), %v4051_v55  ;;  %1874 = vmatpush.msra.mxu2 (%p3780_p9), %v1400_v22  ;;  %1422 = vmatpush.msra.mxu0 (%p3780_p9), %v1400_v22 }
 0x73e   : >> { %v4057_v36 = vmov %v4053_v59  ;;  %v4059_v37 = vmov %v4052_v58  ;;  %v1344_v39 = vor.u32 (%p3780_p9), 1.1754944e-38, %v1343_v3  ;;  %vm1322_vm0 = vweird.f32 (%p3780_p9), %v4051_v55  ;;  %1875 = vmatpush.msra.mxu3 (%p3780_p9), %v1400_v22  ;;  %1873 = vmatpush.msra.mxu1 (%p3780_p9), %v1400_v22 }
 0x73f   : > { %v1333_v36 = vmul.f32 (%p3780_p9), %v3830_v47, %v4048_v61  ;;  %v1328_v30 = vand.u32 (%p3780_p9), 2147483648, %v4051_v55  ;;  %v1326_v45 = vand.u32 (%p3780_p9), 2147483647, %v4051_v55  ;;  %1877 = vmatpush.msra.mxu2 (%p3780_p9), %v1399_v31  ;;  %1423 = vmatpush.msra.mxu0 (%p3780_p9), %v1399_v31  ;;  %v1408_v37 = vld [vmem:[%s1407_s25] sm:$0xff] (%p3780_p9) }
 0x740   : > { %1878 = vmatpush.msra.mxu3 (%p3780_p9), %v1399_v31  ;;  %1876 = vmatpush.msra.mxu1 (%p3780_p9), %v1399_v31 }
 0x741   : > { %v1334_v9 = vsub.f32 (%p3780_p9), 1.0, %v1333_v36  ;;  %1880 = vmatpush.msra.mxu2 (%p3780_p9), %v1398_v11  ;;  %vm1327_vm9 = vcmp.eq.f32.partialorder (%p3780_p9), %v1326_v45, 8.507059e+37  ;;  %1424 = vmatpush.msra.mxu0 (%p3780_p9), %v1398_v11 }
 0x742   : >> { %v1295_v60 = vpop.f32.mrf.mxu3  ;;  %1113 = sbr.rel (!%p3780_p9) target bundleno = 1429 (0x595), region = 195  ;;  %1881 = vmatpush.msra.mxu3 (%p3780_p9), %v1398_v11  ;;  %1879 = vmatpush.msra.mxu1 (%p3780_p9), %v1398_v11 }
 0x743   : >> { %v3777_v14 = vadd.f32 %v1295_v60, %v1256_v42   ;;  %v4063_v42 = vmov %v4049_v17  ;;  %v1335_v24 = vmul.f32 (%p3780_p9), %v3830_v47, %v1334_v9  ;;  %1883 = vmatpush.msra.mxu2 (%p3780_p9), %v1397_v50  ;;  %1425 = vmatpush.msra.mxu0 (%p3780_p9), %v1397_v50 }
 0x744   : > { %v1395_v42 = vld [vmem:[#allocation9 + $0x20] sm:$0xff] (%p3780_p9)  ;;  %1884 = vmatpush.msra.mxu3 (%p3780_p9), %v1397_v50  ;;  %1882 = vmatpush.msra.mxu1 (%p3780_p9), %v1397_v50 }
 0x745   : >> { %v4054_v63 = vmov %v3777_v14  ;;  %v1336_v32 = vadd.f32 (%p3780_p9), %v3830_v47, %v1335_v24  ;;  %1886 = vmatpush.msra.mxu2 (%p3780_p9), %v1396_v15  ;;  %1426 = vmatpush.msra.mxu0 (%p3780_p9), %v1396_v15  ;;  %v1411_v24 = vld [vmem:[%s1407_s25 + $0x18] sm:$0xff] (%p3780_p9) }
 0x746   : >> { %v4056_v14 = vmov %v4054_v63  ;;  %1887 = vmatpush.msra.mxu3 (%p3780_p9), %v1396_v15  ;;  %1885 = vmatpush.msra.mxu1 (%p3780_p9), %v1396_v15 }
 0x747   : > { %v3833_v14 = vpop.eup %2299  ;;  %v1340_v2 = vsel %vm3864_vm15, %v3830_v47, %v1336_v32  ;;  %1889 = vmatpush.msra.mxu2 %v1395_v42  ;;  %1427 = vmatpush.msra.mxu0 %v1395_v42 }
 0x748   : > { %v3839_v34 = vpop.eup %2301  ;;  %v1303_v62 = vmul.f32 %v3833_v14, %v4049_v17  ;;  %vm1308_vm13 = vweird.f32 %v3833_v14  ;;  %v1345_v6 = vsel %vm3841_vm10, %v1344_v39, %v1340_v2  ;;  %v1329_v17 = vor.u32 1.1754944e-38, %v1328_v30  ;;  %1890 = vmatpush.msra.mxu3 %v1395_v42  ;;  %1888 = vmatpush.msra.mxu1 %v1395_v42 }
 0x749   : > { %v1348_v5 = vmul.f32 %v3839_v34, %v4047_v49  ;;  %v3852_v10 = vpop.eup %2303  ;;  %vm1353_vm14 = vweird.f32 %v3839_v34  ;;  %vm3877_vm1 = vmor %vm1307_vm7, %vm1308_vm13  ;;  %v1364_v52 = vmul.f32 %v1345_v6, %v4053_v59  ;;  %1892 = vmatpush.msra.mxu2 %v1394_v4  ;;  %1428 = vmatpush.msra.mxu0 %v1394_v4 }
 0x74a   : > { %v1304_v19 = vsub.f32 1.0, %v1303_v62  ;;  %v1318_v26 = vmul.f32 %v3852_v10, %v4051_v55  ;;  %vm1323_vm2 = vweird.f32 %v3852_v10  ;;  %vm3892_vm4 = vmor %vm1352_vm12, %vm1353_vm14  ;;  %1893 = vmatpush.msra.mxu3 %v1394_v4  ;;  %1891 = vmatpush.msra.mxu1 %v1394_v4 }
 0x74b   : > { %v1349_v25 = vsub.f32 1.0, %v1348_v5  ;;  %vm3915_vm8 = vmor %vm1322_vm0, %vm1323_vm2  ;;  %1374 = vrot.lane.b32.xlu0 %v1364_v52, %s2725_s13  ;;  %1895 = vmatpush.msra.mxu2 %v1393_v16 }
 0x74c   : > { %v1305_v28 = vmul.f32 %v3833_v14, %v1304_v19  ;;  %v1319_v35 = vsub.f32 1.0, %v1318_v26  ;;  %1429 = vmatpush.msra.mxu0 %v1393_v16  ;;  %1896 = vmatpush.msra.mxu3 %v1393_v16  ;;  %v1409_v19 = vld [vmem:[%s1407_s25 + $0x8] sm:$0xff] }
 0x74d   : > { %v1350_v23 = vmul.f32 %v3839_v34, %v1349_v25  ;;  %1894 = vmatpush.msra.mxu1 %v1393_v16  ;;  %1898 = vmatpush.msra.mxu2 %v1392_v57 }
 0x74e   : > { %v1306_v43 = vadd.f32 %v3833_v14, %v1305_v28  ;;  %v1320_v49 = vmul.f32 %v3852_v10, %v1319_v35  ;;  %1430 = vmatpush.msra.mxu0 %v1392_v57  ;;  %1899 = vmatpush.msra.mxu3 %v1392_v57 }
 0x74f   : > { %v1351_v61 = vadd.f32 %v3839_v34, %v1350_v23  ;;  %1897 = vmatpush.msra.mxu1 %v1392_v57 }
 0x750   : > { %v1310_v1 = vsel %vm3877_vm1, %v3833_v14, %v1306_v43  ;;  %v1321_v54 = vadd.f32 %v3852_v10, %v1320_v49 }
 0x751   : > { %v1315_v38 = vsel %vm3884_vm3, %v1314_v20, %v1310_v1  ;;  %v1355_v53 = vsel %vm3892_vm4, %v3839_v34, %v1351_v61  ;;  %v2296_v34 = vld [vmem:[%s3994_s4] ss:$0 sm:$0xff] }
 0x752   : > { %v1362_v55 = vmul.f32 %v1315_v38, %v4052_v58  ;;  %v1325_v56 = vsel %vm3915_vm8, %v3852_v10, %v1321_v54  ;;  %v1360_v59 = vsel %vm3901_vm5, %v1359_v12, %v1355_v53 }
 0x753   : > { %v1330_v60 = vsel %vm1327_vm9, %v1329_v17, %v1325_v56  ;;  %v1365_v58 = vmul.f32 %v1360_v59, %v4054_v63  ;;  %v1391_v63 = vld [vmem:[#allocation9] sm:$0xff] }
 0x754   : > { %1370 = vrot.lane.b32.xlu1 %v1362_v55, %s2725_s13  ;;  %v1363_v7 = vmul.f32 %v1330_v60, %v4050_v51  ;;  %1901 = vmatpush.msra.mxu2 %v1391_v63 }
 0x755   : > { %1376 = vrot.lane.b32.xlu0 %v1365_v58, %s2725_s13  ;;  %1431 = vmatpush.msra.mxu0 %v1391_v63 }
 0x756   : > { %1902 = vmatpush.msra.mxu3 %v1391_v63  ;;  %1900 = vmatpush.msra.mxu1 %v1391_v63 }
 0x75c   : > { %1372 = vrot.lane.b32.xlu1 %v1363_v7, %s2725_s13  ;;  %s2381_s13 = scalar_lea.hbm %s2380_s21, 32 }
 0x75d   : > { %p2382_p10 = scmp.ne.s32.totalorder %s2380_s21, %s2381_s13  ;;  %p2387_p0 = scmp.lt.s32.totalorder %s2385_s11, %s2381_s13 }
 0x75f   : > { %p2383_p11 = pnand %p2382_p10, %p2825_p3  ;;  %p2388_p1 = por %p2387_p0, %p2386_p13 }
 0x761   : > { %p2384_p12 = pneg %p2383_p11 }
 0x763   : > { %p2389_p2 = pnand %p2388_p1, %p2384_p12 }
 0x7bd   : > { %v1375_v51 = vpop.permute.xlu0 %1374 }
 0x7be   : > { %1385 = vst.msk [vmem:[#allocation5 + $0x10] sm:$0xff] %vm1382_vm6, %v1375_v51 }
 0x7c5   : > { %v1389_v47 = vld [vmem:[#allocation5 + $0x10] sm:$0xff] }
 0x7c6   : > { %v1371_v3 = vpop.permute.xlu1 %1370  ;;  %1438 = vmatmul.f32.vlgmr.msra.gmra.mxu2 %v1389_v47 }
 0x7c7   : > { %1383 = vst.msk [vmem:[#allocation5] sm:$0xff] %vm1382_vm6, %v1371_v3  ;;  %v1377_v46 = vpop.permute.xlu0 %1376 }
 0x7c8   : > { %1386 = vst.msk [vmem:[#allocation5 + $0x18] sm:$0xff] %vm1382_vm6, %v1377_v46 }
 0x7ce   : > { %v1373_v48 = vpop.permute.xlu1 %1372  ;;  %v1387_v41 = vld [vmem:[#allocation5] sm:$0xff] }
 0x7cf   : > { %1384 = vst.msk [vmem:[#allocation5 + $0x8] sm:$0xff] %vm1382_vm6, %v1373_v48  ;;  %1432 = vmatmul.f32.vlgmr.msra.gmra.mxu0 %v1387_v41  ;;  %v1390_v14 = vld [vmem:[#allocation5 + $0x18] sm:$0xff] }
 0x7d0   : > { %1441 = vmatmul.f32.vlgmr.msra.gmra.mxu3 %v1390_v14 }
 0x7d6   : > { %v1388_v36 = vld [vmem:[#allocation5 + $0x8] sm:$0xff] }
 0x7d7   : > { %1435 = vmatmul.f32.vlgmr.msra.gmra.mxu1 %v1388_v36 }
 0x849   : > { %v1439_v9 = vpop.f32.mrf.mxu2 }
 0x84a   : > { %v1440_v5 = vadd.f32 %v2296_v34, %v1439_v9 }
 0x84c   : > { %v1433_v39 = vpop.f32.mrf.mxu0  ;;  %v1447_v10 = vadd.f32 %v1440_v5, %v1410_v0 }
 0x84d   : > { %v1434_v62 = vadd.f32 %v2296_v34, %v1433_v39 }
 0x84e   : > { %1451 = vst [vmem:[%s2882_s14 + $0x10] sm:$0xff] %v1447_v10 }
 0x84f   : > { %v1445_v8 = vadd.f32 %v1434_v62, %v1408_v37 }
 0x851   : > { %1449 = vst [vmem:[%s2882_s14] sm:$0xff] %v1445_v8 }
 0x853   : > { %v1442_v25 = vpop.f32.mrf.mxu3 }
 0x854   : > { %v1436_v20 = vpop.f32.mrf.mxu1  ;;  %v1443_v26 = vadd.f32 %v2296_v34, %v1442_v25 }
 0x855   : > { %v1437_v21 = vadd.f32 %v2296_v34, %v1436_v20 }
 0x856   : > { %v1448_v27 = vadd.f32 %v1443_v26, %v1411_v24 }
 0x857   : > { %v1446_v22 = vadd.f32 %v1437_v21, %v1409_v19 }
 0x858   : > { %1452 = vst [vmem:[%s2882_s14 + $0x18] sm:$0xff] %v1448_v27 }
 0x859   : > { %1450 = vst [vmem:[%s2882_s14 + $0x8] sm:$0xff] %v1446_v22 }
 0x85a   : > { %2392 = shalt.err (!%p2389_p2)
}
 0x85b   : > { %s2726_s27 = smov 128   ;;  %s2727_s14 = smov 8  }
 0x85c   : > { %1911 = dma.vmem_to_hbm [thread:$0]  (%p2825_p3), %s1469_s9, 512, %s1471_s24, %s1454_s18, %s2726_s27, %s2726_s27, %s2727_s14  }
 0x85d PF: > { %s4082_s20 = sld [smem:[#allocation15_spill]]  ;;  %p1928_p4 = scmp.ge.s32.totalorder %s2591_s12, 2 }
 0x85f   : > { %p1921_p5 = pnand %p1928_p4, %p2834_p8 }
 0x861   : > { %p1922_p6 = pneg %p1921_p5 }
 0x863   : > { %s1485_s26 = sand.u32 1, %s4082_s20  }
 0x864   : > { %s1486_s22 = scalar_lea.sflag [#allocation8], %s1485_s26 }
 0x865   : > { %2558 = dma.done.wait (%p1922_p6), %s1486_s22, 512  }
 0x866   : > { %2560 = vsyncadd (%p1922_p6), %s1486_s22, 4294966784  ;;  %s23_s12 = sadd.s32 1, %s2591_s12   ;;  %s4084_s30 = sld [smem:[#allocation16_spill]] }
 0x867   : > { %p20_p7 = scmp.ge.s32.totalorder %s23_s12, 6   ;;  %s4085_s9 = sld [smem:[#allocation17_spill]] }
 0x868   : > { %s4086_s10 = sld [smem:[#allocation18_spill]]  ;;  %s4088_s27 = smov %s2567_s28 }
 0x869   : > { %s4087_s11 = sld [smem:[#allocation19_spill]]  ;;  %s4089_s28 = smov %s2571_s29 }
 0x86a   : > { %s4090_s29 = smov %s2855_s15  ;;  %22 = sbr.rel (!%p20_p7) target bundleno = 7 (0x7), region = 206 }
 0x86f   :  { %1492 = vsyncpa [#allocation7], 1 }
 0x870   :  { %1494 = vsyncpa [#allocation7 + $0x1], 1 }
 0x871   :  { %1495 = vsyncpa [#allocation10], 1 }
 0x872   :  { %1496 = vsyncpa [#allocation8], 1 }
 0x873   :  { %1498 = vsyncpa [#allocation8 + $0x1], 1 }

</bundles_post_ra>
